<compile_context>
chip_gen: v7x
topology: tpu7x:2x2x1
jax: 0.10.0
libtpu: 0.0.40
codegen_flags: <defaults>
</compile_context>

<pallas_src>
import functools

import numpy as np

import jax
import jax.numpy as jnp
from jax.experimental import pallas as pl
from jax.experimental.pallas import tpu as pltpu

SR = 16000
HOP = 512
BINS_PER_OCTAVE = 96

CPG = 8            # kernel hop-chunks reduced per grid step == chunk alignment
BLOCK_BINS = 128   # CQT bins per weight/output block -> fused [re|im] = 256 lanes


# ---------------------------------------------------------------------------
# Deterministic parameter construction (nnAudio create_cqt_kernels equivalent).
# Synthetic / in-script: time-domain complex Morlet-style CQT kernels,
# L1-normalized, zero padded to the next power of two.  No checkpoint loading.
# ---------------------------------------------------------------------------
def _cqt_band_weights(sr, fmin, fmax, bins_per_octave, filter_scale):
    q = float(filter_scale) / (2.0 ** (1.0 / bins_per_octave) - 1.0)
    n_bins = int(np.ceil(bins_per_octave * np.log2(fmax / fmin)))
    freqs = fmin * 2.0 ** (np.arange(n_bins, dtype=np.float64) / bins_per_octave)
    lengths = np.ceil(q * sr / freqs)
    kw = int(2 ** np.ceil(np.log2(lengths.max())))  # conv kernel width (power of 2)

    kr_t = np.zeros((kw, n_bins), dtype=np.float32)  # transposed: (KW, n_bins)
    ki_t = np.zeros((kw, n_bins), dtype=np.float32)
    for k in range(n_bins):
        l = int(lengths[k])
        start = int(np.ceil(kw / 2.0 - l / 2.0)) - (l % 2)
        n = np.arange(l, dtype=np.float64) - (l // 2)
        win = 0.5 * (1.0 - np.cos(2.0 * np.pi * np.arange(l, dtype=np.float64) / l))
        sig = win * np.exp(2j * np.pi * n * freqs[k] / sr) / l
        sig = sig / np.abs(sig).sum()  # norm=1 (L1), nnAudio default
        kr_t[start:start + l, k] = sig.real.astype(np.float32)
        ki_t[start:start + l, k] = sig.imag.astype(np.float32)
    return kr_t, ki_t, lengths.astype(np.float32)


def build_multicqt_params():
    midi_edges = [21, 57, 75]
    n_per_midi = 8
    midi_width = 1.0 / n_per_midi
    edge_freq = []
    for edge in midi_edges:
        midi_start = edge - (n_per_midi // 2 - 0.5) * midi_width
        edge_freq.append(440.0 * 2.0 ** ((midi_start - 69.0) / 12.0))

    configs = [
        (edge_freq[0], edge_freq[1] - 0.1, 0.5),   # cqt_low
        (edge_freq[1], edge_freq[2] - 0.1, 1.0),   # cqt_mid
        (edge_freq[2], 8000.0, 1.5),               # cqt_high
    ]

    raw = []
    for (fmin, fmax, fscale) in configs:
        kr_t, ki_t, lengths = _cqt_band_weights(SR, fmin, fmax,
                                                BINS_PER_OCTAVE, fscale)
        # Fold the 'librosa' sqrt(length) normalization into the weights.
        scale = np.sqrt(lengths)[None, :].astype(np.float32)
        raw.append(dict(kw=kr_t.shape[0], n_bins=kr_t.shape[1],
                        kr=kr_t * scale, ki=ki_t * scale))

    kw_max = max(r["kw"] for r in raw)
    pad_max = kw_max // 2

    # Uniform 128-bin blocks (last block of each band zero-padded), per-block
    # 8-chunk-aligned nonzero chunk ranges, all slabs stacked row-wise into one
    # fused [re|im] bf16 weight matrix, plus per-grid-step scalar tables.
    w_slabs = []
    step_wrow, step_col, step_chunk, step_first, step_last = [], [], [], [], []
    band_meta = []
    blk_id = 0
    chunk_cursor = 0
    for r in raw:
        kw, n_bins = r["kw"], r["n_bins"]
        n_chunks = kw // HOP
        co = (pad_max - kw // 2) // HOP   # band offset into the shared padded audio
        assert co % CPG == 0 and n_chunks % CPG == 0
        nb = int(np.ceil(n_bins / BLOCK_BINS))
        band_meta.append(dict(n_bins=n_bins, col0=blk_id * BLOCK_BINS))
        for j in range(nb):
            b0 = j * BLOCK_BINS
            b1 = min(b0 + BLOCK_BINS, n_bins)
            kr_b = r["kr"][:, b0:b1]
            ki_b = r["ki"][:, b0:b1]
            support = np.abs(kr_b).max(axis=1) + np.abs(ki_b).max(axis=1)
            rows = np.nonzero(support > 0)[0]
            c_lo = (int(rows[0]) // HOP // CPG) * CPG
            c_hi = min(int(np.ceil((int(rows[-1]) + 1) / (HOP * CPG))) * CPG,
                       n_chunks)
            # Fused [ real | imag ] slab, zero-padded to 2*BLOCK_BINS columns.
            slab = np.zeros(((c_hi - c_lo) * HOP, 2 * BLOCK_BINS), np.float32)
            slab[:, :b1 - b0] = kr_b[c_lo * HOP:c_hi * HOP]
            slab[:, BLOCK_BINS:BLOCK_BINS + (b1 - b0)] = ki_b[c_lo * HOP:c_hi * HOP]
            w_slabs.append(slab)
            n_groups = (c_hi - c_lo) // CPG
            for g in range(n_groups):
                step_wrow.append(chunk_cursor // CPG + g)   # weight row-block idx
                step_col.append(blk_id)                     # output column-block idx
                step_chunk.append(co + c_lo + g * CPG)      # audio start chunk
                step_first.append(1 if g == 0 else 0)
                step_last.append(1 if g == n_groups - 1 else 0)
            chunk_cursor += c_hi - c_lo
            blk_id += 1

    def _tbl(v):
        # One sentinel copy of the last entry so any speculative index-map read
        # for iteration n_steps stays in-bounds / benign.
        return np.asarray(v + [v[-1]], dtype=np.int32)

    return dict(
        configs=configs,
        bands=band_meta,
        n_blocks=blk_id,
        n_steps=len(step_col),
        n_chunks_max=kw_max // HOP,
        pad_max=pad_max,
        w=jnp.asarray(np.concatenate(w_slabs, axis=0), dtype=jnp.bfloat16),
        wrow=_tbl(step_wrow), col=_tbl(step_col), chunk=_tbl(step_chunk),
        first=_tbl(step_first), last=_tbl(step_last),
    )


# ---------------------------------------------------------------------------
# Fused Pallas kernel: one grid step = one (bin-block, kernel-chunk-group)
# pair; whole widened audio resident in VMEM, fused re/im GEMM into an f32
# accumulator, magnitude epilogue on the last chunk group of each block.
# ---------------------------------------------------------------------------
def _fused_cqt_kernel(wrow_ref, col_ref, xchunk_ref, first_ref, last_ref,
                      x_ref, w_ref, o_ref, acc_ref, *, m_rows, row_step, batch):
    s = pl.program_id(0)

    @pl.when(first_ref[s] == 1)
    def _init():
        acc_ref[...] = jnp.zeros_like(acc_ref)

    # Sliding window over the hop-widened audio rows; start is a multiple of
    # row_step (>= 16), i.e. bf16 sublane-tile aligned.
    start = pl.multiple_of(xchunk_ref[s] * batch, row_step)
    xs = x_ref[pl.ds(start, m_rows), :]                     # (M, CPG*HOP) bf16
    acc_ref[...] += jnp.dot(xs, w_ref[...],
                            preferred_element_type=jnp.float32)

    @pl.when(last_ref[s] == 1)
    def _finalize():
        acc = acc_ref[...]
        rr = acc[:, :BLOCK_BINS]
        ii = acc[:, BLOCK_BINS:]
        o_ref[...] = jnp.sqrt(rr * rr + ii * ii).astype(o_ref.dtype)


# ---------------------------------------------------------------------------
# MultiCQT forward: three bands, concatenated along the bin axis (dim 1).
# ---------------------------------------------------------------------------
def multi_cqt(audio, params, hop=HOP):
    b, t = audio.shape
    assert b % 2 == 0, "fused kernel assumes even batch (CPG*b sublane aligned)"
    assert t % hop == 0, "demo assumes audio length is a multiple of hop_length"
    pad_max = params["pad_max"]
    assert t > pad_max, "audio must be longer than the largest reflect pad"

    frames = t // hop + 1
    frames_pad = ((frames + 7) // 8) * 8
    m_rows = frames_pad * b
    row_step = CPG * b
    n_chunks_max = params["n_chunks_max"]

    # Shared max-pad audio: center=True reflect padding once with the largest
    # kernel's pad; smaller-pad bands are sub-windows addressed by a constant
    # chunk offset folded into the step tables.  Zero tail so padded frames
    # have data to read (they are sliced off afterwards).
    x = audio.astype(jnp.float32)
    xp = jnp.pad(x, ((0, 0), (pad_max, pad_max)), mode="reflect")
    xp = jnp.pad(xp, ((0, 0), (0, (frames_pad - frames) * hop)))
    xf = xp.reshape(b, xp.shape[1] // hop, hop)
    rows_u = frames_pad + n_chunks_max - CPG
    # Widened rows: xw[u*b + bb, j*hop + h] = xp[bb, (u+j)*hop + h]
    xw = jnp.concatenate([xf[:, j:j + rows_u, :] for j in range(CPG)], axis=-1)
    xw = (xw.transpose(1, 0, 2)
            .reshape(rows_u * b, CPG * hop)
            .astype(jnp.bfloat16))

    wrow = jnp.asarray(params["wrow"])
    col = jnp.asarray(params["col"])
    xchunk = jnp.asarray(params["chunk"])
    first = jnp.asarray(params["first"])
    last = jnp.asarray(params["last"])

    n_steps = params["n_steps"]
    n_blocks = params["n_blocks"]
    rows_w = rows_u * b
    kcols = CPG * hop

    kernel = functools.partial(_fused_cqt_kernel, m_rows=m_rows,
                               row_step=row_step, batch=b)
    out = pl.pallas_call(
        kernel,
        out_shape=jax.ShapeDtypeStruct((m_rows, n_blocks * BLOCK_BINS),
                                       jnp.float32),
        grid_spec=pltpu.PrefetchScalarGridSpec(
            num_scalar_prefetch=5,
            grid=(n_steps,),
            in_specs=[
                # Whole widened audio resident in VMEM (constant index map ->
                # DMA'd once across the whole grid).
                pl.BlockSpec((rows_w, kcols), lambda s, *_: (0, 0)),
                # Fused [re|im] weight chunk for this step (scalar-prefetched
                # row-block index -> back-to-back sparse weight stream).
                pl.BlockSpec((CPG * hop, 2 * BLOCK_BINS),
                             lambda s, wr, cb, xc, fi, la: (wr[s], 0)),
            ],
            out_specs=pl.BlockSpec((m_rows, BLOCK_BINS),
                                   lambda s, wr, cb, xc, fi, la: (0, cb[s])),
            scratch_shapes=[pltpu.VMEM((m_rows, 2 * BLOCK_BINS), jnp.float32)],
        ),
        compiler_params=pltpu.CompilerParams(
            dimension_semantics=("arbitrary",),
            vmem_limit_bytes=40 * 1024 * 1024,
        ),
    )(wrow, col, xchunk, first, last, xw, params["w"])

    out = out.reshape(frames_pad, b, n_blocks * BLOCK_BINS)[:frames]  # (F, B, cols)
    band_outs = []
    for bm in params["bands"]:
        cols = out[:, :, bm["col0"]:bm["col0"] + bm["n_bins"]]  # pad bins dropped
        band_outs.append(jnp.transpose(cols, (1, 2, 0)))        # (B, bins, F)
    return jnp.concatenate(band_outs, axis=1)                   # (B, sum_bins, F)


# ---------------------------------------------------------------------------
# Pure-JAX f32 reference for one band (sanity checks).
# ---------------------------------------------------------------------------
def _ref_band(audio, kr_t, ki_t, lengths, hop=HOP):
    b, t = audio.shape
    kw = kr_t.shape[0]
    pad = kw // 2
    xp = jnp.pad(audio, ((0, 0), (pad, pad)), mode="reflect")
    frames = t // hop + 1
    idx = jnp.arange(frames)[:, None] * hop + jnp.arange(kw)[None, :]
    patches = xp[:, idx]                                        # (B, F, KW)
    hi = jax.lax.Precision.HIGHEST
    r = jnp.einsum("bfk,kn->bnf", patches, kr_t, precision=hi)
    i = jnp.einsum("bfk,kn->bnf", patches, ki_t, precision=hi)
    return jnp.sqrt(r * r + i * i) * jnp.sqrt(lengths).reshape(1, -1, 1)


if __name__ == "__main__":
    key = jax.random.PRNGKey(0)
    batch, t_samples = 2, 40960          # 2.56 s @ 16 kHz (exceeds largest pad)
    audio = jax.random.normal(key, (batch, t_samples), dtype=jnp.float32)

    params = build_multicqt_params()
    total_bins = sum(bm["n_bins"] for bm in params["bands"])
    frames = t_samples // HOP + 1

    multi_cqt_fn = jax.jit(lambda a: multi_cqt(a, params))
    out = jax.block_until_ready(multi_cqt_fn(audio))

    assert out.shape == (batch, total_bins, frames), out.shape
    assert out.dtype == jnp.float32

    # Per-band sanity checks against a pure-JAX f32 reference built from the
    # same deterministic parameters.  High band: elementwise (short kernels).
    # Low/mid bands (long kernels, bf16 audio+weights): relative Frobenius norm.
    col0 = 0
    for bi, (fmin, fmax, fscale) in enumerate(params["configs"]):
        kr, ki, lens = _cqt_band_weights(SR, fmin, fmax, BINS_PER_OCTAVE, fscale)
        ref = _ref_band(audio, jnp.asarray(kr), jnp.asarray(ki),
                        jnp.asarray(lens))
        got = np.asarray(out[:, col0:col0 + kr.shape[1], :])
        ref = np.asarray(ref)
        if bi == 2:
            np.testing.assert_allclose(got, ref, rtol=5e-2, atol=2e-2)
        else:
            rel = np.linalg.norm(got - ref) / np.linalg.norm(ref)
            assert rel < 2e-2, f"band {bi} relative error {rel}"
        col0 += kr.shape[1]

    print("KERNEL_OK")
</pallas_src>

<mosaic_0001>
module attributes {stable_mosaic.version = 11 : i64} {
  func.func @_fused_cqt_kernel(%arg0: i32, %arg1: memref<31xi32, #tpu.memory_space<smem>>, %arg2: memref<31xi32, #tpu.memory_space<smem>>, %arg3: memref<31xi32, #tpu.memory_space<smem>>, %arg4: memref<31xi32, #tpu.memory_space<smem>>, %arg5: memref<31xi32, #tpu.memory_space<smem>>, %arg6: memref<416x4096xbf16, #tpu.memory_space<vmem>>, %arg7: memref<4096x256xbf16, #tpu.memory_space<vmem>>, %arg8: memref<176x128xf32, #tpu.memory_space<vmem>>, %arg9: memref<176x256xf32, #tpu.memory_space<vmem>>) attributes {dimension_semantics = [#tpu.dimension_semantics<arbitrary>], iteration_bounds = array<i64: 30>, scalar_prefetch = 5 : i64, scratch_operands = 1 : i64, tpu.core_type = #tpu.core_type<tc>, window_params = [{pipeline_mode = #tpu.pipeline_mode<synchronous>, transform_indices = @transform_0, window_bounds = array<i64: 416, 4096>}, {transform_indices = @transform_1, window_bounds = array<i64: 4096, 256>}, {transform_indices = @transform_2, window_bounds = array<i64: 176, 128>}]} {
    %0 = arith.index_cast %arg0 : i32 to index
    %1 = memref.load %arg4[%0] : memref<31xi32, #tpu.memory_space<smem>>
    %c1_i32 = arith.constant 1 : i32
    %2 = arith.cmpi eq, %1, %c1_i32 : i32
    %3 = arith.extui %2 : i1 to i32
    %c0_i32 = arith.constant 0 : i32
    %4 = arith.cmpi ne, %3, %c0_i32 : i32
    scf.if %4 {
      %cst_8 = arith.constant 0.000000e+00 : f32
      %21 = vector.broadcast %cst_8 : f32 to vector<176x256xf32>
      %c0_9 = arith.constant 0 : index
      %c0_10 = arith.constant 0 : index
      %22 = vector.load %arg9[%c0_9, %c0_10] : memref<176x256xf32, #tpu.memory_space<vmem>>, vector<176x256xf32>
      tpu.vector_store %arg9[%c0_9, %c0_10], %21 {strides = array<i32>} : memref<176x256xf32, #tpu.memory_space<vmem>>, vector<176x256xf32>,
    } else {
    }
    %5 = arith.index_cast %arg0 : i32 to index
    %6 = memref.load %arg3[%5] : memref<31xi32, #tpu.memory_space<smem>>
    %c2_i32 = arith.constant 2 : i32
    %7 = arith.muli %6, %c2_i32 : i32
    %8 = tpu.assume_multiple %7, 16 : i32
    %9 = arith.index_cast %8 : i32 to index
    %c0 = arith.constant 0 : index
    %10 = vector.load %arg6[%9, %c0] : memref<416x4096xbf16, #tpu.memory_space<vmem>>, vector<176x4096xbf16>
    %c0_0 = arith.constant 0 : index
    %c0_1 = arith.constant 0 : index
    %11 = vector.load %arg9[%c0_0, %c0_1] : memref<176x256xf32, #tpu.memory_space<vmem>>, vector<176x256xf32>
    %c0_2 = arith.constant 0 : index
    %c0_3 = arith.constant 0 : index
    %12 = vector.load %arg7[%c0_2, %c0_3] : memref<4096x256xbf16, #tpu.memory_space<vmem>>, vector<4096x256xbf16>
    %cst = arith.constant dense<0.000000e+00> : vector<176x256xf32>
    %13 = tpu.matmul %10, %12, %cst {dimension_numbers = #tpu.dot_dimension_numbers<[1], [0], [0], [1], [0, 0, 1, 1], [], []>} : vector<176x4096xbf16>, vector<4096x256xbf16>, vector<176x256xf32> -> vector<176x256xf32>
    %14 = arith.addf %11, %13 : vector<176x256xf32>
    %c0_4 = arith.constant 0 : index
    %c0_5 = arith.constant 0 : index
    %15 = vector.load %arg9[%c0_4, %c0_5] : memref<176x256xf32, #tpu.memory_space<vmem>>, vector<176x256xf32>
    tpu.vector_store %arg9[%c0_4, %c0_5], %14 {strides = array<i32>} : memref<176x256xf32, #tpu.memory_space<vmem>>, vector<176x256xf32>,
    %16 = arith.index_cast %arg0 : i32 to index
    %17 = memref.load %arg5[%16] : memref<31xi32, #tpu.memory_space<smem>>
    %c1_i32_6 = arith.constant 1 : i32
    %18 = arith.cmpi eq, %17, %c1_i32_6 : i32
    %19 = arith.extui %18 : i1 to i32
    %c0_i32_7 = arith.constant 0 : i32
    %20 = arith.cmpi ne, %19, %c0_i32_7 : i32
    scf.if %20 {
      %c0_8 = arith.constant 0 : index
      %c0_9 = arith.constant 0 : index
      %21 = vector.load %arg9[%c0_8, %c0_9] : memref<176x256xf32, #tpu.memory_space<vmem>>, vector<176x256xf32>
      %22 = vector.extract_strided_slice %21 {offsets = [0, 0], sizes = [176, 128], strides = [1, 1]} : vector<176x256xf32> to vector<176x128xf32>
      %23 = vector.extract_strided_slice %21 {offsets = [0, 128], sizes = [176, 128], strides = [1, 1]} : vector<176x256xf32> to vector<176x128xf32>
      %24 = arith.mulf %22, %22 : vector<176x128xf32>
      %25 = arith.mulf %23, %23 : vector<176x128xf32>
      %26 = arith.addf %24, %25 : vector<176x128xf32>
      %27 = math.sqrt %26 : vector<176x128xf32>
      %c0_10 = arith.constant 0 : index
      %c0_11 = arith.constant 0 : index
      %28 = vector.load %arg8[%c0_10, %c0_11] : memref<176x128xf32, #tpu.memory_space<vmem>>, vector<176x128xf32>
      tpu.vector_store %arg8[%c0_10, %c0_11], %27 {strides = array<i32>} : memref<176x128xf32, #tpu.memory_space<vmem>>, vector<176x128xf32>,
    } else {
    }
    return
  }
  func.func @transform_0(%arg0: i32, %arg1: memref<31xi32, #tpu.memory_space<smem>>, %arg2: memref<31xi32, #tpu.memory_space<smem>>, %arg3: memref<31xi32, #tpu.memory_space<smem>>, %arg4: memref<31xi32, #tpu.memory_space<smem>>, %arg5: memref<31xi32, #tpu.memory_space<smem>>) -> (i32, i32) {
    %c0_i32 = arith.constant 0 : i32
    %c0_i32_0 = arith.constant 0 : i32
    %c0_i32_1 = arith.constant 0 : i32
    return %c0_i32, %c0_i32_0 : i32, i32
  }
  func.func @transform_1(%arg0: i32, %arg1: memref<31xi32, #tpu.memory_space<smem>>, %arg2: memref<31xi32, #tpu.memory_space<smem>>, %arg3: memref<31xi32, #tpu.memory_space<smem>>, %arg4: memref<31xi32, #tpu.memory_space<smem>>, %arg5: memref<31xi32, #tpu.memory_space<smem>>) -> (i32, i32) {
    %0 = arith.index_cast %arg0 : i32 to index
    %1 = memref.load %arg1[%0] : memref<31xi32, #tpu.memory_space<smem>>
    %c0_i32 = arith.constant 0 : i32
    %c0_i32_0 = arith.constant 0 : i32
    return %1, %c0_i32 : i32, i32
  }
  func.func @transform_2(%arg0: i32, %arg1: memref<31xi32, #tpu.memory_space<smem>>, %arg2: memref<31xi32, #tpu.memory_space<smem>>, %arg3: memref<31xi32, #tpu.memory_space<smem>>, %arg4: memref<31xi32, #tpu.memory_space<smem>>, %arg5: memref<31xi32, #tpu.memory_space<smem>>) -> (i32, i32) {
    %0 = arith.index_cast %arg0 : i32 to index
    %1 = memref.load %arg2[%0] : memref<31xi32, #tpu.memory_space<smem>>
    %c0_i32 = arith.constant 0 : i32
    %c0_i32_0 = arith.constant 0 : i32
    return %c0_i32, %1 : i32, i32
  }
}

</mosaic_0001>

<bundles_post_ra>
// kernel: _lambda_.1
= control target key start
LH: loop header
LB: loop body
LE: loop exit
PB: predicated region body
PF: predicated region fallthrough
CT: control target
= control target key end

     0   :  { %s12259_s0 = inlined_call_operand.vmem [shape: s32[31], index: 0, kind: input, shape index: {}]   ;;  %s12260_s5 = inlined_call_operand.vmem [shape: bf16[416,4096], index: 5, kind: input, shape index: {}]   ;;  %s12261_s6 = inlined_call_operand.hbm [shape: bf16[122880,256], index: 6, kind: input, shape index: {}]   ;;  %s12262_s7 = inlined_call_operand.vmem [shape: f32[176,1024], index: 7, kind: output, shape index: {}]   ;;  %s12263_s1 = inlined_call_operand.vmem [shape: s32[31], index: 1, kind: input, shape index: {}]   ;;  %s12264_s2 = inlined_call_operand.vmem [shape: s32[31], index: 2, kind: input, shape index: {}]   ;;  %s12265_s3 = inlined_call_operand.vmem [shape: s32[31], index: 3, kind: input, shape index: {}]   ;;  %s12266_s4 = inlined_call_operand.vmem [shape: s32[31], index: 4, kind: input, shape index: {}]  }
   0x1   :  { %s12_s26 = sshll.u32 %s12259_s0, 4  ;;  %s16_s29 = sshll.u32 %s12263_s1, 4  ;;  %s13_s26 = int_to_ptr.vmem [resolvable:$true] %s12_s26  ;;  %s17_s29 = int_to_ptr.vmem [resolvable:$true] %s16_s29 }
   0x2   :  { %s10759_s30 = scalar_lea.vmem %s13_s26, 16  ;;  %p10764_p1 = scmp.lt.s32.totalorder %s13_s26, %s13_s26 }
   0x3   :  { %p10760_p0 = scmp.ne.s32.totalorder %s13_s26, %s10759_s30  ;;  %p10765_p2 = scmp.lt.s32.totalorder %s10759_s30, %s10759_s30 }
   0x5   :  { %p10766_p3 = por %p10765_p2, %p10764_p1 }
   0x7   :  { %p10767_p4 = pnand %p10766_p3, %p10760_p0 }
   0x9   :  { %10770 = shalt.err (!%p10767_p4)  }
   0xa   :  { %s10903_s8 = smov [#allocation4]   ;;  %s10771_s9 = scalar_lea.vmem %s17_s29, 16 }
   0xb   :  { %15 = dma.vmem_to_smem %s13_s26, 16, %s10903_s8, [#allocation3] }
   0xc   :  { %p10772_p5 = scmp.ne.s32.totalorder %s17_s29, %s10771_s9  ;;  %p10776_p6 = scmp.lt.s32.totalorder %s17_s29, %s17_s29 }
   0xd   :  { %p10777_p7 = scmp.lt.s32.totalorder %s10771_s9, %s10771_s9 }
   0xf   :  { %p10778_p8 = por %p10777_p7, %p10776_p6 }
  0x11   :  { %p10779_p9 = pnand %p10778_p8, %p10772_p5 }
  0x13   :  { %10782 = shalt.err (!%p10779_p9)  }
  0x14   :  { %s10904_s0 = smov [#allocation5]   ;;  %s20_s11 = sshll.u32 %s12264_s2, 4  ;;  %s21_s11 = int_to_ptr.vmem [resolvable:$true] %s20_s11 }
  0x15   :  { %19 = dma.vmem_to_smem %s17_s29, 16, %s10904_s0, [#allocation3] }
  0x16   :  { %s24_s14 = sshll.u32 %s12265_s3, 4  ;;  %s10783_s15 = scalar_lea.vmem %s21_s11, 16  ;;  %s25_s14 = int_to_ptr.vmem [resolvable:$true] %s24_s14 }
  0x17   :  { %p10784_p10 = scmp.ne.s32.totalorder %s21_s11, %s10783_s15  ;;  %p10788_p11 = scmp.lt.s32.totalorder %s21_s11, %s21_s11 }
  0x18   :  { %p10789_p12 = scmp.lt.s32.totalorder %s10783_s15, %s10783_s15 }
  0x1a   :  { %p10790_p13 = por %p10789_p12, %p10788_p11 }
  0x1c   :  { %p10791_p0 = pnand %p10790_p13, %p10784_p10 }
  0x1e   :  { %10794 = shalt.err (!%p10791_p0)  }
  0x1f   :  { %s10905_s16 = smov [#allocation6]   ;;  %s10795_s17 = scalar_lea.vmem %s25_s14, 16 }
  0x20   :  { %23 = dma.vmem_to_smem %s21_s11, 16, %s10905_s16, [#allocation3] }
  0x21   :  { %p10796_p1 = scmp.ne.s32.totalorder %s25_s14, %s10795_s17  ;;  %p10800_p2 = scmp.lt.s32.totalorder %s25_s14, %s25_s14 }
  0x22   :  { %p10801_p3 = scmp.lt.s32.totalorder %s10795_s17, %s10795_s17 }
  0x24   :  { %p10802_p4 = por %p10801_p3, %p10800_p2 }
  0x26   :  { %p10803_p5 = pnand %p10802_p4, %p10796_p1 }
  0x28   :  { %10806 = shalt.err (!%p10803_p5)  }
  0x29   :  { %s10906_s2 = smov [#allocation7]   ;;  %s28_s19 = sshll.u32 %s12266_s4, 4  ;;  %s29_s19 = int_to_ptr.vmem [resolvable:$true] %s28_s19 }
  0x2a   :  { %27 = dma.vmem_to_smem %s25_s14, 16, %s10906_s2, [#allocation3] }
  0x2b   :  { %s10807_s20 = scalar_lea.vmem %s29_s19, 16  ;;  %p10812_p7 = scmp.lt.s32.totalorder %s29_s19, %s29_s19 }
  0x2c   :  { %p10808_p6 = scmp.ne.s32.totalorder %s29_s19, %s10807_s20  ;;  %p10813_p8 = scmp.lt.s32.totalorder %s10807_s20, %s10807_s20 }
  0x2e   :  { %p10814_p9 = por %p10813_p8, %p10812_p7 }
  0x30   :  { %p10815_p10 = pnand %p10814_p9, %p10808_p6 }
  0x32   :  { %10818 = shalt.err (!%p10815_p10)  }
  0x33   :  { %s10907_s21 = smov [#allocation8]  }
  0x34   :  { %31 = dma.vmem_to_smem %s29_s19, 16, %s10907_s21, [#allocation3] }
  0x35   :  { %10873 = dma.done.wait [#allocation3], 80 }
  0x36   :  { %10874 = vsyncadd [#allocation3], 4294967216 }
  0x37   :  { %33 = sfence }
  0x38   :  { %34 = vsyncpa [#allocation10], 0 }
  0x39   :  { %36 = vsyncpa [#allocation10 + $0x1], 0  ;;  %s10967_s22 = smov 0   ;;  %s10969_s23 = smov 0  }
  0x3a   :  { %s10971_s4 = smov 0   ;;  %s10973_s24 = smov 0  }
  0x3b   :  { %s10975_s25 = smov 0   ;;  %s10977_s26 = smov 0  }
  0x3c LB: > { %s10996_s27 = sadd.s32 4294967295, %s10901_s26   ;;  %s10999_s28 = sadd.s32 1, %s10901_s26   ;;  %s10901_s26 = sphi %s10977_s26, %s12280_s26   ;;  %s10897_s25 = sphi %s10975_s25, %s12279_s25   ;;  %s10893_s24 = sphi %s10973_s24, %s12278_s24   ;;  %s10889_s4 = sphi %s10971_s4, %s12277_s4   ;;  %s10885_s23 = sphi %s10969_s23, %s12276_s23   ;;  %s10881_s22 = sphi %s10967_s22, %s12275_s22  }
  0x3d   : > { %s67_s29 = sld [smem:[#allocation4 + %s10901_s26]]  ;;  %p79_p11 = scmp.ne.s32.totalorder %s10897_s25, %s10893_s24 }
  0x3e   : > { %s68_s30 = sld [smem:[#allocation4 + %s10999_s28]]  ;;  %p80_p12 = scmp.eq.s32.totalorder %s10901_s26, 0 }
  0x3f   : > { %p85_p13 = scmp.ne.s32.totalorder %s10893_s24, %s10889_s4  ;;  %p86_p0 = scmp.eq.s32.totalorder %s10996_s27, 0 }
  0x40   : > { %s95_s8 = sld [smem:[#allocation5 + %s10901_s26]]  ;;  %s72_s9 = sadd.s32 1, %s10897_s25 }
  0x41   : > { %s96_s0 = sld [smem:[#allocation5 + %s10999_s28]]  ;;  %p11011_p1 = por %p80_p12, %p79_p11 }
  0x42   : > { %p11015_p2 = por %p86_p0, %p85_p13  ;;  %p110_p3 = scmp.ne.s32.totalorder %s10885_s23, %s10881_s22 }
  0x43   : > { %p111_p5 = scmp.eq.s32.totalorder %s10996_s27, 29  ;;  %s100_s12 = sadd.s32 1, %s10885_s23 }
  0x44   : > { %s12269_s10 = scalar_select %p11015_p2, 1, 0 }
  0x45   : > { %s69_s11 = ssub.s32 %s67_s29, %s68_s30  ;;  %p11026_p6 = por %p111_p5, %p110_p3 }
  0x46   : > { %p70_p4 = scmp.eq.s32.totalorder %s69_s11, 0  ;;  %s140_s16 = sand.u32 1, %s10897_s25  }
  0x47   : > { %s97_s14 = ssub.s32 %s95_s8, %s96_s0  ;;  %p9890_p8 = scmp.lt.s32.totalorder %s10901_s26, 30 }
  0x48   : > { %s11024_s13 = scalar_select %p70_p4, %s10897_s25, %s72_s9  }
  0x49   : > { %s12270_s15 = scalar_select %p11026_p6, 1, 0 }
  0x4a   : > { %p98_p7 = scmp.eq.s32.totalorder %s97_s14, 0  ;;  %s8338_s17 = sshll.u32 %s140_s16, 12 }
  0x4b   : > { %p11037_p9 = pnand %p9890_p8, %p11011_p1  ;;  %s144_s21 = scalar_lea.vmem [#allocation9], %s8338_s17 }
  0x4c   : > { %s11033_s2 = scalar_select %p98_p7, %s10885_s23, %s100_s12  }
  0x4d   : > { %s9880_s18 = scalar_select %p11011_p1, [#allocation4], [#allocation12] }
  0x4e   : > { %s9881_s19 = scalar_select %p11011_p1, %s10901_s26, 0 }
  0x4f   : > { %s12282_s18 = smov (!%p9890_p8, %s9880_s18), [#allocation13]  ;;  %s153_s4 = sshll.u32 %s144_s21, 4  ;;  %s11048_s4 = int_to_ptr.vmem [resolvable:$true] %s153_s4 }
  0x50   : > { %s12284_s19 = smov (!%p9890_p8, %s9881_s19), 0  ;;  %p8342_p10 = scmp.ge.s32.totalorder %s10901_s26, 1 }
  0x51   : > { %s145_s20 = sld [smem:[%s12282_s18 + %s12284_s19]]  ;;  %p161_p11 = scmp.lt.s32.totalorder %s10901_s26, 31 }
  0x52   : > { %s11059_s1 = scalar_lea.sflag [#allocation10], %s140_s16  ;;  %p10821_p0 = pneg %p11037_p9 }
  0x53   : > { %p11050_p12 = pnand %p8342_p10, %p161_p11  ;;  %s10824_s14 = scalar_lea.hbm %s12261_s6, 1966080 }
  0x57   : > { %s9217_s30 = sshll.u32 %s145_s20, 16 }
  0x58   : > { %s11057_s0 = scalar_lea.hbm %s12261_s6, %s9217_s30 }
  0x59   : > { %s10819_s11 = scalar_lea.hbm %s11057_s0, 65536  ;;  %p10825_p4 = scmp.lt.u32.totalorder %s11057_s0, %s12261_s6 }
  0x5a   : > { %p10820_p13 = scmp.ne.s32.totalorder %s11057_s0, %s10819_s11  ;;  %p10826_p5 = scmp.lt.u32.totalorder %s10824_s14, %s10819_s11 }
  0x5b   : > { %p10828_p8 = scmp.lt.u32.totalorder %s10819_s11, %s11057_s0 }
  0x5c   : > { %p10822_p1 = pnand %p10821_p0, %p10820_p13  ;;  %p10827_p7 = por %p10826_p5, %p10825_p4 }
  0x5e   : > { %p10823_p3 = pneg %p10822_p1  ;;  %p10829_p10 = por %p10828_p8, %p10827_p7 }
  0x60   : > { %p10830_p11 = pnand %p10829_p10, %p10823_p3 }
  0x62   : > { %10833 = shalt.err (!%p10830_p11)
}
  0x63   : > { %s10834_s16 = scalar_lea.vmem %s11048_s4, 65536  ;;  %s10908_s19 = smov [#allocation9]  }
  0x64   : > { %p10835_p13 = scmp.ne.s32.totalorder %s11048_s4, %s10834_s16  ;;  %s10839_s20 = sshll.u32 %s10908_s19, 4  ;;  %s10840_s20 = int_to_ptr.vmem [resolvable:$false] %s10839_s20 }
  0x65   : > { %s10841_s21 = scalar_lea.vmem %s10840_s20, 131072  ;;  %p10842_p2 = scmp.lt.s32.totalorder %s11048_s4, %s10840_s20 }
  0x66   : > { %p10837_p1 = pnand %p10835_p13, %p10821_p0  ;;  %p10843_p4 = scmp.lt.s32.totalorder %s10841_s21, %s10834_s16 }
  0x68   : > { %p10838_p6 = pneg %p10837_p1  ;;  %p10844_p5 = por %p10843_p4, %p10842_p2 }
  0x6a   : > { %p10845_p7 = pnand %p10844_p5, %p10838_p6 }
  0x6c   : > { %10848 = shalt.err (!%p10845_p7)
}
  0x6d   : > { %s10909_s30 = smov 128   ;;  %s10910_s8 = smov 8  }
  0x6e   : > { %9889 = dma.hbm_to_vmem [thread:$0]  (!%p11037_p9), %s11057_s0, 65536, %s11048_s4, %s11059_s1, %s10909_s30, %s10909_s30, %s10910_s8  }
  0x6f   : > { %165 = sbr.rel (%p11050_p12) target bundleno = 1198 (0x4ae), region = 28  ;;  %s167_s9 = sand.u32 (!%p11050_p12), 1, %s10893_s24  }
  0x70   : > { %s8343_s11 = sshll.u32 (!%p11050_p12), %s167_s9, 12  ;;  %s168_s26 = scalar_lea.sflag (!%p11050_p12), [#allocation10], %s167_s9 }
  0x71   : > { %s11090_s12 = scalar_lea.vmem (!%p11050_p12), [#allocation9], %s8343_s11  ;;  %p12273_p2 = scmp.ne.s32.totalorder (!%p11050_p12), %s12269_s10, 0 }
  0x76   : > { %10876 = dma.done.wait (%p12273_p2), %s168_s26, 65536  }
  0x77   : > { %10878 = vsyncadd (%p12273_p2), %s168_s26, 4294901760  ;;  %s188_s14 = sand.u32 1, %s10881_s22   ;;  %s194_s3 = sld [smem:[#allocation7 + %s10996_s27]] }
  0x78   : > { %s9879_s4 = smul.u32 176, %s188_s14 }
  0x7a   : > { %s11098_s0 = scalar_lea.vmem [#allocation11], %s9879_s4 }
  0x7d   : > { %p8344_p6 = scmp.ne.s32.totalorder %s194_s3, 1 }
  0x7e   : > { %v10911_v0 = vmov (!%p8344_p6), 0.0  }
  0x7f   : > { %198 = sbr.rel (%p8344_p6) target bundleno = 149 (0x95), region = 36  ;;  %199 = vst [vmem:[#allocation2] sm:$0xff] (!%p8344_p6), %v10911_v0  ;;  %200 = vst [vmem:[#allocation2 + $0x8] sm:$0xff] (!%p8344_p6), %v10911_v0 }
  0x80   : > { %201 = vst [vmem:[#allocation2 + $0x10] sm:$0xff] (!%p8344_p6), %v10911_v0  ;;  %202 = vst [vmem:[#allocation2 + $0x18] sm:$0xff] (!%p8344_p6), %v10911_v0 }
  0x81   : > { %203 = vst [vmem:[#allocation2 + $0x20] sm:$0xff] (!%p8344_p6), %v10911_v0  ;;  %204 = vst [vmem:[#allocation2 + $0x28] sm:$0xff] (!%p8344_p6), %v10911_v0 }
  0x82   : > { %205 = vst [vmem:[#allocation2 + $0x30] sm:$0xff] (!%p8344_p6), %v10911_v0  ;;  %206 = vst [vmem:[#allocation2 + $0x38] sm:$0xff] (!%p8344_p6), %v10911_v0 }
  0x83   : > { %207 = vst [vmem:[#allocation2 + $0x40] sm:$0xff] (!%p8344_p6), %v10911_v0  ;;  %208 = vst [vmem:[#allocation2 + $0x48] sm:$0xff] (!%p8344_p6), %v10911_v0 }
  0x84   : > { %209 = vst [vmem:[#allocation2 + $0x50] sm:$0xff] (!%p8344_p6), %v10911_v0  ;;  %210 = vst [vmem:[#allocation2 + $0x58] sm:$0xff] (!%p8344_p6), %v10911_v0 }
  0x85   : > { %211 = vst [vmem:[#allocation2 + $0x60] sm:$0xff] (!%p8344_p6), %v10911_v0  ;;  %212 = vst [vmem:[#allocation2 + $0x68] sm:$0xff] (!%p8344_p6), %v10911_v0 }
  0x86   : > { %213 = vst [vmem:[#allocation2 + $0x70] sm:$0xff] %v10911_v0  ;;  %214 = vst [vmem:[#allocation2 + $0x78] sm:$0xff] %v10911_v0 }
  0x87   : > { %215 = vst [vmem:[#allocation2 + $0x80] sm:$0xff] %v10911_v0  ;;  %216 = vst [vmem:[#allocation2 + $0x88] sm:$0xff] %v10911_v0 }
  0x88   : > { %217 = vst [vmem:[#allocation2 + $0x90] sm:$0xff] %v10911_v0  ;;  %218 = vst [vmem:[#allocation2 + $0x98] sm:$0xff] %v10911_v0 }
  0x89   : > { %219 = vst [vmem:[#allocation2 + $0xa0] sm:$0xff] %v10911_v0  ;;  %220 = vst [vmem:[#allocation2 + $0xa8] sm:$0xff] %v10911_v0 }
  0x8a   : > { %221 = vst [vmem:[#allocation2 + $0xb0] sm:$0xff] %v10911_v0  ;;  %222 = vst [vmem:[#allocation2 + $0xb8] sm:$0xff] %v10911_v0 }
  0x8b   : > { %223 = vst [vmem:[#allocation2 + $0xc0] sm:$0xff] %v10911_v0  ;;  %224 = vst [vmem:[#allocation2 + $0xc8] sm:$0xff] %v10911_v0 }
  0x8c   : > { %225 = vst [vmem:[#allocation2 + $0xd0] sm:$0xff] %v10911_v0  ;;  %226 = vst [vmem:[#allocation2 + $0xd8] sm:$0xff] %v10911_v0 }
  0x8d   : > { %227 = vst [vmem:[#allocation2 + $0xe0] sm:$0xff] %v10911_v0  ;;  %228 = vst [vmem:[#allocation2 + $0xe8] sm:$0xff] %v10911_v0 }
  0x8e   : > { %229 = vst [vmem:[#allocation2 + $0xf0] sm:$0xff] %v10911_v0  ;;  %230 = vst [vmem:[#allocation2 + $0xf8] sm:$0xff] %v10911_v0 }
  0x8f   : > { %231 = vst [vmem:[#allocation2 + $0x100] sm:$0xff] %v10911_v0  ;;  %232 = vst [vmem:[#allocation2 + $0x108] sm:$0xff] %v10911_v0 }
  0x90   : > { %233 = vst [vmem:[#allocation2 + $0x110] sm:$0xff] %v10911_v0  ;;  %234 = vst [vmem:[#allocation2 + $0x118] sm:$0xff] %v10911_v0 }
  0x91   : > { %235 = vst [vmem:[#allocation2 + $0x120] sm:$0xff] %v10911_v0  ;;  %236 = vst [vmem:[#allocation2 + $0x128] sm:$0xff] %v10911_v0 }
  0x92   : > { %237 = vst [vmem:[#allocation2 + $0x130] sm:$0xff] %v10911_v0  ;;  %238 = vst [vmem:[#allocation2 + $0x138] sm:$0xff] %v10911_v0 }
  0x93   : > { %239 = vst [vmem:[#allocation2 + $0x140] sm:$0xff] %v10911_v0  ;;  %240 = vst [vmem:[#allocation2 + $0x148] sm:$0xff] %v10911_v0 }
  0x94   : > { %241 = vst [vmem:[#allocation2 + $0x150] sm:$0xff] %v10911_v0  ;;  %242 = vst [vmem:[#allocation2 + $0x158] sm:$0xff] %v10911_v0 }
  0x95 PF: > { %v9947_v1 = vld [vmem:[%s11090_s12 + $0x4] ss:$8 sps:$4 sm:$0xff]   ;;  %v9951_v3 = vld [vmem:[%s11090_s12] ss:$8 sps:$4 sm:$0xff]   ;;  %v9953_v5 = vld [vmem:[%s11090_s12 + $0x14] ss:$8 sps:$4 sm:$0xff]  }
  0x96   : > { %v9949_v2 = vld [vmem:[%s11090_s12 + $0x804] ss:$8 sps:$4 sm:$0xff]   ;;  %5478 = vmatprep.subr.bf16.mxu1 %v9947_v1  ;;  %v9952_v4 = vld [vmem:[%s11090_s12 + $0x800] ss:$8 sps:$4 sm:$0xff]   ;;  %v9955_v6 = vld [vmem:[%s11090_s12 + $0x814] ss:$8 sps:$4 sm:$0xff]  }
  0x97   : > { %6622 = vmatprep.subr.bf16.mxu0 %v9949_v2  ;;  %5479 = vmatpush1.bf16.msra.mxu1 %v9951_v3  ;;  %v9957_v7 = vld [vmem:[%s11090_s12 + $0x10] ss:$8 sps:$4 sm:$0xff]   ;;  %v9959_v9 = vld [vmem:[%s11090_s12 + $0x24] ss:$8 sps:$4 sm:$0xff]   ;;  %v9963_v11 = vld [vmem:[%s11090_s12 + $0x20] ss:$8 sps:$4 sm:$0xff]  }
  0x98   : > { %6623 = vmatpush1.bf16.msra.mxu0 %v9952_v4  ;;  %5480 = vmatprep.subr.bf16.mxu1 %v9953_v5  ;;  %v9958_v8 = vld [vmem:[%s11090_s12 + $0x810] ss:$8 sps:$4 sm:$0xff]   ;;  %v9961_v10 = vld [vmem:[%s11090_s12 + $0x824] ss:$8 sps:$4 sm:$0xff]   ;;  %v9964_v12 = vld [vmem:[%s11090_s12 + $0x820] ss:$8 sps:$4 sm:$0xff]  }
  0x99   : > { %6624 = vmatprep.subr.bf16.mxu0 %v9955_v6  ;;  %v9965_v13 = vld [vmem:[%s11090_s12 + $0x34] ss:$8 sps:$4 sm:$0xff]   ;;  %v9969_v15 = vld [vmem:[%s11090_s12 + $0x30] ss:$8 sps:$4 sm:$0xff]   ;;  %v9971_v17 = vld [vmem:[%s11090_s12 + $0x44] ss:$8 sps:$4 sm:$0xff]  }
  0x9a   : > { %v9967_v14 = vld [vmem:[%s11090_s12 + $0x834] ss:$8 sps:$4 sm:$0xff]   ;;  %v9970_v16 = vld [vmem:[%s11090_s12 + $0x830] ss:$8 sps:$4 sm:$0xff]   ;;  %v9973_v18 = vld [vmem:[%s11090_s12 + $0x844] ss:$8 sps:$4 sm:$0xff]  }
  0x9b   : > { %5481 = vmatpush1.bf16.msra.mxu1 %v9957_v7  ;;  %v9975_v19 = vld [vmem:[%s11090_s12 + $0x40] ss:$8 sps:$4 sm:$0xff]   ;;  %v9977_v21 = vld [vmem:[%s11090_s12 + $0x54] ss:$8 sps:$4 sm:$0xff]   ;;  %v9981_v23 = vld [vmem:[%s11090_s12 + $0x50] ss:$8 sps:$4 sm:$0xff]  }
  0x9c   : > { %6625 = vmatpush1.bf16.msra.mxu0 %v9958_v8  ;;  %5482 = vmatprep.subr.bf16.mxu1 %v9959_v9  ;;  %v9976_v20 = vld [vmem:[%s11090_s12 + $0x840] ss:$8 sps:$4 sm:$0xff]   ;;  %v9979_v22 = vld [vmem:[%s11090_s12 + $0x854] ss:$8 sps:$4 sm:$0xff]   ;;  %v9982_v24 = vld [vmem:[%s11090_s12 + $0x850] ss:$8 sps:$4 sm:$0xff]  }
  0x9d   : > { %6626 = vmatprep.subr.bf16.mxu0 %v9961_v10  ;;  %v9983_v25 = vld [vmem:[%s11090_s12 + $0x64] ss:$8 sps:$4 sm:$0xff]   ;;  %s243_s22 = sld [smem:[#allocation6 + %s10996_s27]]  ;;  %v9987_v27 = vld [vmem:[%s11090_s12 + $0x60] ss:$8 sps:$4 sm:$0xff]  }
  0x9e   : > { %v9985_v26 = vld [vmem:[%s11090_s12 + $0x864] ss:$8 sps:$4 sm:$0xff]   ;;  %v9988_v28 = vld [vmem:[%s11090_s12 + $0x860] ss:$8 sps:$4 sm:$0xff]   ;;  %v9989_v29 = vld [vmem:[%s11090_s12 + $0x74] ss:$8 sps:$4 sm:$0xff]  }
  0x9f   : > { %5483 = vmatpush1.bf16.msra.mxu1 %v9963_v11  ;;  %v9991_v30 = vld [vmem:[%s11090_s12 + $0x874] ss:$8 sps:$4 sm:$0xff]   ;;  %v9993_v31 = vld [vmem:[%s11090_s12 + $0x70] ss:$8 sps:$4 sm:$0xff]   ;;  %v9995_v33 = vld [vmem:[%s11090_s12 + $0x84] ss:$8 sps:$4 sm:$0xff]  }
  0xa0   : > { %6627 = vmatpush1.bf16.msra.mxu0 %v9964_v12  ;;  %5484 = vmatprep.subr.bf16.mxu1 %v9965_v13  ;;  %v9994_v32 = vld [vmem:[%s11090_s12 + $0x870] ss:$8 sps:$4 sm:$0xff]   ;;  %v9997_v34 = vld [vmem:[%s11090_s12 + $0x884] ss:$8 sps:$4 sm:$0xff]   ;;  %v9999_v35 = vld [vmem:[%s11090_s12 + $0x80] ss:$8 sps:$4 sm:$0xff]  }
  0xa1   : > { %6628 = vmatprep.subr.bf16.mxu0 %v9967_v14  ;;  %v10000_v36 = vld [vmem:[%s11090_s12 + $0x880] ss:$8 sps:$4 sm:$0xff]   ;;  %v10001_v37 = vld [vmem:[%s11090_s12 + $0x94] ss:$8 sps:$4 sm:$0xff]   ;;  %v10005_v39 = vld [vmem:[%s11090_s12 + $0x90] ss:$8 sps:$4 sm:$0xff]  }
  0xa2   : > { %v10003_v38 = vld [vmem:[%s11090_s12 + $0x894] ss:$8 sps:$4 sm:$0xff]   ;;  %v10006_v40 = vld [vmem:[%s11090_s12 + $0x890] ss:$8 sps:$4 sm:$0xff]   ;;  %v10007_v41 = vld [vmem:[%s11090_s12 + $0xa4] ss:$8 sps:$4 sm:$0xff]  }
  0xa3   : > { %5485 = vmatpush1.bf16.msra.mxu1 %v9969_v15  ;;  %s8345_s10 = sshll.u32 %s243_s22, 1  ;;  %v10009_v42 = vld [vmem:[%s11090_s12 + $0x8a4] ss:$8 sps:$4 sm:$0xff]   ;;  %v10011_v43 = vld [vmem:[%s11090_s12 + $0xa0] ss:$8 sps:$4 sm:$0xff]   ;;  %s11971_s19 = sld [smem:[#allocation8 + %s10996_s27]] }
  0xa4   : > { %6629 = vmatpush1.bf16.msra.mxu0 %v9970_v16  ;;  %5486 = vmatprep.subr.bf16.mxu1 %v9971_v17  ;;  %s245_s29 = sshra.s32 %s8345_s10, 3  ;;  %v10012_v44 = vld [vmem:[%s11090_s12 + $0x8a0] ss:$8 sps:$4 sm:$0xff]   ;;  %v10013_v45 = vld [vmem:[%s11090_s12 + $0xb4] ss:$8 sps:$4 sm:$0xff]  }
  0xa5   : > { %6630 = vmatprep.subr.bf16.mxu0 %v9973_v18  ;;  %s9218_s1 = sshll.u32 %s245_s29, 7  ;;  %v10015_v46 = vld [vmem:[%s11090_s12 + $0x8b4] ss:$8 sps:$4 sm:$0xff]   ;;  %v10017_v47 = vld [vmem:[%s11090_s12 + $0xb0] ss:$8 sps:$4 sm:$0xff]  }
  0xa6   : > { %s11148_s16 = scalar_lea.vmem %s12260_s5, %s9218_s1  ;;  %v10018_v48 = vld [vmem:[%s11090_s12 + $0x8b0] ss:$8 sps:$4 sm:$0xff]   ;;  %v10019_v53 = vld [vmem:[%s11090_s12 + $0xc4] ss:$8 sps:$4 sm:$0xff]   ;;  %v10023_v57 = vld [vmem:[%s11090_s12 + $0xc0] ss:$8 sps:$4 sm:$0xff]  }
  0xa7   : > { %5487 = vmatpush1.bf16.msra.mxu1 %v9975_v19  ;;  %v250_v49 = vld [vmem:[%s11148_s16] sm:$0xff]  ;;  %v10025_v59 = vld [vmem:[%s11090_s12 + $0xd4] ss:$8 sps:$4 sm:$0xff]   ;;  %v10029_v61 = vld [vmem:[%s11090_s12 + $0xd0] ss:$8 sps:$4 sm:$0xff]  }
  0xa8   : > { %6631 = vmatpush1.bf16.msra.mxu0 %v9976_v20  ;;  %5488 = vmatprep.subr.bf16.mxu1 %v9977_v21  ;;  %v266_v50 = vld [vmem:[%s11148_s16 + $0x80] sm:$0xff]  ;;  %v10027_v60 = vld [vmem:[%s11090_s12 + $0x8d4] ss:$8 sps:$4 sm:$0xff]   ;;  %v10030_v62 = vld [vmem:[%s11090_s12 + $0x8d0] ss:$8 sps:$4 sm:$0xff]  }
  0xa9   : > { %6632 = vmatprep.subr.bf16.mxu0 %v9979_v22  ;;  %v258_v51 = vld [vmem:[%s11148_s16 + $0x40] sm:$0xff]  ;;  %v8349_v54 = vcombine.high %v250_v49, %v266_v50  ;;  %v10037_v3 = vld [vmem:[%s11090_s12 + $0xf4] ss:$8 sps:$4 sm:$0xff]   ;;  %v10041_v5 = vld [vmem:[%s11090_s12 + $0xf0] ss:$8 sps:$4 sm:$0xff]   ;;  %v8348_v11 = vcombine.low %v250_v49, %v266_v50  ;;  %p9212_p9 = scmp.ne.s32.totalorder %s11971_s19, 1 }
  0xaa   : > { %v274_v52 = vld [vmem:[%s11148_s16 + $0xc0] sm:$0xff]  ;;  %v10039_v4 = vld [vmem:[%s11090_s12 + $0x8f4] ss:$8 sps:$4 sm:$0xff]   ;;  %v10042_v6 = vld [vmem:[%s11090_s12 + $0x8f0] ss:$8 sps:$4 sm:$0xff]  }
  0xab   : > { %5489 = vmatpush1.bf16.msra.mxu1 %v9981_v23  ;;  %v10021_v55 = vld [vmem:[%s11090_s12 + $0x8c4] ss:$8 sps:$4 sm:$0xff]   ;;  %v8365_v56 = vcombine.high %v258_v51, %v274_v52  ;;  %5510 = vmatprep.mubr.bf16.mxu1 %v8349_v54  ;;  %v10024_v58 = vld [vmem:[%s11090_s12 + $0x8c0] ss:$8 sps:$4 sm:$0xff]   ;;  %v8364_v12 = vcombine.low %v258_v51, %v274_v52  ;;  %v10051_v17 = vld [vmem:[%s11090_s12 + $0x114] ss:$8 sps:$4 sm:$0xff]  }
  0xac   : > { %6633 = vmatpush1.bf16.msra.mxu0 %v9982_v24  ;;  %5490 = vmatprep.subr.bf16.mxu1 %v9983_v25  ;;  %v10031_v63 = vld [vmem:[%s11090_s12 + $0xe4] ss:$8 sps:$4 sm:$0xff]   ;;  %v10035_v1 = vld [vmem:[%s11090_s12 + $0xe0] ss:$8 sps:$4 sm:$0xff]   ;;  %v10054_v18 = vld [vmem:[%s11090_s12 + $0x914] ss:$8 sps:$4 sm:$0xff]  }
  0xad   : > { %6634 = vmatprep.subr.bf16.mxu0 %v9985_v26  ;;  %6654 = vmatprep.mubr.bf16.mxu0 %v8365_v56  ;;  %v10033_v0 = vld [vmem:[%s11090_s12 + $0x8e4] ss:$8 sps:$4 sm:$0xff]   ;;  %v10036_v2 = vld [vmem:[%s11090_s12 + $0x8e0] ss:$8 sps:$4 sm:$0xff]   ;;  %v10049_v21 = vld [vmem:[%s11090_s12 + $0x110] ss:$8 sps:$4 sm:$0xff]  }
  0xae   : > { %v10045_v7 = vld [vmem:[%s11090_s12 + $0x104] ss:$8 sps:$4 sm:$0xff]   ;;  %v10043_v15 = vld [vmem:[%s11090_s12 + $0x100] ss:$8 sps:$4 sm:$0xff]   ;;  %v10052_v22 = vld [vmem:[%s11090_s12 + $0x910] ss:$8 sps:$4 sm:$0xff]  }
  0xaf   : > { %5491 = vmatpush1.bf16.msra.mxu1 %v9987_v27  ;;  %v10048_v8 = vld [vmem:[%s11090_s12 + $0x904] ss:$8 sps:$4 sm:$0xff]   ;;  %v10046_v16 = vld [vmem:[%s11090_s12 + $0x900] ss:$8 sps:$4 sm:$0xff]   ;;  %v10073_v51 = vld [vmem:[%s11090_s12 + $0x150] ss:$8 sps:$4 sm:$0xff]  }
  0xb0   : > { %6635 = vmatpush1.bf16.msra.mxu0 %v9988_v28  ;;  %5492 = vmatprep.subr.bf16.mxu1 %v9989_v29  ;;  %v282_v9 = vld [vmem:[%s11148_s16 + $0x100] sm:$0xff]  ;;  %v10075_v52 = vld [vmem:[%s11090_s12 + $0x154] ss:$8 sps:$4 sm:$0xff]   ;;  %v10076_v54 = vld [vmem:[%s11090_s12 + $0x950] ss:$8 sps:$4 sm:$0xff]  }
  0xb1   : > { %6636 = vmatprep.subr.bf16.mxu0 %v9991_v30  ;;  %v298_v10 = vld [vmem:[%s11148_s16 + $0x180] sm:$0xff] }
  0xb2   : > { %v290_v13 = vld [vmem:[%s11148_s16 + $0x140] sm:$0xff]  ;;  %v8381_v19 = vcombine.high %v282_v9, %v298_v10  ;;  %v8380_v29 = vcombine.low %v282_v9, %v298_v10  ;;  %v10088_v10 = vld [vmem:[%s11090_s12 + $0x970] ss:$8 sps:$4 sm:$0xff]  }
  0xb3   : > { %5493 = vmatpush1.bf16.msra.mxu1 %v9993_v31  ;;  %v306_v14 = vld [vmem:[%s11148_s16 + $0x1c0] sm:$0xff] }
  0xb4   : > { %6637 = vmatpush1.bf16.msra.mxu0 %v9994_v32  ;;  %5494 = vmatprep.subr.bf16.mxu1 %v9995_v33  ;;  %v8397_v20 = vcombine.high %v290_v13, %v306_v14  ;;  %v10057_v23 = vld [vmem:[%s11090_s12 + $0x124] ss:$8 sps:$4 sm:$0xff]   ;;  %v8396_v30 = vcombine.low %v290_v13, %v306_v14  ;;  %v10055_v31 = vld [vmem:[%s11090_s12 + $0x120] ss:$8 sps:$4 sm:$0xff]  }
  0xb5   : > { %6638 = vmatprep.subr.bf16.mxu0 %v9997_v34  ;;  %v10060_v24 = vld [vmem:[%s11090_s12 + $0x924] ss:$8 sps:$4 sm:$0xff]   ;;  %v10058_v32 = vld [vmem:[%s11090_s12 + $0x920] ss:$8 sps:$4 sm:$0xff]  }
  0xb6   : > { %v314_v25 = vld [vmem:[%s11148_s16 + $0x200] sm:$0xff] }
  0xb7   : > { %5495 = vmatpush1.bf16.msra.mxu1 %v9999_v35  ;;  %v330_v26 = vld [vmem:[%s11148_s16 + $0x280] sm:$0xff]  ;;  %v10061_v35 = vld [vmem:[%s11090_s12 + $0x130] ss:$8 sps:$4 sm:$0xff]  }
  0xb8   : > { %6639 = vmatpush1.bf16.msra.mxu0 %v10000_v36  ;;  %5496 = vmatprep.subr.bf16.mxu1 %v10001_v37  ;;  %v322_v27 = vld [vmem:[%s11148_s16 + $0x240] sm:$0xff]  ;;  %v8413_v33 = vcombine.high %v314_v25, %v330_v26  ;;  %v10063_v36 = vld [vmem:[%s11090_s12 + $0x134] ss:$8 sps:$4 sm:$0xff]  }
  0xb9   : > { %6640 = vmatprep.subr.bf16.mxu0 %v10003_v38  ;;  %v338_v28 = vld [vmem:[%s11148_s16 + $0x2c0] sm:$0xff]  ;;  %v10066_v37 = vld [vmem:[%s11090_s12 + $0x934] ss:$8 sps:$4 sm:$0xff]   ;;  %v10064_v38 = vld [vmem:[%s11090_s12 + $0x930] ss:$8 sps:$4 sm:$0xff]  }
  0xba   : > { %v8429_v34 = vcombine.high %v322_v27, %v338_v28  ;;  %v10070_v49 = vld [vmem:[%s11090_s12 + $0x940] ss:$8 sps:$4 sm:$0xff]  }
  0xbb   : > { %5497 = vmatpush1.bf16.msra.mxu1 %v10005_v39  ;;  %v10069_v39 = vld [vmem:[%s11090_s12 + $0x144] ss:$8 sps:$4 sm:$0xff]  }
  0xbc   : > { %6641 = vmatpush1.bf16.msra.mxu0 %v10006_v40  ;;  %5498 = vmatprep.subr.bf16.mxu1 %v10007_v41  ;;  %v10072_v40 = vld [vmem:[%s11090_s12 + $0x944] ss:$8 sps:$4 sm:$0xff]  }
  0xbd   : > { %6642 = vmatprep.subr.bf16.mxu0 %v10009_v42  ;;  %v346_v41 = vld [vmem:[%s11148_s16 + $0x300] sm:$0xff] }
  0xbe   : > { %v362_v42 = vld [vmem:[%s11148_s16 + $0x380] sm:$0xff] }
  0xbf   : > { %5499 = vmatpush1.bf16.msra.mxu1 %v10011_v43  ;;  %v354_v43 = vld [vmem:[%s11148_s16 + $0x340] sm:$0xff] }
  0xc0   : > { %6643 = vmatpush1.bf16.msra.mxu0 %v10012_v44  ;;  %5500 = vmatprep.subr.bf16.mxu1 %v10013_v45  ;;  %v370_v44 = vld [vmem:[%s11148_s16 + $0x3c0] sm:$0xff]  ;;  %v8412_v45 = vcombine.low %v314_v25, %v330_v26  ;;  %v10097_v25 = vld [vmem:[%s11090_s12 + $0x190] ss:$8 sps:$4 sm:$0xff]  }
  0xc1   : > { %6644 = vmatprep.subr.bf16.mxu0 %v10015_v46  ;;  %v8428_v46 = vcombine.low %v322_v27, %v338_v28  ;;  %v8461_v50 = vcombine.high %v354_v43, %v370_v44  ;;  %v394_v56 = vld [vmem:[%s11148_s16 + $0x480] sm:$0xff]  ;;  %v10100_v26 = vld [vmem:[%s11090_s12 + $0x990] ss:$8 sps:$4 sm:$0xff]  }
  0xc2   : > { %v434_v9 = vld [vmem:[%s11148_s16 + $0x5c0] sm:$0xff] }
  0xc3   : > { %5501 = vmatpush1.bf16.msra.mxu1 %v10017_v47  ;;  %v10067_v47 = vld [vmem:[%s11090_s12 + $0x140] ss:$8 sps:$4 sm:$0xff]   ;;  %v10105_v27 = vld [vmem:[%s11090_s12 + $0x1a4] ss:$8 sps:$4 sm:$0xff]  }
  0xc4   : > { %6645 = vmatpush1.bf16.msra.mxu0 %v10018_v48  ;;  %5502 = vmatprep.subr.bf16.mxu1 %v10019_v53  ;;  %v8445_v48 = vcombine.high %v346_v41, %v362_v42  ;;  %v10078_v53 = vld [vmem:[%s11090_s12 + $0x954] ss:$8 sps:$4 sm:$0xff]   ;;  %v10108_v28 = vld [vmem:[%s11090_s12 + $0x9a4] ss:$8 sps:$4 sm:$0xff]  }
  0xc5   : > { %6646 = vmatprep.subr.bf16.mxu0 %v10021_v55  ;;  %v378_v55 = vld [vmem:[%s11148_s16 + $0x400] sm:$0xff] }
  0xc6   : > { %v8476_v13 = vcombine.low %v378_v55, %v394_v56 }
  0xc7   : > { %5503 = vmatpush1.bf16.msra.mxu1 %v10023_v57  ;;  %v386_v57 = vld [vmem:[%s11148_s16 + $0x440] sm:$0xff] }
  0xc8   : > { %6647 = vmatpush1.bf16.msra.mxu0 %v10024_v58  ;;  %5504 = vmatprep.subr.bf16.mxu1 %v10025_v59  ;;  %v402_v58 = vld [vmem:[%s11148_s16 + $0x4c0] sm:$0xff] }
  0xc9   : > { %6648 = vmatprep.subr.bf16.mxu0 %v10027_v60  ;;  %v10081_v59 = vld [vmem:[%s11090_s12 + $0x164] ss:$8 sps:$4 sm:$0xff]   ;;  %v8492_v14 = vcombine.low %v386_v57, %v402_v58 }
  0xca   : > { %v10084_v60 = vld [vmem:[%s11090_s12 + $0x964] ss:$8 sps:$4 sm:$0xff]  }
  0xcb   : > { %5505 = vmatpush1.bf16.msra.mxu1 %v10029_v61  ;;  %v8444_v61 = vcombine.low %v346_v41, %v362_v42  ;;  %v10109_v41 = vld [vmem:[%s11090_s12 + $0x1b0] ss:$8 sps:$4 sm:$0xff]  }
  0xcc   : > { %6649 = vmatpush1.bf16.msra.mxu0 %v10030_v62  ;;  %5506 = vmatprep.subr.bf16.mxu1 %v10031_v63  ;;  %v8460_v62 = vcombine.low %v354_v43, %v370_v44  ;;  %v8477_v63 = vcombine.high %v378_v55, %v394_v56  ;;  %v10112_v42 = vld [vmem:[%s11090_s12 + $0x9b0] ss:$8 sps:$4 sm:$0xff]   ;;  %v10117_v43 = vld [vmem:[%s11090_s12 + $0x1c4] ss:$8 sps:$4 sm:$0xff]  }
  0xcd   : > { %6650 = vmatprep.subr.bf16.mxu0 %v10033_v0  ;;  %v8493_v0 = vcombine.high %v386_v57, %v402_v58  ;;  %v10120_v44 = vld [vmem:[%s11090_s12 + $0x9c4] ss:$8 sps:$4 sm:$0xff]   ;;  %v10121_v57 = vld [vmem:[%s11090_s12 + $0x1d0] ss:$8 sps:$4 sm:$0xff]  }
  0xce   : > { %v514_v55 = vld [vmem:[%s11148_s16 + $0x840] sm:$0xff]  ;;  %v10124_v58 = vld [vmem:[%s11090_s12 + $0x9d0] ss:$8 sps:$4 sm:$0xff]  }
  0xcf   : > { %5507 = vmatpush1.bf16.msra.mxu1 %v10035_v1  ;;  %v10079_v1 = vld [vmem:[%s11090_s12 + $0x160] ss:$8 sps:$4 sm:$0xff]  }
  0xd0   : > { %6651 = vmatpush1.bf16.msra.mxu0 %v10036_v2  ;;  %5508 = vmatprep.subr.bf16.mxu1 %v10037_v3  ;;  %v10082_v2 = vld [vmem:[%s11090_s12 + $0x960] ss:$8 sps:$4 sm:$0xff]   ;;  %v10087_v3 = vld [vmem:[%s11090_s12 + $0x174] ss:$8 sps:$4 sm:$0xff]  }
  0xd1   : > { %6652 = vmatprep.subr.bf16.mxu0 %v10039_v4  ;;  %v10090_v4 = vld [vmem:[%s11090_s12 + $0x974] ss:$8 sps:$4 sm:$0xff]   ;;  %v530_v56 = vld [vmem:[%s11148_s16 + $0x8c0] sm:$0xff] }
  0xd3   : > { %5509 = vmatpush1.bf16.msra.mxu1 %v10041_v5  ;;  %v410_v5 = vld [vmem:[%s11148_s16 + $0x500] sm:$0xff] }
  0xd4   : > { %6653 = vmatpush1.bf16.msra.mxu0 %v10042_v6  ;;  %5621 = vmatprep.subr.bf16.mxu1 %v10045_v7  ;;  %v426_v6 = vld [vmem:[%s11148_s16 + $0x580] sm:$0xff]  ;;  %v10085_v7 = vld [vmem:[%s11090_s12 + $0x170] ss:$8 sps:$4 sm:$0xff]  }
  0xd5   : > { %6765 = vmatprep.subr.bf16.mxu0 %v10048_v8  ;;  %v418_v8 = vld [vmem:[%s11148_s16 + $0x540] sm:$0xff] }
  0xd6   : > { %5511 = vmatmul.mubr.bf16.vlgmr.msra.gmra.mrb[0].mxu1 %v8348_v11  ;;  %v10093_v11 = vld [vmem:[%s11090_s12 + $0x184] ss:$8 sps:$4 sm:$0xff]  }
  0xd7   : > { %6655 = vmatmul.mubr.bf16.vlgmr.msra.gmra.mrb[0].mxu0 %v8364_v12  ;;  %5622 = vmatpush1.bf16.msra.mxu1 %v10043_v15  ;;  %v10096_v12 = vld [vmem:[%s11090_s12 + $0x984] ss:$8 sps:$4 sm:$0xff]   ;;  %v8509_v15 = vcombine.high %v410_v5, %v426_v6 }
  0xd8   : > { %6766 = vmatpush1.bf16.msra.mxu0 %v10046_v16  ;;  %5623 = vmatprep.subr.bf16.mxu1 %v10051_v17  ;;  %v8525_v16 = vcombine.high %v418_v8, %v434_v9  ;;  %v10091_v17 = vld [vmem:[%s11090_s12 + $0x180] ss:$8 sps:$4 sm:$0xff]  }
  0xd9   : > { %6767 = vmatprep.subr.bf16.mxu0 %v10054_v18  ;;  %5520 = vmatprep.mubr.bf16.mxu1 %v8381_v19  ;;  %v10094_v18 = vld [vmem:[%s11090_s12 + $0x980] ss:$8 sps:$4 sm:$0xff]   ;;  %v10099_v19 = vld [vmem:[%s11090_s12 + $0x194] ss:$8 sps:$4 sm:$0xff]  }
  0xda   : > { %6664 = vmatprep.mubr.bf16.mxu0 %v8397_v20  ;;  %v10102_v20 = vld [vmem:[%s11090_s12 + $0x994] ss:$8 sps:$4 sm:$0xff]  }
  0xdb   : > { %5624 = vmatpush1.bf16.msra.mxu1 %v10049_v21  ;;  %v442_v21 = vld [vmem:[%s11148_s16 + $0x600] sm:$0xff] }
  0xdc   : > { %6768 = vmatpush1.bf16.msra.mxu0 %v10052_v22  ;;  %5625 = vmatprep.subr.bf16.mxu1 %v10057_v23  ;;  %v458_v22 = vld [vmem:[%s11148_s16 + $0x680] sm:$0xff] }
  0xdd   : > { %6769 = vmatprep.subr.bf16.mxu0 %v10060_v24  ;;  %v450_v23 = vld [vmem:[%s11148_s16 + $0x640] sm:$0xff] }
  0xde   : > { %5521 = vmatmul.mubr.bf16.gmra.mrb[4].mxu1 %v8380_v29  ;;  %v466_v24 = vld [vmem:[%s11148_s16 + $0x6c0] sm:$0xff]  ;;  %v8508_v29 = vcombine.low %v410_v5, %v426_v6 }
  0xdf   : > { %6665 = vmatmul.mubr.bf16.gmra.mrb[4].mxu0 %v8396_v30  ;;  %5626 = vmatpush1.bf16.msra.mxu1 %v10055_v31  ;;  %v8524_v30 = vcombine.low %v418_v8, %v434_v9  ;;  %v8541_v31 = vcombine.high %v442_v21, %v458_v22  ;;  %v538_v5 = vld [vmem:[%s11148_s16 + $0x900] sm:$0xff]  ;;  %v10133_v9 = vld [vmem:[%s11090_s12 + $0x1f0] ss:$8 sps:$4 sm:$0xff]  }
  0xe0   : > { %6770 = vmatpush1.bf16.msra.mxu0 %v10058_v32  ;;  %5530 = vmatprep.mubr.bf16.mxu1 %v8413_v33  ;;  %v8557_v32 = vcombine.high %v450_v23, %v466_v24  ;;  %v10103_v33 = vld [vmem:[%s11090_s12 + $0x1a0] ss:$8 sps:$4 sm:$0xff]  }
  0xe1   : > { %6674 = vmatprep.mubr.bf16.mxu0 %v8429_v34  ;;  %5627 = vmatprep.subr.bf16.mxu1 %v10063_v36  ;;  %v10106_v34 = vld [vmem:[%s11090_s12 + $0x9a0] ss:$8 sps:$4 sm:$0xff]   ;;  %v10114_v36 = vld [vmem:[%s11090_s12 + $0x9b4] ss:$8 sps:$4 sm:$0xff]  }
  0xe2   : > { %6771 = vmatprep.subr.bf16.mxu0 %v10066_v37  ;;  %v474_v37 = vld [vmem:[%s11148_s16 + $0x700] sm:$0xff] }
  0xe3   : > { %5628 = vmatpush1.bf16.msra.mxu1 %v10061_v35  ;;  %v10111_v35 = vld [vmem:[%s11090_s12 + $0x1b4] ss:$8 sps:$4 sm:$0xff]   ;;  %v554_v6 = vld [vmem:[%s11148_s16 + $0x980] sm:$0xff] }
  0xe4   : > { %6772 = vmatpush1.bf16.msra.mxu0 %v10064_v38  ;;  %5629 = vmatprep.subr.bf16.mxu1 %v10069_v39  ;;  %v490_v38 = vld [vmem:[%s11148_s16 + $0x780] sm:$0xff] }
  0xe5   : > { %6773 = vmatprep.subr.bf16.mxu0 %v10072_v40  ;;  %v482_v39 = vld [vmem:[%s11148_s16 + $0x740] sm:$0xff] }
  0xe6   : > { %5531 = vmatmul.mubr.bf16.gmra.mrb[8].mxu1 %v8412_v45  ;;  %v498_v40 = vld [vmem:[%s11148_s16 + $0x7c0] sm:$0xff]  ;;  %v8540_v45 = vcombine.low %v442_v21, %v458_v22  ;;  %v8636_v21 = vcombine.low %v538_v5, %v554_v6 }
  0xe7   : > { %6675 = vmatmul.mubr.bf16.gmra.mrb[8].mxu0 %v8428_v46  ;;  %5540 = vmatprep.mubr.bf16.mxu1 %v8445_v48  ;;  %v8556_v46 = vcombine.low %v450_v23, %v466_v24  ;;  %v8589_v48 = vcombine.high %v482_v39, %v498_v40  ;;  %v562_v8 = vld [vmem:[%s11148_s16 + $0x9c0] sm:$0xff] }
  0xe8   : > { %5630 = vmatpush1.bf16.msra.mxu1 %v10067_v47  ;;  %6684 = vmatprep.mubr.bf16.mxu0 %v8461_v50  ;;  %v8573_v47 = vcombine.high %v474_v37, %v490_v38  ;;  %v10118_v50 = vld [vmem:[%s11090_s12 + $0x9c0] ss:$8 sps:$4 sm:$0xff]  }
  0xe9   : > { %6774 = vmatpush1.bf16.msra.mxu0 %v10070_v49  ;;  %5631 = vmatprep.subr.bf16.mxu1 %v10075_v52  ;;  %v10115_v49 = vld [vmem:[%s11090_s12 + $0x1c0] ss:$8 sps:$4 sm:$0xff]   ;;  %v10126_v52 = vld [vmem:[%s11090_s12 + $0x9d4] ss:$8 sps:$4 sm:$0xff]  }
  0xea   : > { %6775 = vmatprep.subr.bf16.mxu0 %v10078_v53  ;;  %v506_v53 = vld [vmem:[%s11148_s16 + $0x800] sm:$0xff] }
  0xec   : > { %5632 = vmatpush1.bf16.msra.mxu1 %v10073_v51  ;;  %v10123_v51 = vld [vmem:[%s11090_s12 + $0x1d4] ss:$8 sps:$4 sm:$0xff]  }
  0xed   : > { %6776 = vmatpush1.bf16.msra.mxu0 %v10076_v54  ;;  %5633 = vmatprep.subr.bf16.mxu1 %v10081_v59  ;;  %v522_v54 = vld [vmem:[%s11148_s16 + $0x880] sm:$0xff] }
  0xee   : > { %6777 = vmatprep.subr.bf16.mxu0 %v10084_v60  ;;  %5541 = vmatmul.mubr.bf16.gmra.mrb[12].mxu1 %v8444_v61  ;;  %v10129_v59 = vld [vmem:[%s11090_s12 + $0x1e4] ss:$8 sps:$4 sm:$0xff]   ;;  %v8572_v61 = vcombine.low %v474_v37, %v490_v38 }
  0xef   : > { %6685 = vmatmul.mubr.bf16.gmra.mrb[12].mxu0 %v8460_v62  ;;  %5550 = vmatprep.mubr.bf16.mxu1 %v8477_v63  ;;  %v10132_v60 = vld [vmem:[%s11090_s12 + $0x9e4] ss:$8 sps:$4 sm:$0xff]   ;;  %v8588_v62 = vcombine.low %v482_v39, %v498_v40  ;;  %v8605_v63 = vcombine.high %v506_v53, %v522_v54  ;;  %v10142_v40 = vld [vmem:[%s11090_s12 + $0xa00] ss:$8 sps:$4 sm:$0xff]  }
  0xf0   : > { %6694 = vmatprep.mubr.bf16.mxu0 %v8493_v0  ;;  %5634 = vmatpush1.bf16.msra.mxu1 %v10079_v1  ;;  %v8621_v0 = vcombine.high %v514_v55, %v530_v56  ;;  %v10127_v1 = vld [vmem:[%s11090_s12 + $0x1e0] ss:$8 sps:$4 sm:$0xff]  }
  0xf1   : > { %6778 = vmatpush1.bf16.msra.mxu0 %v10082_v2  ;;  %5635 = vmatprep.subr.bf16.mxu1 %v10087_v3  ;;  %v10130_v2 = vld [vmem:[%s11090_s12 + $0x9e0] ss:$8 sps:$4 sm:$0xff]   ;;  %v10135_v3 = vld [vmem:[%s11090_s12 + $0x1f4] ss:$8 sps:$4 sm:$0xff]  }
  0xf2   : > { %6779 = vmatprep.subr.bf16.mxu0 %v10090_v4  ;;  %v10138_v4 = vld [vmem:[%s11090_s12 + $0x9f4] ss:$8 sps:$4 sm:$0xff]   ;;  %v291_v38 = vld [vmem:[%s11148_s16 + $0x148] sm:$0xff] }
  0xf3   : > { %v307_v39 = vld [vmem:[%s11148_s16 + $0x1c8] sm:$0xff] }
  0xf4   : > { %5636 = vmatpush1.bf16.msra.mxu1 %v10085_v7  ;;  %v546_v7 = vld [vmem:[%s11148_s16 + $0x940] sm:$0xff] }
  0xf5   : > { %6780 = vmatpush1.bf16.msra.mxu0 %v10088_v10  ;;  %5637 = vmatprep.subr.bf16.mxu1 %v10093_v11  ;;  %v10136_v10 = vld [vmem:[%s11090_s12 + $0x9f0] ss:$8 sps:$4 sm:$0xff]   ;;  %v10141_v11 = vld [vmem:[%s11090_s12 + $0x204] ss:$8 sps:$4 sm:$0xff]   ;;  %v8652_v22 = vcombine.low %v546_v7, %v562_v8 }
  0xf6   : > { %6781 = vmatprep.subr.bf16.mxu0 %v10096_v12  ;;  %5551 = vmatmul.mubr.bf16.gmra.mrb[16].mxu1 %v8476_v13  ;;  %v10144_v12 = vld [vmem:[%s11090_s12 + $0xa04] ss:$8 sps:$4 sm:$0xff]   ;;  %v8604_v13 = vcombine.low %v506_v53, %v522_v54  ;;  %v8398_v54 = vcombine.low %v291_v38, %v307_v39 }
  0xf7   : > { %6695 = vmatmul.mubr.bf16.gmra.mrb[16].mxu0 %v8492_v14  ;;  %5560 = vmatprep.mubr.bf16.mxu1 %v8509_v15  ;;  %v8620_v14 = vcombine.low %v514_v55, %v530_v56  ;;  %v8637_v15 = vcombine.high %v538_v5, %v554_v6  ;;  %v10151_v55 = vld [vmem:[%s11090_s12 + $0x220] ss:$8 sps:$4 sm:$0xff]  }
  0xf8   : > { %6704 = vmatprep.mubr.bf16.mxu0 %v8525_v16  ;;  %5638 = vmatpush1.bf16.msra.mxu1 %v10091_v17  ;;  %v8653_v16 = vcombine.high %v546_v7, %v562_v8  ;;  %v570_v17 = vld [vmem:[%s11148_s16 + $0xa00] sm:$0xff] }
  0xf9   : > { %6782 = vmatpush1.bf16.msra.mxu0 %v10094_v18  ;;  %5639 = vmatprep.subr.bf16.mxu1 %v10099_v19  ;;  %v586_v18 = vld [vmem:[%s11148_s16 + $0xa80] sm:$0xff] }
  0xfa   : > { %6783 = vmatprep.subr.bf16.mxu0 %v10102_v20  ;;  %v578_v19 = vld [vmem:[%s11148_s16 + $0xa40] sm:$0xff]  ;;  %v8669_v23 = vcombine.high %v570_v17, %v586_v18 }
  0xfb   : > { %v594_v20 = vld [vmem:[%s11148_s16 + $0xac0] sm:$0xff] }
  0xfc   : > { %5640 = vmatpush1.bf16.msra.mxu1 %v10097_v25  ;;  %v8685_v24 = vcombine.high %v578_v19, %v594_v20  ;;  %v251_v25 = vld [vmem:[%s11148_s16 + $0x8] sm:$0xff] }
  0xfd   : > { %6784 = vmatpush1.bf16.msra.mxu0 %v10100_v26  ;;  %5641 = vmatprep.subr.bf16.mxu1 %v10105_v27  ;;  %v267_v26 = vld [vmem:[%s11148_s16 + $0x88] sm:$0xff] }
  0xfe   : > { %6785 = vmatprep.subr.bf16.mxu0 %v10108_v28  ;;  %5561 = vmatmul.mubr.bf16.gmra.mrb[20].mxu1 %v8508_v29  ;;  %v259_v27 = vld [vmem:[%s11148_s16 + $0x48] sm:$0xff]  ;;  %v8668_v29 = vcombine.low %v570_v17, %v586_v18 }
  0xff   : > { %6705 = vmatmul.mubr.bf16.gmra.mrb[20].mxu0 %v8524_v30  ;;  %5570 = vmatprep.mubr.bf16.mxu1 %v8541_v31  ;;  %v275_v28 = vld [vmem:[%s11148_s16 + $0xc8] sm:$0xff]  ;;  %v8684_v30 = vcombine.low %v578_v19, %v594_v20  ;;  %v8351_v31 = vcombine.high %v251_v25, %v267_v26 }
 0x100   : > { %6714 = vmatprep.mubr.bf16.mxu0 %v8557_v32  ;;  %5642 = vmatpush1.bf16.msra.mxu1 %v10103_v33  ;;  %v8367_v32 = vcombine.high %v259_v27, %v275_v28  ;;  %v10139_v33 = vld [vmem:[%s11090_s12 + $0x200] ss:$8 sps:$4 sm:$0xff]   ;;  %v8366_v37 = vcombine.low %v259_v27, %v275_v28  ;;  %v10177_v19 = vld [vmem:[%s11090_s12 + $0x264] ss:$8 sps:$4 sm:$0xff]   ;;  %v10183_v27 = vld [vmem:[%s11090_s12 + $0x274] ss:$8 sps:$4 sm:$0xff]  }
 0x101   : > { %6786 = vmatpush1.bf16.msra.mxu0 %v10106_v34  ;;  %5643 = vmatprep.subr.bf16.mxu1 %v10111_v35  ;;  %v283_v34 = vld [vmem:[%s11148_s16 + $0x108] sm:$0xff]  ;;  %v10186_v28 = vld [vmem:[%s11090_s12 + $0xa74] ss:$8 sps:$4 sm:$0xff]  }
 0x102   : > { %6787 = vmatprep.subr.bf16.mxu0 %v10114_v36  ;;  %v299_v35 = vld [vmem:[%s11148_s16 + $0x188] sm:$0xff]  ;;  %v8350_v36 = vcombine.low %v251_v25, %v267_v26 }
 0x103   : > { %v8382_v53 = vcombine.low %v283_v34, %v299_v35  ;;  %v10154_v56 = vld [vmem:[%s11090_s12 + $0xa20] ss:$8 sps:$4 sm:$0xff]   ;;  %v10180_v20 = vld [vmem:[%s11090_s12 + $0xa64] ss:$8 sps:$4 sm:$0xff]  }
 0x104   : > { %5644 = vmatpush1.bf16.msra.mxu1 %v10109_v41  ;;  %v10147_v41 = vld [vmem:[%s11090_s12 + $0x214] ss:$8 sps:$4 sm:$0xff]   ;;  %v10163_v7 = vld [vmem:[%s11090_s12 + $0x240] ss:$8 sps:$4 sm:$0xff]  }
 0x105   : > { %6788 = vmatpush1.bf16.msra.mxu0 %v10112_v42  ;;  %5645 = vmatprep.subr.bf16.mxu1 %v10117_v43  ;;  %v10150_v42 = vld [vmem:[%s11090_s12 + $0xa14] ss:$8 sps:$4 sm:$0xff]   ;;  %v8383_v43 = vcombine.high %v283_v34, %v299_v35  ;;  %v387_v17 = vld [vmem:[%s11148_s16 + $0x448] sm:$0xff]  ;;  %v10184_v34 = vld [vmem:[%s11090_s12 + $0xa70] ss:$8 sps:$4 sm:$0xff]  }
 0x106   : > { %6789 = vmatprep.subr.bf16.mxu0 %v10120_v44  ;;  %5571 = vmatmul.mubr.bf16.gmra.mrb[24].mxu1 %v8540_v45  ;;  %v8399_v44 = vcombine.high %v291_v38, %v307_v39  ;;  %v10145_v45 = vld [vmem:[%s11090_s12 + $0x210] ss:$8 sps:$4 sm:$0xff]   ;;  %v403_v18 = vld [vmem:[%s11148_s16 + $0x4c8] sm:$0xff] }
 0x107   : > { %6715 = vmatmul.mubr.bf16.gmra.mrb[24].mxu0 %v8556_v46  ;;  %5580 = vmatprep.mubr.bf16.mxu1 %v8573_v47  ;;  %v10148_v46 = vld [vmem:[%s11090_s12 + $0xa10] ss:$8 sps:$4 sm:$0xff]   ;;  %v10153_v47 = vld [vmem:[%s11090_s12 + $0x224] ss:$8 sps:$4 sm:$0xff]   ;;  %v10175_v25 = vld [vmem:[%s11090_s12 + $0x260] ss:$8 sps:$4 sm:$0xff]   ;;  %v8494_v38 = vcombine.low %v387_v17, %v403_v18 }
 0x108   : > { %6724 = vmatprep.mubr.bf16.mxu0 %v8589_v48  ;;  %5646 = vmatpush1.bf16.msra.mxu1 %v10115_v49  ;;  %v10156_v48 = vld [vmem:[%s11090_s12 + $0xa24] ss:$8 sps:$4 sm:$0xff]   ;;  %v10178_v26 = vld [vmem:[%s11090_s12 + $0xa60] ss:$8 sps:$4 sm:$0xff]  }
 0x109   : > { %6790 = vmatpush1.bf16.msra.mxu0 %v10118_v50  ;;  %5647 = vmatprep.subr.bf16.mxu1 %v10123_v51  ;;  %v315_v49 = vld [vmem:[%s11148_s16 + $0x208] sm:$0xff] }
 0x10a   : > { %6791 = vmatprep.subr.bf16.mxu0 %v10126_v52  ;;  %v331_v50 = vld [vmem:[%s11148_s16 + $0x288] sm:$0xff] }
 0x10b   : > { %v323_v51 = vld [vmem:[%s11148_s16 + $0x248] sm:$0xff]  ;;  %v8414_v5 = vcombine.low %v315_v49, %v331_v50 }
 0x10c   : > { %5648 = vmatpush1.bf16.msra.mxu1 %v10121_v57  ;;  %v339_v52 = vld [vmem:[%s11148_s16 + $0x2c8] sm:$0xff]  ;;  %v8415_v57 = vcombine.high %v315_v49, %v331_v50  ;;  %v10193_v49 = vld [vmem:[%s11090_s12 + $0x290] ss:$8 sps:$4 sm:$0xff]  }
 0x10d   : > { %6792 = vmatpush1.bf16.msra.mxu0 %v10124_v58  ;;  %5649 = vmatprep.subr.bf16.mxu1 %v10129_v59  ;;  %v8431_v58 = vcombine.high %v323_v51, %v339_v52  ;;  %v10159_v59 = vld [vmem:[%s11090_s12 + $0x234] ss:$8 sps:$4 sm:$0xff]   ;;  %v8430_v6 = vcombine.low %v323_v51, %v339_v52  ;;  %v10189_v35 = vld [vmem:[%s11090_s12 + $0x284] ss:$8 sps:$4 sm:$0xff]   ;;  %v10196_v50 = vld [vmem:[%s11090_s12 + $0xa90] ss:$8 sps:$4 sm:$0xff]  }
 0x10e   : > { %6793 = vmatprep.subr.bf16.mxu0 %v10132_v60  ;;  %5581 = vmatmul.mubr.bf16.gmra.mrb[28].mxu1 %v8572_v61  ;;  %v10162_v60 = vld [vmem:[%s11090_s12 + $0xa34] ss:$8 sps:$4 sm:$0xff]   ;;  %v10157_v61 = vld [vmem:[%s11090_s12 + $0x230] ss:$8 sps:$4 sm:$0xff]   ;;  %v10201_v51 = vld [vmem:[%s11090_s12 + $0x2a4] ss:$8 sps:$4 sm:$0xff]  }
 0x10f   : > { %6725 = vmatmul.mubr.bf16.gmra.mrb[28].mxu0 %v8588_v62  ;;  %5590 = vmatprep.mubr.bf16.mxu1 %v8605_v63  ;;  %v10160_v62 = vld [vmem:[%s11090_s12 + $0xa30] ss:$8 sps:$4 sm:$0xff]   ;;  %v10165_v63 = vld [vmem:[%s11090_s12 + $0x244] ss:$8 sps:$4 sm:$0xff]  }
 0x110   : > { %6734 = vmatprep.mubr.bf16.mxu0 %v8621_v0  ;;  %5650 = vmatpush1.bf16.msra.mxu1 %v10127_v1  ;;  %v10168_v0 = vld [vmem:[%s11090_s12 + $0xa44] ss:$8 sps:$4 sm:$0xff]  }
 0x111   : > { %6794 = vmatpush1.bf16.msra.mxu0 %v10130_v2  ;;  %5651 = vmatprep.subr.bf16.mxu1 %v10135_v3  ;;  %v347_v1 = vld [vmem:[%s11148_s16 + $0x308] sm:$0xff] }
 0x112   : > { %6795 = vmatprep.subr.bf16.mxu0 %v10138_v4  ;;  %v363_v2 = vld [vmem:[%s11148_s16 + $0x388] sm:$0xff] }
 0x113   : > { %v355_v3 = vld [vmem:[%s11148_s16 + $0x348] sm:$0xff]  ;;  %v8447_v8 = vcombine.high %v347_v1, %v363_v2 }
 0x114   : > { %5652 = vmatpush1.bf16.msra.mxu1 %v10133_v9  ;;  %v371_v4 = vld [vmem:[%s11148_s16 + $0x3c8] sm:$0xff] }
 0x115   : > { %6796 = vmatpush1.bf16.msra.mxu0 %v10136_v10  ;;  %5764 = vmatprep.subr.bf16.mxu1 %v10141_v11  ;;  %v10166_v9 = vld [vmem:[%s11090_s12 + $0xa40] ss:$8 sps:$4 sm:$0xff]   ;;  %v8463_v10 = vcombine.high %v355_v3, %v371_v4  ;;  %v10169_v11 = vld [vmem:[%s11090_s12 + $0x250] ss:$8 sps:$4 sm:$0xff]   ;;  %v10204_v52 = vld [vmem:[%s11090_s12 + $0xaa4] ss:$8 sps:$4 sm:$0xff]  }
 0x116   : > { %6908 = vmatprep.subr.bf16.mxu0 %v10144_v12  ;;  %5591 = vmatmul.mubr.bf16.gmra.mrb[32].mxu1 %v8604_v13  ;;  %v10171_v12 = vld [vmem:[%s11090_s12 + $0x254] ss:$8 sps:$4 sm:$0xff]  }
 0x117   : > { %6735 = vmatmul.mubr.bf16.gmra.mrb[32].mxu0 %v8620_v14  ;;  %5600 = vmatprep.mubr.bf16.mxu1 %v8637_v15  ;;  %v10174_v13 = vld [vmem:[%s11090_s12 + $0xa54] ss:$8 sps:$4 sm:$0xff]   ;;  %v10172_v14 = vld [vmem:[%s11090_s12 + $0xa50] ss:$8 sps:$4 sm:$0xff]   ;;  %v379_v15 = vld [vmem:[%s11148_s16 + $0x408] sm:$0xff] }
 0x118   : > { %6744 = vmatprep.mubr.bf16.mxu0 %v8653_v16  ;;  %v395_v16 = vld [vmem:[%s11148_s16 + $0x488] sm:$0xff] }
 0x11e   : > { %5601 = vmatmul.mubr.bf16.gmra.mrb[36].mxu1 %v8636_v21  ;;  %v8446_v21 = vcombine.low %v347_v1, %v363_v2  ;;  %v10205_v1 = vld [vmem:[%s11090_s12 + $0x2b0] ss:$8 sps:$4 sm:$0xff]  }
 0x11f   : > { %6745 = vmatmul.mubr.bf16.gmra.mrb[36].mxu0 %v8652_v22  ;;  %5610 = vmatprep.mubr.bf16.mxu1 %v8669_v23  ;;  %v8462_v22 = vcombine.low %v355_v3, %v371_v4  ;;  %v8479_v23 = vcombine.high %v379_v15, %v395_v16  ;;  %v10208_v2 = vld [vmem:[%s11090_s12 + $0xab0] ss:$8 sps:$4 sm:$0xff]   ;;  %v10213_v3 = vld [vmem:[%s11090_s12 + $0x2c4] ss:$8 sps:$4 sm:$0xff]  }
 0x120   : > { %6754 = vmatprep.mubr.bf16.mxu0 %v8685_v24  ;;  %v8495_v24 = vcombine.high %v387_v17, %v403_v18  ;;  %v10216_v4 = vld [vmem:[%s11090_s12 + $0xac4] ss:$8 sps:$4 sm:$0xff]   ;;  %v10217_v17 = vld [vmem:[%s11090_s12 + $0x2d0] ss:$8 sps:$4 sm:$0xff]  }
 0x121   : > { %v10220_v18 = vld [vmem:[%s11090_s12 + $0xad0] ss:$8 sps:$4 sm:$0xff]  }
 0x126   : > { %5611 = vmatmul.mubr.bf16.gmra.mrb[40].mxu1 %v8668_v29  ;;  %v411_v29 = vld [vmem:[%s11148_s16 + $0x508] sm:$0xff] }
 0x127   : > { %6755 = vmatmul.mubr.bf16.gmra.mrb[40].mxu0 %v8684_v30  ;;  %5653 = vmatprep.mubr.bf16.mxu1 %v8351_v31  ;;  %v427_v30 = vld [vmem:[%s11148_s16 + $0x588] sm:$0xff]  ;;  %v10181_v31 = vld [vmem:[%s11090_s12 + $0x270] ss:$8 sps:$4 sm:$0xff]  }
 0x128   : > { %6797 = vmatprep.mubr.bf16.mxu0 %v8367_v32  ;;  %v419_v32 = vld [vmem:[%s11148_s16 + $0x548] sm:$0xff]  ;;  %v8511_v39 = vcombine.high %v411_v29, %v427_v30 }
 0x12e   : > { %5654 = vmatmul.mubr.bf16.vlgmr.msra.gmra.mrb[0].mxu1 %v8350_v36  ;;  %v10192_v36 = vld [vmem:[%s11090_s12 + $0xa84] ss:$8 sps:$4 sm:$0xff]  }
 0x12f   : > { %6798 = vmatmul.mubr.bf16.vlgmr.msra.gmra.mrb[0].mxu0 %v8366_v37  ;;  %5765 = vmatpush1.bf16.msra.mxu1 %v10139_v33  ;;  %v435_v33 = vld [vmem:[%s11148_s16 + $0x5c8] sm:$0xff]  ;;  %v8478_v37 = vcombine.low %v379_v15, %v395_v16 }
 0x130   : > { %6909 = vmatpush1.bf16.msra.mxu0 %v10142_v40  ;;  %5766 = vmatprep.subr.bf16.mxu1 %v10147_v41  ;;  %v8527_v40 = vcombine.high %v419_v32, %v435_v33  ;;  %v10187_v41 = vld [vmem:[%s11090_s12 + $0x280] ss:$8 sps:$4 sm:$0xff]  }
 0x131   : > { %6910 = vmatprep.subr.bf16.mxu0 %v10150_v42  ;;  %5663 = vmatprep.mubr.bf16.mxu1 %v8383_v43  ;;  %v10190_v42 = vld [vmem:[%s11090_s12 + $0xa80] ss:$8 sps:$4 sm:$0xff]   ;;  %v10195_v43 = vld [vmem:[%s11090_s12 + $0x294] ss:$8 sps:$4 sm:$0xff]  }
 0x132   : > { %6807 = vmatprep.mubr.bf16.mxu0 %v8399_v44  ;;  %v10198_v44 = vld [vmem:[%s11090_s12 + $0xa94] ss:$8 sps:$4 sm:$0xff]   ;;  %v515_v15 = vld [vmem:[%s11148_s16 + $0x848] sm:$0xff] }
 0x133   : > { %5767 = vmatpush1.bf16.msra.mxu1 %v10145_v45  ;;  %v443_v45 = vld [vmem:[%s11148_s16 + $0x608] sm:$0xff] }
 0x134   : > { %6911 = vmatpush1.bf16.msra.mxu0 %v10148_v46  ;;  %5768 = vmatprep.subr.bf16.mxu1 %v10153_v47  ;;  %v459_v46 = vld [vmem:[%s11148_s16 + $0x688] sm:$0xff] }
 0x135   : > { %6912 = vmatprep.subr.bf16.mxu0 %v10156_v48  ;;  %v451_v47 = vld [vmem:[%s11148_s16 + $0x648] sm:$0xff] }
 0x136   : > { %5664 = vmatmul.mubr.bf16.gmra.mrb[4].mxu1 %v8382_v53  ;;  %v467_v48 = vld [vmem:[%s11148_s16 + $0x6c8] sm:$0xff]  ;;  %v8510_v53 = vcombine.low %v411_v29, %v427_v30 }
 0x137   : > { %6808 = vmatmul.mubr.bf16.gmra.mrb[4].mxu0 %v8398_v54  ;;  %5769 = vmatpush1.bf16.msra.mxu1 %v10151_v55  ;;  %v8526_v54 = vcombine.low %v419_v32, %v435_v33  ;;  %v8543_v55 = vcombine.high %v443_v45, %v459_v46  ;;  %v531_v16 = vld [vmem:[%s11148_s16 + $0x8c8] sm:$0xff]  ;;  %v10229_v33 = vld [vmem:[%s11090_s12 + $0x2f0] ss:$8 sps:$4 sm:$0xff]  }
 0x138   : > { %6913 = vmatpush1.bf16.msra.mxu0 %v10154_v56  ;;  %5673 = vmatprep.mubr.bf16.mxu1 %v8415_v57  ;;  %v8559_v56 = vcombine.high %v451_v47, %v467_v48  ;;  %v10199_v57 = vld [vmem:[%s11090_s12 + $0x2a0] ss:$8 sps:$4 sm:$0xff]  }
 0x139   : > { %6817 = vmatprep.mubr.bf16.mxu0 %v8431_v58  ;;  %5770 = vmatprep.subr.bf16.mxu1 %v10159_v59  ;;  %v10202_v58 = vld [vmem:[%s11090_s12 + $0xaa0] ss:$8 sps:$4 sm:$0xff]   ;;  %v10207_v59 = vld [vmem:[%s11090_s12 + $0x2b4] ss:$8 sps:$4 sm:$0xff]  }
 0x13a   : > { %6914 = vmatprep.subr.bf16.mxu0 %v10162_v60  ;;  %v10210_v60 = vld [vmem:[%s11090_s12 + $0xab4] ss:$8 sps:$4 sm:$0xff]   ;;  %v539_v29 = vld [vmem:[%s11148_s16 + $0x908] sm:$0xff] }
 0x13b   : > { %5771 = vmatpush1.bf16.msra.mxu1 %v10157_v61  ;;  %v475_v61 = vld [vmem:[%s11148_s16 + $0x708] sm:$0xff] }
 0x13c   : > { %6915 = vmatpush1.bf16.msra.mxu0 %v10160_v62  ;;  %5772 = vmatprep.subr.bf16.mxu1 %v10165_v63  ;;  %v491_v62 = vld [vmem:[%s11148_s16 + $0x788] sm:$0xff] }
 0x13d   : > { %6916 = vmatprep.subr.bf16.mxu0 %v10168_v0  ;;  %v483_v63 = vld [vmem:[%s11148_s16 + $0x748] sm:$0xff] }
 0x13e   : > { %5674 = vmatmul.mubr.bf16.gmra.mrb[8].mxu1 %v8414_v5  ;;  %v499_v0 = vld [vmem:[%s11148_s16 + $0x7c8] sm:$0xff]  ;;  %v8542_v5 = vcombine.low %v443_v45, %v459_v46 }
 0x13f   : > { %6818 = vmatmul.mubr.bf16.gmra.mrb[8].mxu0 %v8430_v6  ;;  %5683 = vmatprep.mubr.bf16.mxu1 %v8447_v8  ;;  %v8558_v6 = vcombine.low %v451_v47, %v467_v48  ;;  %v8591_v8 = vcombine.high %v483_v63, %v499_v0  ;;  %v555_v30 = vld [vmem:[%s11148_s16 + $0x988] sm:$0xff] }
 0x140   : > { %5773 = vmatpush1.bf16.msra.mxu1 %v10163_v7  ;;  %6827 = vmatprep.mubr.bf16.mxu0 %v8463_v10  ;;  %v8575_v7 = vcombine.high %v475_v61, %v491_v62  ;;  %v10214_v10 = vld [vmem:[%s11090_s12 + $0xac0] ss:$8 sps:$4 sm:$0xff]   ;;  %v8638_v45 = vcombine.low %v539_v29, %v555_v30 }
 0x141   : > { %6917 = vmatpush1.bf16.msra.mxu0 %v10166_v9  ;;  %5774 = vmatprep.subr.bf16.mxu1 %v10171_v12  ;;  %v10211_v9 = vld [vmem:[%s11090_s12 + $0x2c0] ss:$8 sps:$4 sm:$0xff]   ;;  %v10222_v12 = vld [vmem:[%s11090_s12 + $0xad4] ss:$8 sps:$4 sm:$0xff]  }
 0x142   : > { %6918 = vmatprep.subr.bf16.mxu0 %v10174_v13  ;;  %v507_v13 = vld [vmem:[%s11148_s16 + $0x808] sm:$0xff] }
 0x143   : > { %v563_v32 = vld [vmem:[%s11148_s16 + $0x9c8] sm:$0xff] }
 0x144   : > { %5775 = vmatpush1.bf16.msra.mxu1 %v10169_v11  ;;  %v10219_v11 = vld [vmem:[%s11090_s12 + $0x2d4] ss:$8 sps:$4 sm:$0xff]  }
 0x145   : > { %6919 = vmatpush1.bf16.msra.mxu0 %v10172_v14  ;;  %5776 = vmatprep.subr.bf16.mxu1 %v10177_v19  ;;  %v523_v14 = vld [vmem:[%s11148_s16 + $0x888] sm:$0xff] }
 0x146   : > { %6920 = vmatprep.subr.bf16.mxu0 %v10180_v20  ;;  %5684 = vmatmul.mubr.bf16.gmra.mrb[12].mxu1 %v8446_v21  ;;  %v10225_v19 = vld [vmem:[%s11090_s12 + $0x2e4] ss:$8 sps:$4 sm:$0xff]   ;;  %v8574_v21 = vcombine.low %v475_v61, %v491_v62  ;;  %v292_v61 = vld [vmem:[%s11148_s16 + $0x150] sm:$0xff] }
 0x147   : > { %6828 = vmatmul.mubr.bf16.gmra.mrb[12].mxu0 %v8462_v22  ;;  %5693 = vmatprep.mubr.bf16.mxu1 %v8479_v23  ;;  %v10228_v20 = vld [vmem:[%s11090_s12 + $0xae4] ss:$8 sps:$4 sm:$0xff]   ;;  %v8590_v22 = vcombine.low %v483_v63, %v499_v0  ;;  %v8607_v23 = vcombine.high %v507_v13, %v523_v14  ;;  %v308_v62 = vld [vmem:[%s11148_s16 + $0x1d0] sm:$0xff]  ;;  %v10235_v63 = vld [vmem:[%s11090_s12 + $0x300] ss:$8 sps:$4 sm:$0xff]  }
 0x148   : > { %6837 = vmatprep.mubr.bf16.mxu0 %v8495_v24  ;;  %5777 = vmatpush1.bf16.msra.mxu1 %v10175_v25  ;;  %v8623_v24 = vcombine.high %v515_v15, %v531_v16  ;;  %v10223_v25 = vld [vmem:[%s11090_s12 + $0x2e0] ss:$8 sps:$4 sm:$0xff]  }
 0x149   : > { %6921 = vmatpush1.bf16.msra.mxu0 %v10178_v26  ;;  %5778 = vmatprep.subr.bf16.mxu1 %v10183_v27  ;;  %v10226_v26 = vld [vmem:[%s11090_s12 + $0xae0] ss:$8 sps:$4 sm:$0xff]   ;;  %v10231_v27 = vld [vmem:[%s11090_s12 + $0x2f4] ss:$8 sps:$4 sm:$0xff]  }
 0x14a   : > { %6922 = vmatprep.subr.bf16.mxu0 %v10186_v28  ;;  %v10234_v28 = vld [vmem:[%s11090_s12 + $0xaf4] ss:$8 sps:$4 sm:$0xff]   ;;  %v10238_v0 = vld [vmem:[%s11090_s12 + $0xb00] ss:$8 sps:$4 sm:$0xff]  }
 0x14c   : > { %5779 = vmatpush1.bf16.msra.mxu1 %v10181_v31  ;;  %v547_v31 = vld [vmem:[%s11148_s16 + $0x948] sm:$0xff] }
 0x14d   : > { %6923 = vmatpush1.bf16.msra.mxu0 %v10184_v34  ;;  %5780 = vmatprep.subr.bf16.mxu1 %v10189_v35  ;;  %v10232_v34 = vld [vmem:[%s11090_s12 + $0xaf0] ss:$8 sps:$4 sm:$0xff]   ;;  %v10237_v35 = vld [vmem:[%s11090_s12 + $0x304] ss:$8 sps:$4 sm:$0xff]   ;;  %v8654_v46 = vcombine.low %v547_v31, %v563_v32 }
 0x14e   : > { %6924 = vmatprep.subr.bf16.mxu0 %v10192_v36  ;;  %5694 = vmatmul.mubr.bf16.gmra.mrb[16].mxu1 %v8478_v37  ;;  %v10240_v36 = vld [vmem:[%s11090_s12 + $0xb04] ss:$8 sps:$4 sm:$0xff]   ;;  %v8606_v37 = vcombine.low %v507_v13, %v523_v14  ;;  %v8400_v14 = vcombine.low %v292_v61, %v308_v62 }
 0x14f   : > { %6838 = vmatmul.mubr.bf16.gmra.mrb[16].mxu0 %v8494_v38  ;;  %5703 = vmatprep.mubr.bf16.mxu1 %v8511_v39  ;;  %v8622_v38 = vcombine.low %v515_v15, %v531_v16  ;;  %v8639_v39 = vcombine.high %v539_v29, %v555_v30  ;;  %v10247_v15 = vld [vmem:[%s11090_s12 + $0x320] ss:$8 sps:$4 sm:$0xff]   ;;  %v372_v29 = vld [vmem:[%s11148_s16 + $0x3d0] sm:$0xff] }
 0x150   : > { %6847 = vmatprep.mubr.bf16.mxu0 %v8527_v40  ;;  %5781 = vmatpush1.bf16.msra.mxu1 %v10187_v41  ;;  %v8655_v40 = vcombine.high %v547_v31, %v563_v32  ;;  %v571_v41 = vld [vmem:[%s11148_s16 + $0xa08] sm:$0xff] }
 0x151   : > { %6925 = vmatpush1.bf16.msra.mxu0 %v10190_v42  ;;  %5782 = vmatprep.subr.bf16.mxu1 %v10195_v43  ;;  %v587_v42 = vld [vmem:[%s11148_s16 + $0xa88] sm:$0xff] }
 0x152   : > { %6926 = vmatprep.subr.bf16.mxu0 %v10198_v44  ;;  %v579_v43 = vld [vmem:[%s11148_s16 + $0xa48] sm:$0xff]  ;;  %v8671_v47 = vcombine.high %v571_v41, %v587_v42 }
 0x153   : > { %v595_v44 = vld [vmem:[%s11148_s16 + $0xac8] sm:$0xff] }
 0x154   : > { %5783 = vmatpush1.bf16.msra.mxu1 %v10193_v49  ;;  %v8687_v48 = vcombine.high %v579_v43, %v595_v44  ;;  %v252_v49 = vld [vmem:[%s11148_s16 + $0x10] sm:$0xff]  ;;  %v10250_v16 = vld [vmem:[%s11090_s12 + $0xb20] ss:$8 sps:$4 sm:$0xff]  }
 0x155   : > { %6927 = vmatpush1.bf16.msra.mxu0 %v10196_v50  ;;  %5784 = vmatprep.subr.bf16.mxu1 %v10201_v51  ;;  %v268_v50 = vld [vmem:[%s11148_s16 + $0x90] sm:$0xff]  ;;  %v10262_v32 = vld [vmem:[%s11090_s12 + $0xb40] ss:$8 sps:$4 sm:$0xff]  }
 0x156   : > { %6928 = vmatprep.subr.bf16.mxu0 %v10204_v52  ;;  %5704 = vmatmul.mubr.bf16.gmra.mrb[20].mxu1 %v8510_v53  ;;  %v260_v51 = vld [vmem:[%s11148_s16 + $0x50] sm:$0xff]  ;;  %v8670_v53 = vcombine.low %v571_v41, %v587_v42 }
 0x157   : > { %6848 = vmatmul.mubr.bf16.gmra.mrb[20].mxu0 %v8526_v54  ;;  %5713 = vmatprep.mubr.bf16.mxu1 %v8543_v55  ;;  %v276_v52 = vld [vmem:[%s11148_s16 + $0xd0] sm:$0xff]  ;;  %v8686_v54 = vcombine.low %v579_v43, %v595_v44  ;;  %v8353_v55 = vcombine.high %v252_v49, %v268_v50  ;;  %v10273_v43 = vld [vmem:[%s11090_s12 + $0x364] ss:$8 sps:$4 sm:$0xff]  }
 0x158   : > { %6857 = vmatprep.mubr.bf16.mxu0 %v8559_v56  ;;  %5785 = vmatpush1.bf16.msra.mxu1 %v10199_v57  ;;  %v8369_v56 = vcombine.high %v260_v51, %v276_v52  ;;  %v284_v57 = vld [vmem:[%s11148_s16 + $0x110] sm:$0xff]  ;;  %v10276_v44 = vld [vmem:[%s11090_s12 + $0xb64] ss:$8 sps:$4 sm:$0xff]  }
 0x159   : > { %6929 = vmatpush1.bf16.msra.mxu0 %v10202_v58  ;;  %5786 = vmatprep.subr.bf16.mxu1 %v10207_v59  ;;  %v300_v58 = vld [vmem:[%s11148_s16 + $0x190] sm:$0xff]  ;;  %v8352_v59 = vcombine.low %v252_v49, %v268_v50 }
 0x15a   : > { %6930 = vmatprep.subr.bf16.mxu0 %v10210_v60  ;;  %v8368_v60 = vcombine.low %v260_v51, %v276_v52  ;;  %v8384_v13 = vcombine.low %v284_v57, %v300_v58  ;;  %v388_v41 = vld [vmem:[%s11148_s16 + $0x450] sm:$0xff] }
 0x15b   : > { %v404_v42 = vld [vmem:[%s11148_s16 + $0x4d0] sm:$0xff] }
 0x15c   : > { %5787 = vmatpush1.bf16.msra.mxu1 %v10205_v1  ;;  %v10243_v1 = vld [vmem:[%s11090_s12 + $0x314] ss:$8 sps:$4 sm:$0xff]   ;;  %v8497_v50 = vcombine.high %v388_v41, %v404_v42 }
 0x15d   : > { %6931 = vmatpush1.bf16.msra.mxu0 %v10208_v2  ;;  %5788 = vmatprep.subr.bf16.mxu1 %v10213_v3  ;;  %v10246_v2 = vld [vmem:[%s11090_s12 + $0xb14] ss:$8 sps:$4 sm:$0xff]   ;;  %v10241_v3 = vld [vmem:[%s11090_s12 + $0x310] ss:$8 sps:$4 sm:$0xff]  }
 0x15e   : > { %6932 = vmatprep.subr.bf16.mxu0 %v10216_v4  ;;  %5714 = vmatmul.mubr.bf16.gmra.mrb[24].mxu1 %v8542_v5  ;;  %v8385_v4 = vcombine.high %v284_v57, %v300_v58  ;;  %v8401_v5 = vcombine.high %v292_v61, %v308_v62  ;;  %v10279_v51 = vld [vmem:[%s11090_s12 + $0x374] ss:$8 sps:$4 sm:$0xff]   ;;  %v10280_v58 = vld [vmem:[%s11090_s12 + $0xb70] ss:$8 sps:$4 sm:$0xff]   ;;  %v8496_v62 = vcombine.low %v388_v41, %v404_v42 }
 0x15f   : > { %6858 = vmatmul.mubr.bf16.gmra.mrb[24].mxu0 %v8558_v6  ;;  %5723 = vmatprep.mubr.bf16.mxu1 %v8575_v7  ;;  %v10244_v6 = vld [vmem:[%s11090_s12 + $0xb10] ss:$8 sps:$4 sm:$0xff]   ;;  %v10249_v7 = vld [vmem:[%s11090_s12 + $0x324] ss:$8 sps:$4 sm:$0xff]   ;;  %v10282_v52 = vld [vmem:[%s11090_s12 + $0xb74] ss:$8 sps:$4 sm:$0xff]  }
 0x160   : > { %6867 = vmatprep.mubr.bf16.mxu0 %v8591_v8  ;;  %5789 = vmatpush1.bf16.msra.mxu1 %v10211_v9  ;;  %v10252_v8 = vld [vmem:[%s11090_s12 + $0xb24] ss:$8 sps:$4 sm:$0xff]   ;;  %v316_v9 = vld [vmem:[%s11148_s16 + $0x210] sm:$0xff] }
 0x161   : > { %6933 = vmatpush1.bf16.msra.mxu0 %v10214_v10  ;;  %5790 = vmatprep.subr.bf16.mxu1 %v10219_v11  ;;  %v332_v10 = vld [vmem:[%s11148_s16 + $0x290] sm:$0xff] }
 0x162   : > { %6934 = vmatprep.subr.bf16.mxu0 %v10222_v12  ;;  %v324_v11 = vld [vmem:[%s11148_s16 + $0x250] sm:$0xff]  ;;  %v8416_v30 = vcombine.low %v316_v9, %v332_v10 }
 0x163   : > { %v340_v12 = vld [vmem:[%s11148_s16 + $0x2d0] sm:$0xff] }
 0x164   : > { %5791 = vmatpush1.bf16.msra.mxu1 %v10217_v17  ;;  %v10255_v17 = vld [vmem:[%s11090_s12 + $0x334] ss:$8 sps:$4 sm:$0xff]   ;;  %v8432_v31 = vcombine.low %v324_v11, %v340_v12  ;;  %v10313_v41 = vld [vmem:[%s11090_s12 + $0x3d0] ss:$8 sps:$4 sm:$0xff]  }
 0x165   : > { %6935 = vmatpush1.bf16.msra.mxu0 %v10220_v18  ;;  %5792 = vmatprep.subr.bf16.mxu1 %v10225_v19  ;;  %v10258_v18 = vld [vmem:[%s11090_s12 + $0xb34] ss:$8 sps:$4 sm:$0xff]   ;;  %v8417_v19 = vcombine.high %v316_v9, %v332_v10  ;;  %v10289_v9 = vld [vmem:[%s11090_s12 + $0x390] ss:$8 sps:$4 sm:$0xff]  }
 0x166   : > { %6936 = vmatprep.subr.bf16.mxu0 %v10228_v20  ;;  %5724 = vmatmul.mubr.bf16.gmra.mrb[28].mxu1 %v8574_v21  ;;  %v8433_v20 = vcombine.high %v324_v11, %v340_v12  ;;  %v10253_v21 = vld [vmem:[%s11090_s12 + $0x330] ss:$8 sps:$4 sm:$0xff]   ;;  %v10297_v11 = vld [vmem:[%s11090_s12 + $0x3a4] ss:$8 sps:$4 sm:$0xff]  }
 0x167   : > { %6868 = vmatmul.mubr.bf16.gmra.mrb[28].mxu0 %v8590_v22  ;;  %5733 = vmatprep.mubr.bf16.mxu1 %v8607_v23  ;;  %v10256_v22 = vld [vmem:[%s11090_s12 + $0xb30] ss:$8 sps:$4 sm:$0xff]   ;;  %v10261_v23 = vld [vmem:[%s11090_s12 + $0x344] ss:$8 sps:$4 sm:$0xff]  }
 0x168   : > { %6877 = vmatprep.mubr.bf16.mxu0 %v8623_v24  ;;  %5793 = vmatpush1.bf16.msra.mxu1 %v10223_v25  ;;  %v10264_v24 = vld [vmem:[%s11090_s12 + $0xb44] ss:$8 sps:$4 sm:$0xff]   ;;  %v348_v25 = vld [vmem:[%s11148_s16 + $0x310] sm:$0xff] }
 0x169   : > { %6937 = vmatpush1.bf16.msra.mxu0 %v10226_v26  ;;  %5794 = vmatprep.subr.bf16.mxu1 %v10231_v27  ;;  %v364_v26 = vld [vmem:[%s11148_s16 + $0x390] sm:$0xff]  ;;  %v10259_v27 = vld [vmem:[%s11090_s12 + $0x340] ss:$8 sps:$4 sm:$0xff]   ;;  %v10300_v12 = vld [vmem:[%s11090_s12 + $0xba4] ss:$8 sps:$4 sm:$0xff]  }
 0x16a   : > { %6938 = vmatprep.subr.bf16.mxu0 %v10234_v28  ;;  %v356_v28 = vld [vmem:[%s11148_s16 + $0x350] sm:$0xff] }
 0x16b   : > { %v436_v57 = vld [vmem:[%s11148_s16 + $0x5d0] sm:$0xff] }
 0x16c   : > { %5795 = vmatpush1.bf16.msra.mxu1 %v10229_v33  ;;  %v8449_v33 = vcombine.high %v348_v25, %v364_v26  ;;  %v10292_v10 = vld [vmem:[%s11090_s12 + $0xb90] ss:$8 sps:$4 sm:$0xff]  }
 0x16d   : > { %6939 = vmatpush1.bf16.msra.mxu0 %v10232_v34  ;;  %5907 = vmatprep.subr.bf16.mxu1 %v10237_v35  ;;  %v10267_v34 = vld [vmem:[%s11090_s12 + $0x354] ss:$8 sps:$4 sm:$0xff]   ;;  %v10316_v42 = vld [vmem:[%s11090_s12 + $0xbd0] ss:$8 sps:$4 sm:$0xff]  }
 0x16e   : > { %7051 = vmatprep.subr.bf16.mxu0 %v10240_v36  ;;  %5734 = vmatmul.mubr.bf16.gmra.mrb[32].mxu1 %v8606_v37  ;;  %v10270_v35 = vld [vmem:[%s11090_s12 + $0xb54] ss:$8 sps:$4 sm:$0xff]   ;;  %v8465_v36 = vcombine.high %v356_v28, %v372_v29  ;;  %v10265_v37 = vld [vmem:[%s11090_s12 + $0x350] ss:$8 sps:$4 sm:$0xff]  }
 0x16f   : > { %6878 = vmatmul.mubr.bf16.gmra.mrb[32].mxu0 %v8622_v38  ;;  %5743 = vmatprep.mubr.bf16.mxu1 %v8639_v39  ;;  %v10268_v38 = vld [vmem:[%s11090_s12 + $0xb50] ss:$8 sps:$4 sm:$0xff]  }
 0x170   : > { %6887 = vmatprep.mubr.bf16.mxu0 %v8655_v40  ;;  %v380_v39 = vld [vmem:[%s11148_s16 + $0x410] sm:$0xff] }
 0x171   : > { %v396_v40 = vld [vmem:[%s11148_s16 + $0x490] sm:$0xff] }
 0x172   : > { %v8481_v49 = vcombine.high %v380_v39, %v396_v40  ;;  %v8480_v61 = vcombine.low %v380_v39, %v396_v40  ;;  %v516_v39 = vld [vmem:[%s11148_s16 + $0x850] sm:$0xff] }
 0x173   : > { %v532_v40 = vld [vmem:[%s11148_s16 + $0x8d0] sm:$0xff] }
 0x176   : > { %5744 = vmatmul.mubr.bf16.gmra.mrb[36].mxu1 %v8638_v45  ;;  %v8448_v45 = vcombine.low %v348_v25, %v364_v26  ;;  %v10301_v25 = vld [vmem:[%s11090_s12 + $0x3b0] ss:$8 sps:$4 sm:$0xff]  }
 0x177   : > { %6888 = vmatmul.mubr.bf16.gmra.mrb[36].mxu0 %v8654_v46  ;;  %5753 = vmatprep.mubr.bf16.mxu1 %v8671_v47  ;;  %v8464_v46 = vcombine.low %v356_v28, %v372_v29  ;;  %v10271_v47 = vld [vmem:[%s11090_s12 + $0x360] ss:$8 sps:$4 sm:$0xff]   ;;  %v10304_v26 = vld [vmem:[%s11090_s12 + $0xbb0] ss:$8 sps:$4 sm:$0xff]   ;;  %v10312_v28 = vld [vmem:[%s11090_s12 + $0xbc4] ss:$8 sps:$4 sm:$0xff]  }
 0x178   : > { %6897 = vmatprep.mubr.bf16.mxu0 %v8687_v48  ;;  %v10274_v48 = vld [vmem:[%s11090_s12 + $0xb60] ss:$8 sps:$4 sm:$0xff]  }
 0x17e   : > { %5754 = vmatmul.mubr.bf16.gmra.mrb[40].mxu1 %v8670_v53  ;;  %v412_v53 = vld [vmem:[%s11148_s16 + $0x510] sm:$0xff] }
 0x17f   : > { %6898 = vmatmul.mubr.bf16.gmra.mrb[40].mxu0 %v8686_v54  ;;  %5796 = vmatprep.mubr.bf16.mxu1 %v8353_v55  ;;  %v428_v54 = vld [vmem:[%s11148_s16 + $0x590] sm:$0xff] }
 0x180   : > { %6940 = vmatprep.mubr.bf16.mxu0 %v8369_v56  ;;  %v10277_v55 = vld [vmem:[%s11090_s12 + $0x370] ss:$8 sps:$4 sm:$0xff]  }
 0x181   : > { %v420_v56 = vld [vmem:[%s11148_s16 + $0x550] sm:$0xff] }
 0x186   : > { %5797 = vmatmul.mubr.bf16.vlgmr.msra.gmra.mrb[0].mxu1 %v8352_v59  ;;  %v10285_v59 = vld [vmem:[%s11090_s12 + $0x384] ss:$8 sps:$4 sm:$0xff]  }
 0x187   : > { %6941 = vmatmul.mubr.bf16.vlgmr.msra.gmra.mrb[0].mxu0 %v8368_v60  ;;  %5908 = vmatpush1.bf16.msra.mxu1 %v10235_v63  ;;  %v10288_v60 = vld [vmem:[%s11090_s12 + $0xb84] ss:$8 sps:$4 sm:$0xff]   ;;  %v10283_v63 = vld [vmem:[%s11090_s12 + $0x380] ss:$8 sps:$4 sm:$0xff]  }
 0x188   : > { %7052 = vmatpush1.bf16.msra.mxu0 %v10238_v0  ;;  %5909 = vmatprep.subr.bf16.mxu1 %v10243_v1  ;;  %v10286_v0 = vld [vmem:[%s11090_s12 + $0xb80] ss:$8 sps:$4 sm:$0xff]   ;;  %v8513_v1 = vcombine.high %v412_v53, %v428_v54 }
 0x189   : > { %7053 = vmatprep.subr.bf16.mxu0 %v10246_v2  ;;  %5806 = vmatprep.mubr.bf16.mxu1 %v8385_v4  ;;  %v8529_v2 = vcombine.high %v420_v56, %v436_v57  ;;  %v10294_v4 = vld [vmem:[%s11090_s12 + $0xb94] ss:$8 sps:$4 sm:$0xff]  }
 0x18a   : > { %6950 = vmatprep.mubr.bf16.mxu0 %v8401_v5  ;;  %v444_v5 = vld [vmem:[%s11148_s16 + $0x610] sm:$0xff] }
 0x18b   : > { %5910 = vmatpush1.bf16.msra.mxu1 %v10241_v3  ;;  %v10291_v3 = vld [vmem:[%s11090_s12 + $0x394] ss:$8 sps:$4 sm:$0xff]  }
 0x18c   : > { %7054 = vmatpush1.bf16.msra.mxu0 %v10244_v6  ;;  %5911 = vmatprep.subr.bf16.mxu1 %v10249_v7  ;;  %v460_v6 = vld [vmem:[%s11148_s16 + $0x690] sm:$0xff] }
 0x18d   : > { %7055 = vmatprep.subr.bf16.mxu0 %v10252_v8  ;;  %v452_v7 = vld [vmem:[%s11148_s16 + $0x650] sm:$0xff]  ;;  %v8544_v29 = vcombine.low %v444_v5, %v460_v6 }
 0x18e   : > { %5807 = vmatmul.mubr.bf16.gmra.mrb[4].mxu1 %v8384_v13  ;;  %v468_v8 = vld [vmem:[%s11148_s16 + $0x6d0] sm:$0xff]  ;;  %v8512_v13 = vcombine.low %v412_v53, %v428_v54 }
 0x18f   : > { %6951 = vmatmul.mubr.bf16.gmra.mrb[4].mxu0 %v8400_v14  ;;  %5912 = vmatpush1.bf16.msra.mxu1 %v10247_v15  ;;  %v8528_v14 = vcombine.low %v420_v56, %v436_v57  ;;  %v10295_v15 = vld [vmem:[%s11090_s12 + $0x3a0] ss:$8 sps:$4 sm:$0xff]   ;;  %v540_v53 = vld [vmem:[%s11148_s16 + $0x910] sm:$0xff] }
 0x190   : > { %7056 = vmatpush1.bf16.msra.mxu0 %v10250_v16  ;;  %5816 = vmatprep.mubr.bf16.mxu1 %v8417_v19  ;;  %v10298_v16 = vld [vmem:[%s11090_s12 + $0xba0] ss:$8 sps:$4 sm:$0xff]   ;;  %v10303_v19 = vld [vmem:[%s11090_s12 + $0x3b4] ss:$8 sps:$4 sm:$0xff]   ;;  %v10325_v57 = vld [vmem:[%s11090_s12 + $0x3f0] ss:$8 sps:$4 sm:$0xff]  }
 0x191   : > { %6960 = vmatprep.mubr.bf16.mxu0 %v8433_v20  ;;  %5913 = vmatprep.subr.bf16.mxu1 %v10255_v17  ;;  %v8545_v17 = vcombine.high %v444_v5, %v460_v6  ;;  %v10306_v20 = vld [vmem:[%s11090_s12 + $0xbb4] ss:$8 sps:$4 sm:$0xff]  }
 0x192   : > { %7057 = vmatprep.subr.bf16.mxu0 %v10258_v18  ;;  %v8561_v18 = vcombine.high %v452_v7, %v468_v8  ;;  %v556_v54 = vld [vmem:[%s11148_s16 + $0x990] sm:$0xff] }
 0x193   : > { %5914 = vmatpush1.bf16.msra.mxu1 %v10253_v21  ;;  %v476_v21 = vld [vmem:[%s11148_s16 + $0x710] sm:$0xff]  ;;  %v8640_v5 = vcombine.low %v540_v53, %v556_v54 }
 0x194   : > { %7058 = vmatpush1.bf16.msra.mxu0 %v10256_v22  ;;  %5915 = vmatprep.subr.bf16.mxu1 %v10261_v23  ;;  %v492_v22 = vld [vmem:[%s11148_s16 + $0x790] sm:$0xff] }
 0x195   : > { %7059 = vmatprep.subr.bf16.mxu0 %v10264_v24  ;;  %v484_v23 = vld [vmem:[%s11148_s16 + $0x750] sm:$0xff] }
 0x196   : > { %5817 = vmatmul.mubr.bf16.gmra.mrb[8].mxu1 %v8416_v30  ;;  %v500_v24 = vld [vmem:[%s11148_s16 + $0x7d0] sm:$0xff]  ;;  %v8560_v30 = vcombine.low %v452_v7, %v468_v8 }
 0x197   : > { %6961 = vmatmul.mubr.bf16.gmra.mrb[8].mxu0 %v8432_v31  ;;  %5826 = vmatprep.mubr.bf16.mxu1 %v8449_v33  ;;  %v10307_v31 = vld [vmem:[%s11090_s12 + $0x3c0] ss:$8 sps:$4 sm:$0xff]   ;;  %v8577_v33 = vcombine.high %v476_v21, %v492_v22  ;;  %v564_v56 = vld [vmem:[%s11148_s16 + $0x9d0] sm:$0xff] }
 0x198   : > { %5916 = vmatpush1.bf16.msra.mxu1 %v10259_v27  ;;  %6970 = vmatprep.mubr.bf16.mxu0 %v8465_v36  ;;  %v10309_v27 = vld [vmem:[%s11090_s12 + $0x3c4] ss:$8 sps:$4 sm:$0xff]   ;;  %v10318_v36 = vld [vmem:[%s11090_s12 + $0xbd4] ss:$8 sps:$4 sm:$0xff]  }
 0x199   : > { %7060 = vmatpush1.bf16.msra.mxu0 %v10262_v32  ;;  %5917 = vmatprep.subr.bf16.mxu1 %v10267_v34  ;;  %v10310_v32 = vld [vmem:[%s11090_s12 + $0xbc0] ss:$8 sps:$4 sm:$0xff]   ;;  %v8593_v34 = vcombine.high %v484_v23, %v500_v24 }
 0x19a   : > { %7061 = vmatprep.subr.bf16.mxu0 %v10270_v35  ;;  %v10315_v35 = vld [vmem:[%s11090_s12 + $0x3d4] ss:$8 sps:$4 sm:$0xff]  }
 0x19c   : > { %5918 = vmatpush1.bf16.msra.mxu1 %v10265_v37  ;;  %v508_v37 = vld [vmem:[%s11148_s16 + $0x810] sm:$0xff] }
 0x19d   : > { %7062 = vmatpush1.bf16.msra.mxu0 %v10268_v38  ;;  %5919 = vmatprep.subr.bf16.mxu1 %v10273_v43  ;;  %v524_v38 = vld [vmem:[%s11148_s16 + $0x890] sm:$0xff]  ;;  %v10321_v43 = vld [vmem:[%s11090_s12 + $0x3e4] ss:$8 sps:$4 sm:$0xff]  }
 0x19e   : > { %7063 = vmatprep.subr.bf16.mxu0 %v10276_v44  ;;  %5827 = vmatmul.mubr.bf16.gmra.mrb[12].mxu1 %v8448_v45  ;;  %v10324_v44 = vld [vmem:[%s11090_s12 + $0xbe4] ss:$8 sps:$4 sm:$0xff]   ;;  %v8576_v45 = vcombine.low %v476_v21, %v492_v22  ;;  %v293_v21 = vld [vmem:[%s11148_s16 + $0x158] sm:$0xff] }
 0x19f   : > { %6971 = vmatmul.mubr.bf16.gmra.mrb[12].mxu0 %v8464_v46  ;;  %5836 = vmatprep.mubr.bf16.mxu1 %v8481_v49  ;;  %v8592_v46 = vcombine.low %v484_v23, %v500_v24  ;;  %v8609_v49 = vcombine.high %v508_v37, %v524_v38  ;;  %v309_v22 = vld [vmem:[%s11148_s16 + $0x1d8] sm:$0xff] }
 0x1a0   : > { %6980 = vmatprep.mubr.bf16.mxu0 %v8497_v50  ;;  %5920 = vmatpush1.bf16.msra.mxu1 %v10271_v47  ;;  %v10319_v47 = vld [vmem:[%s11090_s12 + $0x3e0] ss:$8 sps:$4 sm:$0xff]   ;;  %v8625_v50 = vcombine.high %v516_v39, %v532_v40 }
 0x1a1   : > { %7064 = vmatpush1.bf16.msra.mxu0 %v10274_v48  ;;  %5921 = vmatprep.subr.bf16.mxu1 %v10279_v51  ;;  %v10322_v48 = vld [vmem:[%s11090_s12 + $0xbe0] ss:$8 sps:$4 sm:$0xff]   ;;  %v10327_v51 = vld [vmem:[%s11090_s12 + $0x3f4] ss:$8 sps:$4 sm:$0xff]  }
 0x1a2   : > { %7065 = vmatprep.subr.bf16.mxu0 %v10282_v52  ;;  %v10330_v52 = vld [vmem:[%s11090_s12 + $0xbf4] ss:$8 sps:$4 sm:$0xff]  }
 0x1a4   : > { %5922 = vmatpush1.bf16.msra.mxu1 %v10277_v55  ;;  %v548_v55 = vld [vmem:[%s11148_s16 + $0x950] sm:$0xff] }
 0x1a5   : > { %7066 = vmatpush1.bf16.msra.mxu0 %v10280_v58  ;;  %5923 = vmatprep.subr.bf16.mxu1 %v10285_v59  ;;  %v10328_v58 = vld [vmem:[%s11090_s12 + $0xbf0] ss:$8 sps:$4 sm:$0xff]   ;;  %v10333_v59 = vld [vmem:[%s11090_s12 + $0x404] ss:$8 sps:$4 sm:$0xff]   ;;  %v8656_v6 = vcombine.low %v548_v55, %v564_v56 }
 0x1a6   : > { %7067 = vmatprep.subr.bf16.mxu0 %v10288_v60  ;;  %5837 = vmatmul.mubr.bf16.gmra.mrb[16].mxu1 %v8480_v61  ;;  %v10336_v60 = vld [vmem:[%s11090_s12 + $0xc04] ss:$8 sps:$4 sm:$0xff]   ;;  %v8608_v61 = vcombine.low %v508_v37, %v524_v38  ;;  %v10343_v37 = vld [vmem:[%s11090_s12 + $0x420] ss:$8 sps:$4 sm:$0xff]  }
 0x1a7   : > { %6981 = vmatmul.mubr.bf16.gmra.mrb[16].mxu0 %v8496_v62  ;;  %5846 = vmatprep.mubr.bf16.mxu1 %v8513_v1  ;;  %v8624_v62 = vcombine.low %v516_v39, %v532_v40  ;;  %v572_v1 = vld [vmem:[%s11148_s16 + $0xa10] sm:$0xff]  ;;  %v10346_v38 = vld [vmem:[%s11090_s12 + $0xc20] ss:$8 sps:$4 sm:$0xff]   ;;  %v8402_v40 = vcombine.low %v293_v21, %v309_v22 }
 0x1a8   : > { %6990 = vmatprep.mubr.bf16.mxu0 %v8529_v2  ;;  %5924 = vmatpush1.bf16.msra.mxu1 %v10283_v63  ;;  %v8641_v63 = vcombine.high %v540_v53, %v556_v54  ;;  %v588_v2 = vld [vmem:[%s11148_s16 + $0xa90] sm:$0xff]  ;;  %v373_v53 = vld [vmem:[%s11148_s16 + $0x3d8] sm:$0xff] }
 0x1a9   : > { %7068 = vmatpush1.bf16.msra.mxu0 %v10286_v0  ;;  %5925 = vmatprep.subr.bf16.mxu1 %v10291_v3  ;;  %v8657_v0 = vcombine.high %v548_v55, %v564_v56  ;;  %v580_v3 = vld [vmem:[%s11148_s16 + $0xa50] sm:$0xff]  ;;  %v8673_v7 = vcombine.high %v572_v1, %v588_v2  ;;  %v10358_v56 = vld [vmem:[%s11090_s12 + $0xc40] ss:$8 sps:$4 sm:$0xff]  }
 0x1aa   : > { %7069 = vmatprep.subr.bf16.mxu0 %v10294_v4  ;;  %v596_v4 = vld [vmem:[%s11148_s16 + $0xad0] sm:$0xff] }
 0x1ab   : > { %v8689_v8 = vcombine.high %v580_v3, %v596_v4 }
 0x1ac   : > { %5926 = vmatpush1.bf16.msra.mxu1 %v10289_v9  ;;  %v253_v9 = vld [vmem:[%s11148_s16 + $0x18] sm:$0xff] }
 0x1ad   : > { %7070 = vmatpush1.bf16.msra.mxu0 %v10292_v10  ;;  %5927 = vmatprep.subr.bf16.mxu1 %v10297_v11  ;;  %v269_v10 = vld [vmem:[%s11148_s16 + $0x98] sm:$0xff] }
 0x1ae   : > { %7071 = vmatprep.subr.bf16.mxu0 %v10300_v12  ;;  %5847 = vmatmul.mubr.bf16.gmra.mrb[20].mxu1 %v8512_v13  ;;  %v261_v11 = vld [vmem:[%s11148_s16 + $0x58] sm:$0xff]  ;;  %v8672_v13 = vcombine.low %v572_v1, %v588_v2  ;;  %v8354_v23 = vcombine.low %v253_v9, %v269_v10 }
 0x1af   : > { %6991 = vmatmul.mubr.bf16.gmra.mrb[20].mxu0 %v8528_v14  ;;  %5856 = vmatprep.mubr.bf16.mxu1 %v8545_v17  ;;  %v277_v12 = vld [vmem:[%s11148_s16 + $0xd8] sm:$0xff]  ;;  %v8688_v14 = vcombine.low %v580_v3, %v596_v4  ;;  %v10369_v3 = vld [vmem:[%s11090_s12 + $0x464] ss:$8 sps:$4 sm:$0xff]  }
 0x1b0   : > { %7000 = vmatprep.mubr.bf16.mxu0 %v8561_v18  ;;  %5928 = vmatpush1.bf16.msra.mxu1 %v10295_v15  ;;  %v8355_v15 = vcombine.high %v253_v9, %v269_v10  ;;  %v285_v17 = vld [vmem:[%s11148_s16 + $0x118] sm:$0xff]  ;;  %v10331_v18 = vld [vmem:[%s11090_s12 + $0x400] ss:$8 sps:$4 sm:$0xff]   ;;  %v8370_v24 = vcombine.low %v261_v11, %v277_v12  ;;  %v10372_v4 = vld [vmem:[%s11090_s12 + $0xc64] ss:$8 sps:$4 sm:$0xff]  }
 0x1b1   : > { %7072 = vmatpush1.bf16.msra.mxu0 %v10298_v16  ;;  %5929 = vmatprep.subr.bf16.mxu1 %v10303_v19  ;;  %v8371_v16 = vcombine.high %v261_v11, %v277_v12  ;;  %v10334_v19 = vld [vmem:[%s11090_s12 + $0xc00] ss:$8 sps:$4 sm:$0xff]   ;;  %v389_v1 = vld [vmem:[%s11148_s16 + $0x458] sm:$0xff] }
 0x1b2   : > { %7073 = vmatprep.subr.bf16.mxu0 %v10306_v20  ;;  %v301_v20 = vld [vmem:[%s11148_s16 + $0x198] sm:$0xff] }
 0x1b3   : > { %v8386_v39 = vcombine.low %v285_v17, %v301_v20  ;;  %v405_v2 = vld [vmem:[%s11148_s16 + $0x4d8] sm:$0xff] }
 0x1b4   : > { %5930 = vmatpush1.bf16.msra.mxu1 %v10301_v25  ;;  %v10339_v25 = vld [vmem:[%s11090_s12 + $0x414] ss:$8 sps:$4 sm:$0xff]   ;;  %v8499_v10 = vcombine.high %v389_v1, %v405_v2 }
 0x1b5   : > { %7074 = vmatpush1.bf16.msra.mxu0 %v10304_v26  ;;  %5931 = vmatprep.subr.bf16.mxu1 %v10309_v27  ;;  %v10342_v26 = vld [vmem:[%s11090_s12 + $0xc14] ss:$8 sps:$4 sm:$0xff]   ;;  %v8387_v27 = vcombine.high %v285_v17, %v301_v20  ;;  %v10384_v20 = vld [vmem:[%s11090_s12 + $0xc84] ss:$8 sps:$4 sm:$0xff]  }
 0x1b6   : > { %7075 = vmatprep.subr.bf16.mxu0 %v10312_v28  ;;  %5857 = vmatmul.mubr.bf16.gmra.mrb[24].mxu1 %v8544_v29  ;;  %v8403_v28 = vcombine.high %v293_v21, %v309_v22  ;;  %v10337_v29 = vld [vmem:[%s11090_s12 + $0x410] ss:$8 sps:$4 sm:$0xff]   ;;  %v10375_v11 = vld [vmem:[%s11090_s12 + $0x474] ss:$8 sps:$4 sm:$0xff]   ;;  %v8498_v22 = vcombine.low %v389_v1, %v405_v2 }
 0x1b7   : > { %7001 = vmatmul.mubr.bf16.gmra.mrb[24].mxu0 %v8560_v30  ;;  %5866 = vmatprep.mubr.bf16.mxu1 %v8577_v33  ;;  %v10340_v30 = vld [vmem:[%s11090_s12 + $0xc10] ss:$8 sps:$4 sm:$0xff]   ;;  %v10378_v12 = vld [vmem:[%s11090_s12 + $0xc74] ss:$8 sps:$4 sm:$0xff]  }
 0x1b8   : > { %7010 = vmatprep.mubr.bf16.mxu0 %v8593_v34  ;;  %5932 = vmatpush1.bf16.msra.mxu1 %v10307_v31  ;;  %v10345_v31 = vld [vmem:[%s11090_s12 + $0x424] ss:$8 sps:$4 sm:$0xff]   ;;  %v317_v33 = vld [vmem:[%s11148_s16 + $0x218] sm:$0xff] }
 0x1b9   : > { %7076 = vmatpush1.bf16.msra.mxu0 %v10310_v32  ;;  %5933 = vmatprep.subr.bf16.mxu1 %v10315_v35  ;;  %v10348_v32 = vld [vmem:[%s11090_s12 + $0xc24] ss:$8 sps:$4 sm:$0xff]   ;;  %v333_v34 = vld [vmem:[%s11148_s16 + $0x298] sm:$0xff] }
 0x1ba   : > { %7077 = vmatprep.subr.bf16.mxu0 %v10318_v36  ;;  %v325_v35 = vld [vmem:[%s11148_s16 + $0x258] sm:$0xff]  ;;  %v8418_v54 = vcombine.low %v317_v33, %v333_v34 }
 0x1bb   : > { %v341_v36 = vld [vmem:[%s11148_s16 + $0x2d8] sm:$0xff] }
 0x1bc   : > { %5934 = vmatpush1.bf16.msra.mxu1 %v10313_v41  ;;  %v10351_v41 = vld [vmem:[%s11090_s12 + $0x434] ss:$8 sps:$4 sm:$0xff]   ;;  %v8434_v55 = vcombine.low %v325_v35, %v341_v36  ;;  %v10409_v1 = vld [vmem:[%s11090_s12 + $0x4d0] ss:$8 sps:$4 sm:$0xff]  }
 0x1bd   : > { %7078 = vmatpush1.bf16.msra.mxu0 %v10316_v42  ;;  %5935 = vmatprep.subr.bf16.mxu1 %v10321_v43  ;;  %v10354_v42 = vld [vmem:[%s11090_s12 + $0xc34] ss:$8 sps:$4 sm:$0xff]   ;;  %v8419_v43 = vcombine.high %v317_v33, %v333_v34  ;;  %v10385_v33 = vld [vmem:[%s11090_s12 + $0x490] ss:$8 sps:$4 sm:$0xff]  }
 0x1be   : > { %7079 = vmatprep.subr.bf16.mxu0 %v10324_v44  ;;  %5867 = vmatmul.mubr.bf16.gmra.mrb[28].mxu1 %v8576_v45  ;;  %v8435_v44 = vcombine.high %v325_v35, %v341_v36  ;;  %v10349_v45 = vld [vmem:[%s11090_s12 + $0x430] ss:$8 sps:$4 sm:$0xff]   ;;  %v10393_v35 = vld [vmem:[%s11090_s12 + $0x4a4] ss:$8 sps:$4 sm:$0xff]  }
 0x1bf   : > { %7011 = vmatmul.mubr.bf16.gmra.mrb[28].mxu0 %v8592_v46  ;;  %5876 = vmatprep.mubr.bf16.mxu1 %v8609_v49  ;;  %v10352_v46 = vld [vmem:[%s11090_s12 + $0xc30] ss:$8 sps:$4 sm:$0xff]   ;;  %v10396_v36 = vld [vmem:[%s11090_s12 + $0xca4] ss:$8 sps:$4 sm:$0xff]  }
 0x1c0   : > { %7020 = vmatprep.mubr.bf16.mxu0 %v8625_v50  ;;  %5936 = vmatpush1.bf16.msra.mxu1 %v10319_v47  ;;  %v10357_v47 = vld [vmem:[%s11090_s12 + $0x444] ss:$8 sps:$4 sm:$0xff]   ;;  %v349_v49 = vld [vmem:[%s11148_s16 + $0x318] sm:$0xff] }
 0x1c1   : > { %7080 = vmatpush1.bf16.msra.mxu0 %v10322_v48  ;;  %5937 = vmatprep.subr.bf16.mxu1 %v10327_v51  ;;  %v10360_v48 = vld [vmem:[%s11090_s12 + $0xc44] ss:$8 sps:$4 sm:$0xff]   ;;  %v365_v50 = vld [vmem:[%s11148_s16 + $0x398] sm:$0xff]  ;;  %v10355_v51 = vld [vmem:[%s11090_s12 + $0x440] ss:$8 sps:$4 sm:$0xff]  }
 0x1c2   : > { %7081 = vmatprep.subr.bf16.mxu0 %v10330_v52  ;;  %v357_v52 = vld [vmem:[%s11148_s16 + $0x358] sm:$0xff] }
 0x1c3   : > { %v437_v17 = vld [vmem:[%s11148_s16 + $0x5d8] sm:$0xff] }
 0x1c4   : > { %5938 = vmatpush1.bf16.msra.mxu1 %v10325_v57  ;;  %v8451_v57 = vcombine.high %v349_v49, %v365_v50  ;;  %v10388_v34 = vld [vmem:[%s11090_s12 + $0xc90] ss:$8 sps:$4 sm:$0xff]  }
 0x1c5   : > { %7082 = vmatpush1.bf16.msra.mxu0 %v10328_v58  ;;  %6050 = vmatprep.subr.bf16.mxu1 %v10333_v59  ;;  %v10363_v58 = vld [vmem:[%s11090_s12 + $0x454] ss:$8 sps:$4 sm:$0xff]   ;;  %v10412_v2 = vld [vmem:[%s11090_s12 + $0xcd0] ss:$8 sps:$4 sm:$0xff]  }
 0x1c6   : > { %7194 = vmatprep.subr.bf16.mxu0 %v10336_v60  ;;  %5877 = vmatmul.mubr.bf16.gmra.mrb[32].mxu1 %v8608_v61  ;;  %v10366_v59 = vld [vmem:[%s11090_s12 + $0xc54] ss:$8 sps:$4 sm:$0xff]   ;;  %v8467_v60 = vcombine.high %v357_v52, %v373_v53  ;;  %v10361_v61 = vld [vmem:[%s11090_s12 + $0x450] ss:$8 sps:$4 sm:$0xff]  }
 0x1c7   : > { %7021 = vmatmul.mubr.bf16.gmra.mrb[32].mxu0 %v8624_v62  ;;  %5886 = vmatprep.mubr.bf16.mxu1 %v8641_v63  ;;  %v10364_v62 = vld [vmem:[%s11090_s12 + $0xc50] ss:$8 sps:$4 sm:$0xff]  }
 0x1c8   : > { %7030 = vmatprep.mubr.bf16.mxu0 %v8657_v0  ;;  %v381_v63 = vld [vmem:[%s11148_s16 + $0x418] sm:$0xff] }
 0x1c9   : > { %v397_v0 = vld [vmem:[%s11148_s16 + $0x498] sm:$0xff] }
 0x1ca   : > { %v8483_v9 = vcombine.high %v381_v63, %v397_v0  ;;  %v8482_v21 = vcombine.low %v381_v63, %v397_v0  ;;  %v517_v63 = vld [vmem:[%s11148_s16 + $0x858] sm:$0xff] }
 0x1cb   : > { %v533_v0 = vld [vmem:[%s11148_s16 + $0x8d8] sm:$0xff] }
 0x1ce   : > { %5887 = vmatmul.mubr.bf16.gmra.mrb[36].mxu1 %v8640_v5  ;;  %v8450_v5 = vcombine.low %v349_v49, %v365_v50  ;;  %v10397_v49 = vld [vmem:[%s11090_s12 + $0x4b0] ss:$8 sps:$4 sm:$0xff]  }
 0x1cf   : > { %7031 = vmatmul.mubr.bf16.gmra.mrb[36].mxu0 %v8656_v6  ;;  %5896 = vmatprep.mubr.bf16.mxu1 %v8673_v7  ;;  %v8466_v6 = vcombine.low %v357_v52, %v373_v53  ;;  %v10367_v7 = vld [vmem:[%s11090_s12 + $0x460] ss:$8 sps:$4 sm:$0xff]   ;;  %v10400_v50 = vld [vmem:[%s11090_s12 + $0xcb0] ss:$8 sps:$4 sm:$0xff]   ;;  %v10408_v52 = vld [vmem:[%s11090_s12 + $0xcc4] ss:$8 sps:$4 sm:$0xff]  }
 0x1d0   : > { %7040 = vmatprep.mubr.bf16.mxu0 %v8689_v8  ;;  %v10370_v8 = vld [vmem:[%s11090_s12 + $0xc60] ss:$8 sps:$4 sm:$0xff]  }
 0x1d6   : > { %5897 = vmatmul.mubr.bf16.gmra.mrb[40].mxu1 %v8672_v13  ;;  %v413_v13 = vld [vmem:[%s11148_s16 + $0x518] sm:$0xff] }
 0x1d7   : > { %7041 = vmatmul.mubr.bf16.gmra.mrb[40].mxu0 %v8688_v14  ;;  %5939 = vmatprep.mubr.bf16.mxu1 %v8355_v15  ;;  %v429_v14 = vld [vmem:[%s11148_s16 + $0x598] sm:$0xff] }
 0x1d8   : > { %7083 = vmatprep.mubr.bf16.mxu0 %v8371_v16  ;;  %v10373_v15 = vld [vmem:[%s11090_s12 + $0x470] ss:$8 sps:$4 sm:$0xff]  }
 0x1d9   : > { %v421_v16 = vld [vmem:[%s11148_s16 + $0x558] sm:$0xff] }
 0x1de   : > { %5940 = vmatmul.mubr.bf16.vlgmr.msra.gmra.mrb[0].mxu1 %v8354_v23  ;;  %v10379_v23 = vld [vmem:[%s11090_s12 + $0x480] ss:$8 sps:$4 sm:$0xff]  }
 0x1df   : > { %7084 = vmatmul.mubr.bf16.vlgmr.msra.gmra.mrb[0].mxu0 %v8370_v24  ;;  %6051 = vmatpush1.bf16.msra.mxu1 %v10331_v18  ;;  %v10376_v18 = vld [vmem:[%s11090_s12 + $0xc70] ss:$8 sps:$4 sm:$0xff]   ;;  %v10382_v24 = vld [vmem:[%s11090_s12 + $0xc80] ss:$8 sps:$4 sm:$0xff]  }
 0x1e0   : > { %7195 = vmatpush1.bf16.msra.mxu0 %v10334_v19  ;;  %6052 = vmatprep.subr.bf16.mxu1 %v10339_v25  ;;  %v10381_v19 = vld [vmem:[%s11090_s12 + $0x484] ss:$8 sps:$4 sm:$0xff]   ;;  %v8515_v25 = vcombine.high %v413_v13, %v429_v14 }
 0x1e1   : > { %7196 = vmatprep.subr.bf16.mxu0 %v10342_v26  ;;  %5949 = vmatprep.mubr.bf16.mxu1 %v8387_v27  ;;  %v8531_v26 = vcombine.high %v421_v16, %v437_v17  ;;  %v10387_v27 = vld [vmem:[%s11090_s12 + $0x494] ss:$8 sps:$4 sm:$0xff]  }
 0x1e2   : > { %7093 = vmatprep.mubr.bf16.mxu0 %v8403_v28  ;;  %v10390_v28 = vld [vmem:[%s11090_s12 + $0xc94] ss:$8 sps:$4 sm:$0xff]  }
 0x1e3   : > { %6053 = vmatpush1.bf16.msra.mxu1 %v10337_v29  ;;  %v445_v29 = vld [vmem:[%s11148_s16 + $0x618] sm:$0xff] }
 0x1e4   : > { %7197 = vmatpush1.bf16.msra.mxu0 %v10340_v30  ;;  %6054 = vmatprep.subr.bf16.mxu1 %v10345_v31  ;;  %v461_v30 = vld [vmem:[%s11148_s16 + $0x698] sm:$0xff] }
 0x1e5   : > { %7198 = vmatprep.subr.bf16.mxu0 %v10348_v32  ;;  %v453_v31 = vld [vmem:[%s11148_s16 + $0x658] sm:$0xff]  ;;  %v8546_v53 = vcombine.low %v445_v29, %v461_v30 }
 0x1e6   : > { %5950 = vmatmul.mubr.bf16.gmra.mrb[4].mxu1 %v8386_v39  ;;  %v469_v32 = vld [vmem:[%s11148_s16 + $0x6d8] sm:$0xff]  ;;  %v10391_v39 = vld [vmem:[%s11090_s12 + $0x4a0] ss:$8 sps:$4 sm:$0xff]  }
 0x1e7   : > { %7094 = vmatmul.mubr.bf16.gmra.mrb[4].mxu0 %v8402_v40  ;;  %6055 = vmatpush1.bf16.msra.mxu1 %v10343_v37  ;;  %v8514_v37 = vcombine.low %v413_v13, %v429_v14  ;;  %v10394_v40 = vld [vmem:[%s11090_s12 + $0xca0] ss:$8 sps:$4 sm:$0xff]   ;;  %v541_v13 = vld [vmem:[%s11148_s16 + $0x918] sm:$0xff] }
 0x1e8   : > { %7199 = vmatpush1.bf16.msra.mxu0 %v10346_v38  ;;  %5959 = vmatprep.mubr.bf16.mxu1 %v8419_v43  ;;  %v8530_v38 = vcombine.low %v421_v16, %v437_v17  ;;  %v10399_v43 = vld [vmem:[%s11090_s12 + $0x4b4] ss:$8 sps:$4 sm:$0xff]   ;;  %v10421_v17 = vld [vmem:[%s11090_s12 + $0x4f0] ss:$8 sps:$4 sm:$0xff]  }
 0x1e9   : > { %7103 = vmatprep.mubr.bf16.mxu0 %v8435_v44  ;;  %6056 = vmatprep.subr.bf16.mxu1 %v10351_v41  ;;  %v8547_v41 = vcombine.high %v445_v29, %v461_v30  ;;  %v10402_v44 = vld [vmem:[%s11090_s12 + $0xcb4] ss:$8 sps:$4 sm:$0xff]  }
 0x1ea   : > { %7200 = vmatprep.subr.bf16.mxu0 %v10354_v42  ;;  %v8563_v42 = vcombine.high %v453_v31, %v469_v32  ;;  %v557_v14 = vld [vmem:[%s11148_s16 + $0x998] sm:$0xff] }
 0x1eb   : > { %6057 = vmatpush1.bf16.msra.mxu1 %v10349_v45  ;;  %v477_v45 = vld [vmem:[%s11148_s16 + $0x718] sm:$0xff]  ;;  %v8642_v29 = vcombine.low %v541_v13, %v557_v14 }
 0x1ec   : > { %7201 = vmatpush1.bf16.msra.mxu0 %v10352_v46  ;;  %6058 = vmatprep.subr.bf16.mxu1 %v10357_v47  ;;  %v493_v46 = vld [vmem:[%s11148_s16 + $0x798] sm:$0xff] }
 0x1ed   : > { %7202 = vmatprep.subr.bf16.mxu0 %v10360_v48  ;;  %v485_v47 = vld [vmem:[%s11148_s16 + $0x758] sm:$0xff] }
 0x1ee   : > { %5960 = vmatmul.mubr.bf16.gmra.mrb[8].mxu1 %v8418_v54  ;;  %v501_v48 = vld [vmem:[%s11148_s16 + $0x7d8] sm:$0xff]  ;;  %v8562_v54 = vcombine.low %v453_v31, %v469_v32 }
 0x1ef   : > { %7104 = vmatmul.mubr.bf16.gmra.mrb[8].mxu0 %v8434_v55  ;;  %5969 = vmatprep.mubr.bf16.mxu1 %v8451_v57  ;;  %v8579_v55 = vcombine.high %v477_v45, %v493_v46  ;;  %v10403_v57 = vld [vmem:[%s11090_s12 + $0x4c0] ss:$8 sps:$4 sm:$0xff]   ;;  %v565_v16 = vld [vmem:[%s11148_s16 + $0x9d8] sm:$0xff] }
 0x1f0   : > { %6059 = vmatpush1.bf16.msra.mxu1 %v10355_v51  ;;  %7113 = vmatprep.mubr.bf16.mxu0 %v8467_v60  ;;  %v10405_v51 = vld [vmem:[%s11090_s12 + $0x4c4] ss:$8 sps:$4 sm:$0xff]   ;;  %v10414_v60 = vld [vmem:[%s11090_s12 + $0xcd4] ss:$8 sps:$4 sm:$0xff]  }
 0x1f1   : > { %7203 = vmatpush1.bf16.msra.mxu0 %v10358_v56  ;;  %6060 = vmatprep.subr.bf16.mxu1 %v10363_v58  ;;  %v8595_v56 = vcombine.high %v485_v47, %v501_v48  ;;  %v10406_v58 = vld [vmem:[%s11090_s12 + $0xcc0] ss:$8 sps:$4 sm:$0xff]  }
 0x1f2   : > { %7204 = vmatprep.subr.bf16.mxu0 %v10366_v59  ;;  %v10411_v59 = vld [vmem:[%s11090_s12 + $0x4d4] ss:$8 sps:$4 sm:$0xff]  }
 0x1f4   : > { %6061 = vmatpush1.bf16.msra.mxu1 %v10361_v61  ;;  %v509_v61 = vld [vmem:[%s11148_s16 + $0x818] sm:$0xff] }
 0x1f5   : > { %7205 = vmatpush1.bf16.msra.mxu0 %v10364_v62  ;;  %6062 = vmatprep.subr.bf16.mxu1 %v10369_v3  ;;  %v525_v62 = vld [vmem:[%s11148_s16 + $0x898] sm:$0xff]  ;;  %v10417_v3 = vld [vmem:[%s11090_s12 + $0x4e4] ss:$8 sps:$4 sm:$0xff]  }
 0x1f6   : > { %7206 = vmatprep.subr.bf16.mxu0 %v10372_v4  ;;  %5970 = vmatmul.mubr.bf16.gmra.mrb[12].mxu1 %v8450_v5  ;;  %v10420_v4 = vld [vmem:[%s11090_s12 + $0xce4] ss:$8 sps:$4 sm:$0xff]   ;;  %v8578_v5 = vcombine.low %v477_v45, %v493_v46 }
 0x1f7   : > { %7114 = vmatmul.mubr.bf16.gmra.mrb[12].mxu0 %v8466_v6  ;;  %5979 = vmatprep.mubr.bf16.mxu1 %v8483_v9  ;;  %v8594_v6 = vcombine.low %v485_v47, %v501_v48  ;;  %v10415_v9 = vld [vmem:[%s11090_s12 + $0x4e0] ss:$8 sps:$4 sm:$0xff]  }
 0x1f8   : > { %7123 = vmatprep.mubr.bf16.mxu0 %v8499_v10  ;;  %6063 = vmatpush1.bf16.msra.mxu1 %v10367_v7  ;;  %v8611_v7 = vcombine.high %v509_v61, %v525_v62  ;;  %v10418_v10 = vld [vmem:[%s11090_s12 + $0xce0] ss:$8 sps:$4 sm:$0xff]  }
 0x1f9   : > { %7207 = vmatpush1.bf16.msra.mxu0 %v10370_v8  ;;  %6064 = vmatprep.subr.bf16.mxu1 %v10375_v11  ;;  %v8627_v8 = vcombine.high %v517_v63, %v533_v0  ;;  %v10423_v11 = vld [vmem:[%s11090_s12 + $0x4f4] ss:$8 sps:$4 sm:$0xff]   ;;  %v294_v45 = vld [vmem:[%s11148_s16 + $0x160] sm:$0xff] }
 0x1fa   : > { %7208 = vmatprep.subr.bf16.mxu0 %v10378_v12  ;;  %v10426_v12 = vld [vmem:[%s11090_s12 + $0xcf4] ss:$8 sps:$4 sm:$0xff]   ;;  %v310_v46 = vld [vmem:[%s11148_s16 + $0x1e0] sm:$0xff] }
 0x1fb   : > { %v10427_v47 = vld [vmem:[%s11090_s12 + $0x500] ss:$8 sps:$4 sm:$0xff]  }
 0x1fc   : > { %6065 = vmatpush1.bf16.msra.mxu1 %v10373_v15  ;;  %v549_v15 = vld [vmem:[%s11148_s16 + $0x958] sm:$0xff]  ;;  %v10430_v48 = vld [vmem:[%s11090_s12 + $0xd00] ss:$8 sps:$4 sm:$0xff]  }
 0x1fd   : > { %7209 = vmatpush1.bf16.msra.mxu0 %v10376_v18  ;;  %6066 = vmatprep.subr.bf16.mxu1 %v10381_v19  ;;  %v10424_v18 = vld [vmem:[%s11090_s12 + $0xcf0] ss:$8 sps:$4 sm:$0xff]   ;;  %v10429_v19 = vld [vmem:[%s11090_s12 + $0x504] ss:$8 sps:$4 sm:$0xff]   ;;  %v8658_v30 = vcombine.low %v549_v15, %v565_v16 }
 0x1fe   : > { %7210 = vmatprep.subr.bf16.mxu0 %v10384_v20  ;;  %5980 = vmatmul.mubr.bf16.gmra.mrb[16].mxu1 %v8482_v21  ;;  %v10432_v20 = vld [vmem:[%s11090_s12 + $0xd04] ss:$8 sps:$4 sm:$0xff]   ;;  %v8610_v21 = vcombine.low %v509_v61, %v525_v62  ;;  %v8404_v62 = vcombine.low %v294_v45, %v310_v46 }
 0x1ff   : > { %7124 = vmatmul.mubr.bf16.gmra.mrb[16].mxu0 %v8498_v22  ;;  %5989 = vmatprep.mubr.bf16.mxu1 %v8515_v25  ;;  %v8626_v22 = vcombine.low %v517_v63, %v533_v0  ;;  %v573_v25 = vld [vmem:[%s11148_s16 + $0xa18] sm:$0xff]  ;;  %v10439_v63 = vld [vmem:[%s11090_s12 + $0x520] ss:$8 sps:$4 sm:$0xff]  }
 0x200   : > { %7133 = vmatprep.mubr.bf16.mxu0 %v8531_v26  ;;  %6067 = vmatpush1.bf16.msra.mxu1 %v10379_v23  ;;  %v8643_v23 = vcombine.high %v541_v13, %v557_v14  ;;  %v589_v26 = vld [vmem:[%s11148_s16 + $0xa98] sm:$0xff]  ;;  %v10442_v0 = vld [vmem:[%s11090_s12 + $0xd20] ss:$8 sps:$4 sm:$0xff]  }
 0x201   : > { %7211 = vmatpush1.bf16.msra.mxu0 %v10382_v24  ;;  %6068 = vmatprep.subr.bf16.mxu1 %v10387_v27  ;;  %v8659_v24 = vcombine.high %v549_v15, %v565_v16  ;;  %v581_v27 = vld [vmem:[%s11148_s16 + $0xa58] sm:$0xff]  ;;  %v8675_v31 = vcombine.high %v573_v25, %v589_v26  ;;  %v10451_v15 = vld [vmem:[%s11090_s12 + $0x540] ss:$8 sps:$4 sm:$0xff]  }
 0x202   : > { %7212 = vmatprep.subr.bf16.mxu0 %v10390_v28  ;;  %v597_v28 = vld [vmem:[%s11148_s16 + $0xad8] sm:$0xff] }
 0x203   : > { %v8691_v32 = vcombine.high %v581_v27, %v597_v28 }
 0x204   : > { %6069 = vmatpush1.bf16.msra.mxu1 %v10385_v33  ;;  %v254_v33 = vld [vmem:[%s11148_s16 + $0x20] sm:$0xff] }
 0x205   : > { %7213 = vmatpush1.bf16.msra.mxu0 %v10388_v34  ;;  %6070 = vmatprep.subr.bf16.mxu1 %v10393_v35  ;;  %v270_v34 = vld [vmem:[%s11148_s16 + $0xa0] sm:$0xff] }
 0x206   : > { %7214 = vmatprep.subr.bf16.mxu0 %v10396_v36  ;;  %5990 = vmatmul.mubr.bf16.gmra.mrb[20].mxu1 %v8514_v37  ;;  %v262_v35 = vld [vmem:[%s11148_s16 + $0x60] sm:$0xff]  ;;  %v8674_v37 = vcombine.low %v573_v25, %v589_v26 }
 0x207   : > { %7134 = vmatmul.mubr.bf16.gmra.mrb[20].mxu0 %v8530_v38  ;;  %5999 = vmatprep.mubr.bf16.mxu1 %v8547_v41  ;;  %v278_v36 = vld [vmem:[%s11148_s16 + $0xe0] sm:$0xff]  ;;  %v8690_v38 = vcombine.low %v581_v27, %v597_v28 }
 0x208   : > { %7143 = vmatprep.mubr.bf16.mxu0 %v8563_v42  ;;  %6071 = vmatpush1.bf16.msra.mxu1 %v10391_v39  ;;  %v8357_v39 = vcombine.high %v254_v33, %v270_v34  ;;  %v286_v41 = vld [vmem:[%s11148_s16 + $0x120] sm:$0xff]  ;;  %v8356_v42 = vcombine.low %v254_v33, %v270_v34 }
 0x209   : > { %7215 = vmatpush1.bf16.msra.mxu0 %v10394_v40  ;;  %6072 = vmatprep.subr.bf16.mxu1 %v10399_v43  ;;  %v8373_v40 = vcombine.high %v262_v35, %v278_v36  ;;  %v8372_v43 = vcombine.low %v262_v35, %v278_v36  ;;  %v390_v25 = vld [vmem:[%s11148_s16 + $0x460] sm:$0xff]  ;;  %v10471_v35 = vld [vmem:[%s11090_s12 + $0x574] ss:$8 sps:$4 sm:$0xff]  }
 0x20a   : > { %7216 = vmatprep.subr.bf16.mxu0 %v10402_v44  ;;  %v302_v44 = vld [vmem:[%s11148_s16 + $0x1a0] sm:$0xff]  ;;  %v10474_v36 = vld [vmem:[%s11090_s12 + $0xd74] ss:$8 sps:$4 sm:$0xff]  }
 0x20b   : > { %v8388_v61 = vcombine.low %v286_v41, %v302_v44  ;;  %v406_v26 = vld [vmem:[%s11148_s16 + $0x4e0] sm:$0xff] }
 0x20c   : > { %6073 = vmatpush1.bf16.msra.mxu1 %v10397_v49  ;;  %v10435_v49 = vld [vmem:[%s11090_s12 + $0x514] ss:$8 sps:$4 sm:$0xff]   ;;  %v10465_v27 = vld [vmem:[%s11090_s12 + $0x564] ss:$8 sps:$4 sm:$0xff]   ;;  %v10463_v33 = vld [vmem:[%s11090_s12 + $0x560] ss:$8 sps:$4 sm:$0xff]  }
 0x20d   : > { %7217 = vmatpush1.bf16.msra.mxu0 %v10400_v50  ;;  %6074 = vmatprep.subr.bf16.mxu1 %v10405_v51  ;;  %v10438_v50 = vld [vmem:[%s11090_s12 + $0xd14] ss:$8 sps:$4 sm:$0xff]   ;;  %v8389_v51 = vcombine.high %v286_v41, %v302_v44  ;;  %v10468_v28 = vld [vmem:[%s11090_s12 + $0xd64] ss:$8 sps:$4 sm:$0xff]   ;;  %v10466_v34 = vld [vmem:[%s11090_s12 + $0xd60] ss:$8 sps:$4 sm:$0xff]  }
 0x20e   : > { %7218 = vmatprep.subr.bf16.mxu0 %v10408_v52  ;;  %6000 = vmatmul.mubr.bf16.gmra.mrb[24].mxu1 %v8546_v53  ;;  %v8405_v52 = vcombine.high %v294_v45, %v310_v46  ;;  %v10433_v53 = vld [vmem:[%s11090_s12 + $0x510] ss:$8 sps:$4 sm:$0xff]   ;;  %v438_v41 = vld [vmem:[%s11148_s16 + $0x5e0] sm:$0xff]  ;;  %v8500_v46 = vcombine.low %v390_v25, %v406_v26 }
 0x20f   : > { %7144 = vmatmul.mubr.bf16.gmra.mrb[24].mxu0 %v8562_v54  ;;  %6009 = vmatprep.mubr.bf16.mxu1 %v8579_v55  ;;  %v10436_v54 = vld [vmem:[%s11090_s12 + $0xd10] ss:$8 sps:$4 sm:$0xff]   ;;  %v10441_v55 = vld [vmem:[%s11090_s12 + $0x524] ss:$8 sps:$4 sm:$0xff]  }
 0x210   : > { %7153 = vmatprep.mubr.bf16.mxu0 %v8595_v56  ;;  %6075 = vmatpush1.bf16.msra.mxu1 %v10403_v57  ;;  %v10444_v56 = vld [vmem:[%s11090_s12 + $0xd24] ss:$8 sps:$4 sm:$0xff]  }
 0x211   : > { %7219 = vmatpush1.bf16.msra.mxu0 %v10406_v58  ;;  %6076 = vmatprep.subr.bf16.mxu1 %v10411_v59  ;;  %v318_v57 = vld [vmem:[%s11148_s16 + $0x220] sm:$0xff] }
 0x212   : > { %7220 = vmatprep.subr.bf16.mxu0 %v10414_v60  ;;  %v334_v58 = vld [vmem:[%s11148_s16 + $0x2a0] sm:$0xff] }
 0x213   : > { %v326_v59 = vld [vmem:[%s11148_s16 + $0x260] sm:$0xff]  ;;  %v8420_v13 = vcombine.low %v318_v57, %v334_v58 }
 0x214   : > { %6077 = vmatpush1.bf16.msra.mxu1 %v10409_v1  ;;  %v342_v60 = vld [vmem:[%s11148_s16 + $0x2e0] sm:$0xff]  ;;  %v8421_v1 = vcombine.high %v318_v57, %v334_v58  ;;  %v10481_v57 = vld [vmem:[%s11090_s12 + $0x590] ss:$8 sps:$4 sm:$0xff]  }
 0x215   : > { %7221 = vmatpush1.bf16.msra.mxu0 %v10412_v2  ;;  %6078 = vmatprep.subr.bf16.mxu1 %v10417_v3  ;;  %v8437_v2 = vcombine.high %v326_v59, %v342_v60  ;;  %v10447_v3 = vld [vmem:[%s11090_s12 + $0x534] ss:$8 sps:$4 sm:$0xff]   ;;  %v8436_v14 = vcombine.low %v326_v59, %v342_v60  ;;  %v10480_v44 = vld [vmem:[%s11090_s12 + $0xd84] ss:$8 sps:$4 sm:$0xff]   ;;  %v10484_v58 = vld [vmem:[%s11090_s12 + $0xd90] ss:$8 sps:$4 sm:$0xff]  }
 0x216   : > { %7222 = vmatprep.subr.bf16.mxu0 %v10420_v4  ;;  %6010 = vmatmul.mubr.bf16.gmra.mrb[28].mxu1 %v8578_v5  ;;  %v10450_v4 = vld [vmem:[%s11090_s12 + $0xd34] ss:$8 sps:$4 sm:$0xff]   ;;  %v10445_v5 = vld [vmem:[%s11090_s12 + $0x530] ss:$8 sps:$4 sm:$0xff]   ;;  %v10489_v59 = vld [vmem:[%s11090_s12 + $0x5a4] ss:$8 sps:$4 sm:$0xff]  }
 0x217   : > { %7154 = vmatmul.mubr.bf16.gmra.mrb[28].mxu0 %v8594_v6  ;;  %6019 = vmatprep.mubr.bf16.mxu1 %v8611_v7  ;;  %v10448_v6 = vld [vmem:[%s11090_s12 + $0xd30] ss:$8 sps:$4 sm:$0xff]   ;;  %v10453_v7 = vld [vmem:[%s11090_s12 + $0x544] ss:$8 sps:$4 sm:$0xff]  }
 0x218   : > { %7163 = vmatprep.mubr.bf16.mxu0 %v8627_v8  ;;  %6079 = vmatpush1.bf16.msra.mxu1 %v10415_v9  ;;  %v10456_v8 = vld [vmem:[%s11090_s12 + $0xd44] ss:$8 sps:$4 sm:$0xff]  }
 0x219   : > { %7223 = vmatpush1.bf16.msra.mxu0 %v10418_v10  ;;  %6080 = vmatprep.subr.bf16.mxu1 %v10423_v11  ;;  %v350_v9 = vld [vmem:[%s11148_s16 + $0x320] sm:$0xff] }
 0x21a   : > { %7224 = vmatprep.subr.bf16.mxu0 %v10426_v12  ;;  %v366_v10 = vld [vmem:[%s11148_s16 + $0x3a0] sm:$0xff] }
 0x21b   : > { %v358_v11 = vld [vmem:[%s11148_s16 + $0x360] sm:$0xff]  ;;  %v8453_v16 = vcombine.high %v350_v9, %v366_v10 }
 0x21c   : > { %6081 = vmatpush1.bf16.msra.mxu1 %v10421_v17  ;;  %v374_v12 = vld [vmem:[%s11148_s16 + $0x3e0] sm:$0xff] }
 0x21d   : > { %7225 = vmatpush1.bf16.msra.mxu0 %v10424_v18  ;;  %6193 = vmatprep.subr.bf16.mxu1 %v10429_v19  ;;  %v10454_v17 = vld [vmem:[%s11090_s12 + $0xd40] ss:$8 sps:$4 sm:$0xff]   ;;  %v8469_v18 = vcombine.high %v358_v11, %v374_v12  ;;  %v10459_v19 = vld [vmem:[%s11090_s12 + $0x554] ss:$8 sps:$4 sm:$0xff]   ;;  %v10492_v60 = vld [vmem:[%s11090_s12 + $0xda4] ss:$8 sps:$4 sm:$0xff]  }
 0x21e   : > { %7337 = vmatprep.subr.bf16.mxu0 %v10432_v20  ;;  %6020 = vmatmul.mubr.bf16.gmra.mrb[32].mxu1 %v8610_v21  ;;  %v10462_v20 = vld [vmem:[%s11090_s12 + $0xd54] ss:$8 sps:$4 sm:$0xff]   ;;  %v10457_v21 = vld [vmem:[%s11090_s12 + $0x550] ss:$8 sps:$4 sm:$0xff]  }
 0x21f   : > { %7164 = vmatmul.mubr.bf16.gmra.mrb[32].mxu0 %v8626_v22  ;;  %6029 = vmatprep.mubr.bf16.mxu1 %v8643_v23  ;;  %v10460_v22 = vld [vmem:[%s11090_s12 + $0xd50] ss:$8 sps:$4 sm:$0xff]   ;;  %v382_v23 = vld [vmem:[%s11148_s16 + $0x420] sm:$0xff] }
 0x220   : > { %7173 = vmatprep.mubr.bf16.mxu0 %v8659_v24  ;;  %v398_v24 = vld [vmem:[%s11148_s16 + $0x4a0] sm:$0xff] }
 0x221   : > { %v8484_v45 = vcombine.low %v382_v23, %v398_v24 }
 0x226   : > { %6030 = vmatmul.mubr.bf16.gmra.mrb[36].mxu1 %v8642_v29  ;;  %v8452_v29 = vcombine.low %v350_v9, %v366_v10  ;;  %v10493_v9 = vld [vmem:[%s11090_s12 + $0x5b0] ss:$8 sps:$4 sm:$0xff]  }
 0x227   : > { %7174 = vmatmul.mubr.bf16.gmra.mrb[36].mxu0 %v8658_v30  ;;  %6039 = vmatprep.mubr.bf16.mxu1 %v8675_v31  ;;  %v8468_v30 = vcombine.low %v358_v11, %v374_v12  ;;  %v8485_v31 = vcombine.high %v382_v23, %v398_v24  ;;  %v10496_v10 = vld [vmem:[%s11090_s12 + $0xdb0] ss:$8 sps:$4 sm:$0xff]   ;;  %v10501_v11 = vld [vmem:[%s11090_s12 + $0x5c4] ss:$8 sps:$4 sm:$0xff]  }
 0x228   : > { %7183 = vmatprep.mubr.bf16.mxu0 %v8691_v32  ;;  %v8501_v32 = vcombine.high %v390_v25, %v406_v26  ;;  %v10504_v12 = vld [vmem:[%s11090_s12 + $0xdc4] ss:$8 sps:$4 sm:$0xff]   ;;  %v10505_v25 = vld [vmem:[%s11090_s12 + $0x5d0] ss:$8 sps:$4 sm:$0xff]  }
 0x229   : > { %v518_v23 = vld [vmem:[%s11148_s16 + $0x860] sm:$0xff]  ;;  %v10508_v26 = vld [vmem:[%s11090_s12 + $0xdd0] ss:$8 sps:$4 sm:$0xff]  }
 0x22a   : > { %v534_v24 = vld [vmem:[%s11148_s16 + $0x8e0] sm:$0xff] }
 0x22e   : > { %6040 = vmatmul.mubr.bf16.gmra.mrb[40].mxu1 %v8674_v37  ;;  %v414_v37 = vld [vmem:[%s11148_s16 + $0x520] sm:$0xff] }
 0x22f   : > { %7184 = vmatmul.mubr.bf16.gmra.mrb[40].mxu0 %v8690_v38  ;;  %6082 = vmatprep.mubr.bf16.mxu1 %v8357_v39  ;;  %v430_v38 = vld [vmem:[%s11148_s16 + $0x5a0] sm:$0xff]  ;;  %v10469_v39 = vld [vmem:[%s11090_s12 + $0x570] ss:$8 sps:$4 sm:$0xff]  }
 0x230   : > { %7226 = vmatprep.mubr.bf16.mxu0 %v8373_v40  ;;  %v422_v40 = vld [vmem:[%s11148_s16 + $0x560] sm:$0xff] }
 0x236   : > { %6083 = vmatmul.mubr.bf16.vlgmr.msra.gmra.mrb[0].mxu1 %v8356_v42  ;;  %v10472_v42 = vld [vmem:[%s11090_s12 + $0xd70] ss:$8 sps:$4 sm:$0xff]  }
 0x237   : > { %7227 = vmatmul.mubr.bf16.vlgmr.msra.gmra.mrb[0].mxu0 %v8372_v43  ;;  %6194 = vmatpush1.bf16.msra.mxu1 %v10427_v47  ;;  %v10477_v43 = vld [vmem:[%s11090_s12 + $0x584] ss:$8 sps:$4 sm:$0xff]   ;;  %v8517_v47 = vcombine.high %v414_v37, %v430_v38 }
 0x238   : > { %7338 = vmatpush1.bf16.msra.mxu0 %v10430_v48  ;;  %6195 = vmatprep.subr.bf16.mxu1 %v10435_v49  ;;  %v8533_v48 = vcombine.high %v422_v40, %v438_v41  ;;  %v10475_v49 = vld [vmem:[%s11090_s12 + $0x580] ss:$8 sps:$4 sm:$0xff]  }
 0x239   : > { %7339 = vmatprep.subr.bf16.mxu0 %v10438_v50  ;;  %6092 = vmatprep.mubr.bf16.mxu1 %v8389_v51  ;;  %v10478_v50 = vld [vmem:[%s11090_s12 + $0xd80] ss:$8 sps:$4 sm:$0xff]   ;;  %v10483_v51 = vld [vmem:[%s11090_s12 + $0x594] ss:$8 sps:$4 sm:$0xff]  }
 0x23a   : > { %7236 = vmatprep.mubr.bf16.mxu0 %v8405_v52  ;;  %v10486_v52 = vld [vmem:[%s11090_s12 + $0xd94] ss:$8 sps:$4 sm:$0xff]  }
 0x23b   : > { %6196 = vmatpush1.bf16.msra.mxu1 %v10433_v53  ;;  %v446_v53 = vld [vmem:[%s11148_s16 + $0x620] sm:$0xff] }
 0x23c   : > { %7340 = vmatpush1.bf16.msra.mxu0 %v10436_v54  ;;  %6197 = vmatprep.subr.bf16.mxu1 %v10441_v55  ;;  %v462_v54 = vld [vmem:[%s11148_s16 + $0x6a0] sm:$0xff] }
 0x23d   : > { %7341 = vmatprep.subr.bf16.mxu0 %v10444_v56  ;;  %v454_v55 = vld [vmem:[%s11148_s16 + $0x660] sm:$0xff] }
 0x23e   : > { %6093 = vmatmul.mubr.bf16.gmra.mrb[4].mxu1 %v8388_v61  ;;  %v470_v56 = vld [vmem:[%s11148_s16 + $0x6e0] sm:$0xff]  ;;  %v8516_v61 = vcombine.low %v414_v37, %v430_v38 }
 0x23f   : > { %7237 = vmatmul.mubr.bf16.gmra.mrb[4].mxu0 %v8404_v62  ;;  %6198 = vmatpush1.bf16.msra.mxu1 %v10439_v63  ;;  %v8532_v62 = vcombine.low %v422_v40, %v438_v41  ;;  %v8549_v63 = vcombine.high %v446_v53, %v462_v54  ;;  %v542_v37 = vld [vmem:[%s11148_s16 + $0x920] sm:$0xff]  ;;  %v10517_v41 = vld [vmem:[%s11090_s12 + $0x5f0] ss:$8 sps:$4 sm:$0xff]  }
 0x240   : > { %7342 = vmatpush1.bf16.msra.mxu0 %v10442_v0  ;;  %6102 = vmatprep.mubr.bf16.mxu1 %v8421_v1  ;;  %v8565_v0 = vcombine.high %v454_v55, %v470_v56  ;;  %v10487_v1 = vld [vmem:[%s11090_s12 + $0x5a0] ss:$8 sps:$4 sm:$0xff]  }
 0x241   : > { %7246 = vmatprep.mubr.bf16.mxu0 %v8437_v2  ;;  %6199 = vmatprep.subr.bf16.mxu1 %v10447_v3  ;;  %v10490_v2 = vld [vmem:[%s11090_s12 + $0xda0] ss:$8 sps:$4 sm:$0xff]   ;;  %v10495_v3 = vld [vmem:[%s11090_s12 + $0x5b4] ss:$8 sps:$4 sm:$0xff]  }
 0x242   : > { %7343 = vmatprep.subr.bf16.mxu0 %v10450_v4  ;;  %v10498_v4 = vld [vmem:[%s11090_s12 + $0xdb4] ss:$8 sps:$4 sm:$0xff]   ;;  %v558_v38 = vld [vmem:[%s11148_s16 + $0x9a0] sm:$0xff] }
 0x243   : > { %6200 = vmatpush1.bf16.msra.mxu1 %v10445_v5  ;;  %v478_v5 = vld [vmem:[%s11148_s16 + $0x720] sm:$0xff] }
 0x244   : > { %7344 = vmatpush1.bf16.msra.mxu0 %v10448_v6  ;;  %6201 = vmatprep.subr.bf16.mxu1 %v10453_v7  ;;  %v494_v6 = vld [vmem:[%s11148_s16 + $0x7a0] sm:$0xff] }
 0x245   : > { %7345 = vmatprep.subr.bf16.mxu0 %v10456_v8  ;;  %v486_v7 = vld [vmem:[%s11148_s16 + $0x760] sm:$0xff] }
 0x246   : > { %6103 = vmatmul.mubr.bf16.gmra.mrb[8].mxu1 %v8420_v13  ;;  %v502_v8 = vld [vmem:[%s11148_s16 + $0x7e0] sm:$0xff]  ;;  %v8548_v13 = vcombine.low %v446_v53, %v462_v54  ;;  %v8644_v53 = vcombine.low %v542_v37, %v558_v38 }
 0x247   : > { %7247 = vmatmul.mubr.bf16.gmra.mrb[8].mxu0 %v8436_v14  ;;  %6112 = vmatprep.mubr.bf16.mxu1 %v8453_v16  ;;  %v8564_v14 = vcombine.low %v454_v55, %v470_v56  ;;  %v8597_v16 = vcombine.high %v486_v7, %v502_v8  ;;  %v566_v40 = vld [vmem:[%s11148_s16 + $0x9e0] sm:$0xff] }
 0x248   : > { %6202 = vmatpush1.bf16.msra.mxu1 %v10451_v15  ;;  %7256 = vmatprep.mubr.bf16.mxu0 %v8469_v18  ;;  %v8581_v15 = vcombine.high %v478_v5, %v494_v6  ;;  %v10502_v18 = vld [vmem:[%s11090_s12 + $0xdc0] ss:$8 sps:$4 sm:$0xff]  }
 0x249   : > { %7346 = vmatpush1.bf16.msra.mxu0 %v10454_v17  ;;  %6203 = vmatprep.subr.bf16.mxu1 %v10459_v19  ;;  %v10499_v17 = vld [vmem:[%s11090_s12 + $0x5c0] ss:$8 sps:$4 sm:$0xff]   ;;  %v10507_v19 = vld [vmem:[%s11090_s12 + $0x5d4] ss:$8 sps:$4 sm:$0xff]  }
 0x24a   : > { %7347 = vmatprep.subr.bf16.mxu0 %v10462_v20  ;;  %v10510_v20 = vld [vmem:[%s11090_s12 + $0xdd4] ss:$8 sps:$4 sm:$0xff]  }
 0x24c   : > { %6204 = vmatpush1.bf16.msra.mxu1 %v10457_v21  ;;  %v510_v21 = vld [vmem:[%s11148_s16 + $0x820] sm:$0xff] }
 0x24d   : > { %7348 = vmatpush1.bf16.msra.mxu0 %v10460_v22  ;;  %6205 = vmatprep.subr.bf16.mxu1 %v10465_v27  ;;  %v526_v22 = vld [vmem:[%s11148_s16 + $0x8a0] sm:$0xff] }
 0x24e   : > { %7349 = vmatprep.subr.bf16.mxu0 %v10468_v28  ;;  %6113 = vmatmul.mubr.bf16.gmra.mrb[12].mxu1 %v8452_v29  ;;  %v10513_v27 = vld [vmem:[%s11090_s12 + $0x5e4] ss:$8 sps:$4 sm:$0xff]   ;;  %v8580_v29 = vcombine.low %v478_v5, %v494_v6 }
 0x24f   : > { %7257 = vmatmul.mubr.bf16.gmra.mrb[12].mxu0 %v8468_v30  ;;  %6122 = vmatprep.mubr.bf16.mxu1 %v8485_v31  ;;  %v10516_v28 = vld [vmem:[%s11090_s12 + $0xde4] ss:$8 sps:$4 sm:$0xff]   ;;  %v8596_v30 = vcombine.low %v486_v7, %v502_v8  ;;  %v8613_v31 = vcombine.high %v510_v21, %v526_v22  ;;  %v10523_v7 = vld [vmem:[%s11090_s12 + $0x600] ss:$8 sps:$4 sm:$0xff]  }
 0x250   : > { %7266 = vmatprep.mubr.bf16.mxu0 %v8501_v32  ;;  %6206 = vmatpush1.bf16.msra.mxu1 %v10463_v33  ;;  %v8629_v32 = vcombine.high %v518_v23, %v534_v24  ;;  %v10511_v33 = vld [vmem:[%s11090_s12 + $0x5e0] ss:$8 sps:$4 sm:$0xff]  }
 0x251   : > { %7350 = vmatpush1.bf16.msra.mxu0 %v10466_v34  ;;  %6207 = vmatprep.subr.bf16.mxu1 %v10471_v35  ;;  %v10514_v34 = vld [vmem:[%s11090_s12 + $0xde0] ss:$8 sps:$4 sm:$0xff]   ;;  %v10519_v35 = vld [vmem:[%s11090_s12 + $0x5f4] ss:$8 sps:$4 sm:$0xff]  }
 0x252   : > { %7351 = vmatprep.subr.bf16.mxu0 %v10474_v36  ;;  %v10522_v36 = vld [vmem:[%s11090_s12 + $0xdf4] ss:$8 sps:$4 sm:$0xff]   ;;  %v295_v5 = vld [vmem:[%s11148_s16 + $0x168] sm:$0xff] }
 0x253   : > { %v311_v6 = vld [vmem:[%s11148_s16 + $0x1e8] sm:$0xff] }
 0x254   : > { %6208 = vmatpush1.bf16.msra.mxu1 %v10469_v39  ;;  %v550_v39 = vld [vmem:[%s11148_s16 + $0x960] sm:$0xff] }
 0x255   : > { %7352 = vmatpush1.bf16.msra.mxu0 %v10472_v42  ;;  %6209 = vmatprep.subr.bf16.mxu1 %v10477_v43  ;;  %v10520_v42 = vld [vmem:[%s11090_s12 + $0xdf0] ss:$8 sps:$4 sm:$0xff]   ;;  %v10525_v43 = vld [vmem:[%s11090_s12 + $0x604] ss:$8 sps:$4 sm:$0xff]   ;;  %v8660_v54 = vcombine.low %v550_v39, %v566_v40  ;;  %v10526_v8 = vld [vmem:[%s11090_s12 + $0xe00] ss:$8 sps:$4 sm:$0xff]  }
 0x256   : > { %7353 = vmatprep.subr.bf16.mxu0 %v10480_v44  ;;  %6123 = vmatmul.mubr.bf16.gmra.mrb[16].mxu1 %v8484_v45  ;;  %v10528_v44 = vld [vmem:[%s11090_s12 + $0xe04] ss:$8 sps:$4 sm:$0xff]   ;;  %v8612_v45 = vcombine.low %v510_v21, %v526_v22  ;;  %v8406_v22 = vcombine.low %v295_v5, %v311_v6 }
 0x257   : > { %7267 = vmatmul.mubr.bf16.gmra.mrb[16].mxu0 %v8500_v46  ;;  %6132 = vmatprep.mubr.bf16.mxu1 %v8517_v47  ;;  %v8628_v46 = vcombine.low %v518_v23, %v534_v24  ;;  %v8645_v47 = vcombine.high %v542_v37, %v558_v38  ;;  %v10535_v23 = vld [vmem:[%s11090_s12 + $0x620] ss:$8 sps:$4 sm:$0xff]  }
 0x258   : > { %7276 = vmatprep.mubr.bf16.mxu0 %v8533_v48  ;;  %6210 = vmatpush1.bf16.msra.mxu1 %v10475_v49  ;;  %v8661_v48 = vcombine.high %v550_v39, %v566_v40  ;;  %v574_v49 = vld [vmem:[%s11148_s16 + $0xa20] sm:$0xff] }
 0x259   : > { %7354 = vmatpush1.bf16.msra.mxu0 %v10478_v50  ;;  %6211 = vmatprep.subr.bf16.mxu1 %v10483_v51  ;;  %v590_v50 = vld [vmem:[%s11148_s16 + $0xaa0] sm:$0xff] }
 0x25a   : > { %7355 = vmatprep.subr.bf16.mxu0 %v10486_v52  ;;  %v582_v51 = vld [vmem:[%s11148_s16 + $0xa60] sm:$0xff]  ;;  %v8677_v55 = vcombine.high %v574_v49, %v590_v50 }
 0x25b   : > { %v598_v52 = vld [vmem:[%s11148_s16 + $0xae0] sm:$0xff] }
 0x25c   : > { %6212 = vmatpush1.bf16.msra.mxu1 %v10481_v57  ;;  %v8693_v56 = vcombine.high %v582_v51, %v598_v52  ;;  %v255_v57 = vld [vmem:[%s11148_s16 + $0x28] sm:$0xff] }
 0x25d   : > { %7356 = vmatpush1.bf16.msra.mxu0 %v10484_v58  ;;  %6213 = vmatprep.subr.bf16.mxu1 %v10489_v59  ;;  %v271_v58 = vld [vmem:[%s11148_s16 + $0xa8] sm:$0xff] }
 0x25e   : > { %7357 = vmatprep.subr.bf16.mxu0 %v10492_v60  ;;  %6133 = vmatmul.mubr.bf16.gmra.mrb[20].mxu1 %v8516_v61  ;;  %v263_v59 = vld [vmem:[%s11148_s16 + $0x68] sm:$0xff]  ;;  %v8676_v61 = vcombine.low %v574_v49, %v590_v50 }
 0x25f   : > { %7277 = vmatmul.mubr.bf16.gmra.mrb[20].mxu0 %v8532_v62  ;;  %6142 = vmatprep.mubr.bf16.mxu1 %v8549_v63  ;;  %v279_v60 = vld [vmem:[%s11148_s16 + $0xe8] sm:$0xff]  ;;  %v8692_v62 = vcombine.low %v582_v51, %v598_v52  ;;  %v8359_v63 = vcombine.high %v255_v57, %v271_v58 }
 0x260   : > { %7286 = vmatprep.mubr.bf16.mxu0 %v8565_v0  ;;  %6214 = vmatpush1.bf16.msra.mxu1 %v10487_v1  ;;  %v8375_v0 = vcombine.high %v263_v59, %v279_v60  ;;  %v287_v1 = vld [vmem:[%s11148_s16 + $0x128] sm:$0xff] }
 0x261   : > { %7358 = vmatpush1.bf16.msra.mxu0 %v10490_v2  ;;  %6215 = vmatprep.subr.bf16.mxu1 %v10495_v3  ;;  %v8358_v2 = vcombine.low %v255_v57, %v271_v58  ;;  %v8374_v3 = vcombine.low %v263_v59, %v279_v60  ;;  %v10538_v24 = vld [vmem:[%s11090_s12 + $0xe20] ss:$8 sps:$4 sm:$0xff]   ;;  %v10561_v51 = vld [vmem:[%s11090_s12 + $0x664] ss:$8 sps:$4 sm:$0xff]   ;;  %v10567_v59 = vld [vmem:[%s11090_s12 + $0x674] ss:$8 sps:$4 sm:$0xff]  }
 0x262   : > { %7359 = vmatprep.subr.bf16.mxu0 %v10498_v4  ;;  %v303_v4 = vld [vmem:[%s11148_s16 + $0x1a8] sm:$0xff]  ;;  %v10570_v60 = vld [vmem:[%s11090_s12 + $0xe74] ss:$8 sps:$4 sm:$0xff]  }
 0x263   : > { %v8390_v21 = vcombine.low %v287_v1, %v303_v4  ;;  %v10547_v39 = vld [vmem:[%s11090_s12 + $0x640] ss:$8 sps:$4 sm:$0xff]   ;;  %v10564_v52 = vld [vmem:[%s11090_s12 + $0xe64] ss:$8 sps:$4 sm:$0xff]  }
 0x264   : > { %6216 = vmatpush1.bf16.msra.mxu1 %v10493_v9  ;;  %v10531_v9 = vld [vmem:[%s11090_s12 + $0x614] ss:$8 sps:$4 sm:$0xff]   ;;  %v391_v49 = vld [vmem:[%s11148_s16 + $0x468] sm:$0xff] }
 0x265   : > { %7360 = vmatpush1.bf16.msra.mxu0 %v10496_v10  ;;  %6217 = vmatprep.subr.bf16.mxu1 %v10501_v11  ;;  %v10534_v10 = vld [vmem:[%s11090_s12 + $0xe14] ss:$8 sps:$4 sm:$0xff]   ;;  %v8391_v11 = vcombine.high %v287_v1, %v303_v4  ;;  %v407_v50 = vld [vmem:[%s11148_s16 + $0x4e8] sm:$0xff] }
 0x266   : > { %7361 = vmatprep.subr.bf16.mxu0 %v10504_v12  ;;  %6143 = vmatmul.mubr.bf16.gmra.mrb[24].mxu1 %v8548_v13  ;;  %v8407_v12 = vcombine.high %v295_v5, %v311_v6  ;;  %v10529_v13 = vld [vmem:[%s11090_s12 + $0x610] ss:$8 sps:$4 sm:$0xff]   ;;  %v10559_v57 = vld [vmem:[%s11090_s12 + $0x660] ss:$8 sps:$4 sm:$0xff]   ;;  %v10576_v4 = vld [vmem:[%s11090_s12 + $0xe84] ss:$8 sps:$4 sm:$0xff]   ;;  %v8502_v6 = vcombine.low %v391_v49, %v407_v50 }
 0x267   : > { %7287 = vmatmul.mubr.bf16.gmra.mrb[24].mxu0 %v8564_v14  ;;  %6152 = vmatprep.mubr.bf16.mxu1 %v8581_v15  ;;  %v10532_v14 = vld [vmem:[%s11090_s12 + $0xe10] ss:$8 sps:$4 sm:$0xff]   ;;  %v10537_v15 = vld [vmem:[%s11090_s12 + $0x624] ss:$8 sps:$4 sm:$0xff]   ;;  %v10562_v58 = vld [vmem:[%s11090_s12 + $0xe60] ss:$8 sps:$4 sm:$0xff]  }
 0x268   : > { %7296 = vmatprep.mubr.bf16.mxu0 %v8597_v16  ;;  %6218 = vmatpush1.bf16.msra.mxu1 %v10499_v17  ;;  %v10540_v16 = vld [vmem:[%s11090_s12 + $0xe24] ss:$8 sps:$4 sm:$0xff]  }
 0x269   : > { %7362 = vmatpush1.bf16.msra.mxu0 %v10502_v18  ;;  %6219 = vmatprep.subr.bf16.mxu1 %v10507_v19  ;;  %v319_v17 = vld [vmem:[%s11148_s16 + $0x228] sm:$0xff] }
 0x26a   : > { %7363 = vmatprep.subr.bf16.mxu0 %v10510_v20  ;;  %v335_v18 = vld [vmem:[%s11148_s16 + $0x2a8] sm:$0xff] }
 0x26b   : > { %v327_v19 = vld [vmem:[%s11148_s16 + $0x268] sm:$0xff]  ;;  %v8422_v37 = vcombine.low %v319_v17, %v335_v18 }
 0x26c   : > { %6220 = vmatpush1.bf16.msra.mxu1 %v10505_v25  ;;  %v343_v20 = vld [vmem:[%s11148_s16 + $0x2e8] sm:$0xff]  ;;  %v8423_v25 = vcombine.high %v319_v17, %v335_v18  ;;  %v10577_v17 = vld [vmem:[%s11090_s12 + $0x690] ss:$8 sps:$4 sm:$0xff]  }
 0x26d   : > { %7364 = vmatpush1.bf16.msra.mxu0 %v10508_v26  ;;  %6221 = vmatprep.subr.bf16.mxu1 %v10513_v27  ;;  %v8439_v26 = vcombine.high %v327_v19, %v343_v20  ;;  %v10543_v27 = vld [vmem:[%s11090_s12 + $0x634] ss:$8 sps:$4 sm:$0xff]   ;;  %v8438_v38 = vcombine.low %v327_v19, %v343_v20  ;;  %v439_v1 = vld [vmem:[%s11148_s16 + $0x5e8] sm:$0xff]  ;;  %v10580_v18 = vld [vmem:[%s11090_s12 + $0xe90] ss:$8 sps:$4 sm:$0xff]  }
 0x26e   : > { %7365 = vmatprep.subr.bf16.mxu0 %v10516_v28  ;;  %6153 = vmatmul.mubr.bf16.gmra.mrb[28].mxu1 %v8580_v29  ;;  %v10546_v28 = vld [vmem:[%s11090_s12 + $0xe34] ss:$8 sps:$4 sm:$0xff]   ;;  %v10541_v29 = vld [vmem:[%s11090_s12 + $0x630] ss:$8 sps:$4 sm:$0xff]   ;;  %v10585_v19 = vld [vmem:[%s11090_s12 + $0x6a4] ss:$8 sps:$4 sm:$0xff]  }
 0x26f   : > { %7297 = vmatmul.mubr.bf16.gmra.mrb[28].mxu0 %v8596_v30  ;;  %6162 = vmatprep.mubr.bf16.mxu1 %v8613_v31  ;;  %v10544_v30 = vld [vmem:[%s11090_s12 + $0xe30] ss:$8 sps:$4 sm:$0xff]   ;;  %v10549_v31 = vld [vmem:[%s11090_s12 + $0x644] ss:$8 sps:$4 sm:$0xff]  }
 0x270   : > { %7306 = vmatprep.mubr.bf16.mxu0 %v8629_v32  ;;  %6222 = vmatpush1.bf16.msra.mxu1 %v10511_v33  ;;  %v10552_v32 = vld [vmem:[%s11090_s12 + $0xe44] ss:$8 sps:$4 sm:$0xff]  }
 0x271   : > { %7366 = vmatpush1.bf16.msra.mxu0 %v10514_v34  ;;  %6223 = vmatprep.subr.bf16.mxu1 %v10519_v35  ;;  %v351_v33 = vld [vmem:[%s11148_s16 + $0x328] sm:$0xff] }
 0x272   : > { %7367 = vmatprep.subr.bf16.mxu0 %v10522_v36  ;;  %v367_v34 = vld [vmem:[%s11148_s16 + $0x3a8] sm:$0xff] }
 0x273   : > { %v359_v35 = vld [vmem:[%s11148_s16 + $0x368] sm:$0xff]  ;;  %v8455_v40 = vcombine.high %v351_v33, %v367_v34 }
 0x274   : > { %6224 = vmatpush1.bf16.msra.mxu1 %v10517_v41  ;;  %v375_v36 = vld [vmem:[%s11148_s16 + $0x3e8] sm:$0xff] }
 0x275   : > { %7368 = vmatpush1.bf16.msra.mxu0 %v10520_v42  ;;  %6336 = vmatprep.subr.bf16.mxu1 %v10525_v43  ;;  %v10550_v41 = vld [vmem:[%s11090_s12 + $0xe40] ss:$8 sps:$4 sm:$0xff]   ;;  %v8471_v42 = vcombine.high %v359_v35, %v375_v36  ;;  %v10555_v43 = vld [vmem:[%s11090_s12 + $0x654] ss:$8 sps:$4 sm:$0xff]   ;;  %v10588_v20 = vld [vmem:[%s11090_s12 + $0xea4] ss:$8 sps:$4 sm:$0xff]  }
 0x276   : > { %7480 = vmatprep.subr.bf16.mxu0 %v10528_v44  ;;  %6163 = vmatmul.mubr.bf16.gmra.mrb[32].mxu1 %v8612_v45  ;;  %v10558_v44 = vld [vmem:[%s11090_s12 + $0xe54] ss:$8 sps:$4 sm:$0xff]   ;;  %v10553_v45 = vld [vmem:[%s11090_s12 + $0x650] ss:$8 sps:$4 sm:$0xff]  }
 0x277   : > { %7307 = vmatmul.mubr.bf16.gmra.mrb[32].mxu0 %v8628_v46  ;;  %6172 = vmatprep.mubr.bf16.mxu1 %v8645_v47  ;;  %v10556_v46 = vld [vmem:[%s11090_s12 + $0xe50] ss:$8 sps:$4 sm:$0xff]   ;;  %v383_v47 = vld [vmem:[%s11148_s16 + $0x428] sm:$0xff] }
 0x278   : > { %7316 = vmatprep.mubr.bf16.mxu0 %v8661_v48  ;;  %v399_v48 = vld [vmem:[%s11148_s16 + $0x4a8] sm:$0xff] }
 0x279   : > { %v8486_v5 = vcombine.low %v383_v47, %v399_v48 }
 0x27e   : > { %6173 = vmatmul.mubr.bf16.gmra.mrb[36].mxu1 %v8644_v53  ;;  %v8454_v53 = vcombine.low %v351_v33, %v367_v34  ;;  %v10589_v33 = vld [vmem:[%s11090_s12 + $0x6b0] ss:$8 sps:$4 sm:$0xff]  }
 0x27f   : > { %7317 = vmatmul.mubr.bf16.gmra.mrb[36].mxu0 %v8660_v54  ;;  %6182 = vmatprep.mubr.bf16.mxu1 %v8677_v55  ;;  %v8470_v54 = vcombine.low %v359_v35, %v375_v36  ;;  %v8487_v55 = vcombine.high %v383_v47, %v399_v48  ;;  %v10592_v34 = vld [vmem:[%s11090_s12 + $0xeb0] ss:$8 sps:$4 sm:$0xff]   ;;  %v10597_v35 = vld [vmem:[%s11090_s12 + $0x6c4] ss:$8 sps:$4 sm:$0xff]  }
 0x280   : > { %7326 = vmatprep.mubr.bf16.mxu0 %v8693_v56  ;;  %v8503_v56 = vcombine.high %v391_v49, %v407_v50  ;;  %v10600_v36 = vld [vmem:[%s11090_s12 + $0xec4] ss:$8 sps:$4 sm:$0xff]   ;;  %v10601_v49 = vld [vmem:[%s11090_s12 + $0x6d0] ss:$8 sps:$4 sm:$0xff]  }
 0x281   : > { %v519_v47 = vld [vmem:[%s11148_s16 + $0x868] sm:$0xff]  ;;  %v10604_v50 = vld [vmem:[%s11090_s12 + $0xed0] ss:$8 sps:$4 sm:$0xff]  }
 0x282   : > { %v535_v48 = vld [vmem:[%s11148_s16 + $0x8e8] sm:$0xff] }
 0x286   : > { %6183 = vmatmul.mubr.bf16.gmra.mrb[40].mxu1 %v8676_v61  ;;  %v415_v61 = vld [vmem:[%s11148_s16 + $0x528] sm:$0xff] }
 0x287   : > { %7327 = vmatmul.mubr.bf16.gmra.mrb[40].mxu0 %v8692_v62  ;;  %6225 = vmatprep.mubr.bf16.mxu1 %v8359_v63  ;;  %v431_v62 = vld [vmem:[%s11148_s16 + $0x5a8] sm:$0xff]  ;;  %v10565_v63 = vld [vmem:[%s11090_s12 + $0x670] ss:$8 sps:$4 sm:$0xff]  }
 0x288   : > { %7369 = vmatprep.mubr.bf16.mxu0 %v8375_v0  ;;  %v423_v0 = vld [vmem:[%s11148_s16 + $0x568] sm:$0xff] }
 0x28e   : > { %6226 = vmatmul.mubr.bf16.vlgmr.msra.gmra.mrb[0].mxu1 %v8358_v2  ;;  %v10568_v2 = vld [vmem:[%s11090_s12 + $0xe70] ss:$8 sps:$4 sm:$0xff]  }
 0x28f   : > { %7370 = vmatmul.mubr.bf16.vlgmr.msra.gmra.mrb[0].mxu0 %v8374_v3  ;;  %6337 = vmatpush1.bf16.msra.mxu1 %v10523_v7  ;;  %v10573_v3 = vld [vmem:[%s11090_s12 + $0x684] ss:$8 sps:$4 sm:$0xff]   ;;  %v8519_v7 = vcombine.high %v415_v61, %v431_v62 }
 0x290   : > { %7481 = vmatpush1.bf16.msra.mxu0 %v10526_v8  ;;  %6338 = vmatprep.subr.bf16.mxu1 %v10531_v9  ;;  %v8535_v8 = vcombine.high %v423_v0, %v439_v1  ;;  %v10571_v9 = vld [vmem:[%s11090_s12 + $0x680] ss:$8 sps:$4 sm:$0xff]  }
 0x291   : > { %7482 = vmatprep.subr.bf16.mxu0 %v10534_v10  ;;  %6235 = vmatprep.mubr.bf16.mxu1 %v8391_v11  ;;  %v10574_v10 = vld [vmem:[%s11090_s12 + $0xe80] ss:$8 sps:$4 sm:$0xff]   ;;  %v10579_v11 = vld [vmem:[%s11090_s12 + $0x694] ss:$8 sps:$4 sm:$0xff]  }
 0x292   : > { %7379 = vmatprep.mubr.bf16.mxu0 %v8407_v12  ;;  %v10582_v12 = vld [vmem:[%s11090_s12 + $0xe94] ss:$8 sps:$4 sm:$0xff]  }
 0x293   : > { %6339 = vmatpush1.bf16.msra.mxu1 %v10529_v13  ;;  %v447_v13 = vld [vmem:[%s11148_s16 + $0x628] sm:$0xff] }
 0x294   : > { %7483 = vmatpush1.bf16.msra.mxu0 %v10532_v14  ;;  %6340 = vmatprep.subr.bf16.mxu1 %v10537_v15  ;;  %v463_v14 = vld [vmem:[%s11148_s16 + $0x6a8] sm:$0xff] }
 0x295   : > { %7484 = vmatprep.subr.bf16.mxu0 %v10540_v16  ;;  %v455_v15 = vld [vmem:[%s11148_s16 + $0x668] sm:$0xff] }
 0x296   : > { %6236 = vmatmul.mubr.bf16.gmra.mrb[4].mxu1 %v8390_v21  ;;  %v471_v16 = vld [vmem:[%s11148_s16 + $0x6e8] sm:$0xff]  ;;  %v8518_v21 = vcombine.low %v415_v61, %v431_v62 }
 0x297   : > { %7380 = vmatmul.mubr.bf16.gmra.mrb[4].mxu0 %v8406_v22  ;;  %6341 = vmatpush1.bf16.msra.mxu1 %v10535_v23  ;;  %v8534_v22 = vcombine.low %v423_v0, %v439_v1  ;;  %v8551_v23 = vcombine.high %v447_v13, %v463_v14  ;;  %v543_v61 = vld [vmem:[%s11148_s16 + $0x928] sm:$0xff]  ;;  %v10613_v1 = vld [vmem:[%s11090_s12 + $0x6f0] ss:$8 sps:$4 sm:$0xff]  }
 0x298   : > { %7485 = vmatpush1.bf16.msra.mxu0 %v10538_v24  ;;  %6245 = vmatprep.mubr.bf16.mxu1 %v8423_v25  ;;  %v8567_v24 = vcombine.high %v455_v15, %v471_v16  ;;  %v10583_v25 = vld [vmem:[%s11090_s12 + $0x6a0] ss:$8 sps:$4 sm:$0xff]  }
 0x299   : > { %7389 = vmatprep.mubr.bf16.mxu0 %v8439_v26  ;;  %6342 = vmatprep.subr.bf16.mxu1 %v10543_v27  ;;  %v10586_v26 = vld [vmem:[%s11090_s12 + $0xea0] ss:$8 sps:$4 sm:$0xff]   ;;  %v10591_v27 = vld [vmem:[%s11090_s12 + $0x6b4] ss:$8 sps:$4 sm:$0xff]  }
 0x29a   : > { %7486 = vmatprep.subr.bf16.mxu0 %v10546_v28  ;;  %v10594_v28 = vld [vmem:[%s11090_s12 + $0xeb4] ss:$8 sps:$4 sm:$0xff]   ;;  %v559_v62 = vld [vmem:[%s11148_s16 + $0x9a8] sm:$0xff] }
 0x29b   : > { %6343 = vmatpush1.bf16.msra.mxu1 %v10541_v29  ;;  %v479_v29 = vld [vmem:[%s11148_s16 + $0x728] sm:$0xff] }
 0x29c   : > { %7487 = vmatpush1.bf16.msra.mxu0 %v10544_v30  ;;  %6344 = vmatprep.subr.bf16.mxu1 %v10549_v31  ;;  %v495_v30 = vld [vmem:[%s11148_s16 + $0x7a8] sm:$0xff] }
 0x29d   : > { %7488 = vmatprep.subr.bf16.mxu0 %v10552_v32  ;;  %v487_v31 = vld [vmem:[%s11148_s16 + $0x768] sm:$0xff] }
 0x29e   : > { %6246 = vmatmul.mubr.bf16.gmra.mrb[8].mxu1 %v8422_v37  ;;  %v503_v32 = vld [vmem:[%s11148_s16 + $0x7e8] sm:$0xff]  ;;  %v8550_v37 = vcombine.low %v447_v13, %v463_v14  ;;  %v8646_v13 = vcombine.low %v543_v61, %v559_v62 }
 0x29f   : > { %7390 = vmatmul.mubr.bf16.gmra.mrb[8].mxu0 %v8438_v38  ;;  %6255 = vmatprep.mubr.bf16.mxu1 %v8455_v40  ;;  %v8566_v38 = vcombine.low %v455_v15, %v471_v16  ;;  %v8599_v40 = vcombine.high %v487_v31, %v503_v32  ;;  %v567_v0 = vld [vmem:[%s11148_s16 + $0x9e8] sm:$0xff] }
 0x2a0   : > { %6345 = vmatpush1.bf16.msra.mxu1 %v10547_v39  ;;  %7399 = vmatprep.mubr.bf16.mxu0 %v8471_v42  ;;  %v8583_v39 = vcombine.high %v479_v29, %v495_v30  ;;  %v10598_v42 = vld [vmem:[%s11090_s12 + $0xec0] ss:$8 sps:$4 sm:$0xff]  }
 0x2a1   : > { %7489 = vmatpush1.bf16.msra.mxu0 %v10550_v41  ;;  %6346 = vmatprep.subr.bf16.mxu1 %v10555_v43  ;;  %v10595_v41 = vld [vmem:[%s11090_s12 + $0x6c0] ss:$8 sps:$4 sm:$0xff]   ;;  %v10603_v43 = vld [vmem:[%s11090_s12 + $0x6d4] ss:$8 sps:$4 sm:$0xff]  }
 0x2a2   : > { %7490 = vmatprep.subr.bf16.mxu0 %v10558_v44  ;;  %v10606_v44 = vld [vmem:[%s11090_s12 + $0xed4] ss:$8 sps:$4 sm:$0xff]  }
 0x2a4   : > { %6347 = vmatpush1.bf16.msra.mxu1 %v10553_v45  ;;  %v511_v45 = vld [vmem:[%s11148_s16 + $0x828] sm:$0xff] }
 0x2a5   : > { %7491 = vmatpush1.bf16.msra.mxu0 %v10556_v46  ;;  %6348 = vmatprep.subr.bf16.mxu1 %v10561_v51  ;;  %v527_v46 = vld [vmem:[%s11148_s16 + $0x8a8] sm:$0xff] }
 0x2a6   : > { %7492 = vmatprep.subr.bf16.mxu0 %v10564_v52  ;;  %6256 = vmatmul.mubr.bf16.gmra.mrb[12].mxu1 %v8454_v53  ;;  %v10609_v51 = vld [vmem:[%s11090_s12 + $0x6e4] ss:$8 sps:$4 sm:$0xff]   ;;  %v8582_v53 = vcombine.low %v479_v29, %v495_v30  ;;  %v296_v29 = vld [vmem:[%s11148_s16 + $0x170] sm:$0xff] }
 0x2a7   : > { %7400 = vmatmul.mubr.bf16.gmra.mrb[12].mxu0 %v8470_v54  ;;  %6265 = vmatprep.mubr.bf16.mxu1 %v8487_v55  ;;  %v10612_v52 = vld [vmem:[%s11090_s12 + $0xee4] ss:$8 sps:$4 sm:$0xff]   ;;  %v8598_v54 = vcombine.low %v487_v31, %v503_v32  ;;  %v8615_v55 = vcombine.high %v511_v45, %v527_v46  ;;  %v312_v30 = vld [vmem:[%s11148_s16 + $0x1f0] sm:$0xff]  ;;  %v10619_v31 = vld [vmem:[%s11090_s12 + $0x700] ss:$8 sps:$4 sm:$0xff]  }
 0x2a8   : > { %7409 = vmatprep.mubr.bf16.mxu0 %v8503_v56  ;;  %6349 = vmatpush1.bf16.msra.mxu1 %v10559_v57  ;;  %v8631_v56 = vcombine.high %v519_v47, %v535_v48  ;;  %v10607_v57 = vld [vmem:[%s11090_s12 + $0x6e0] ss:$8 sps:$4 sm:$0xff]  }
 0x2a9   : > { %7493 = vmatpush1.bf16.msra.mxu0 %v10562_v58  ;;  %6350 = vmatprep.subr.bf16.mxu1 %v10567_v59  ;;  %v10610_v58 = vld [vmem:[%s11090_s12 + $0xee0] ss:$8 sps:$4 sm:$0xff]   ;;  %v10615_v59 = vld [vmem:[%s11090_s12 + $0x6f4] ss:$8 sps:$4 sm:$0xff]  }
 0x2aa   : > { %7494 = vmatprep.subr.bf16.mxu0 %v10570_v60  ;;  %v10618_v60 = vld [vmem:[%s11090_s12 + $0xef4] ss:$8 sps:$4 sm:$0xff]   ;;  %v10622_v32 = vld [vmem:[%s11090_s12 + $0xf00] ss:$8 sps:$4 sm:$0xff]  }
 0x2ac   : > { %6351 = vmatpush1.bf16.msra.mxu1 %v10565_v63  ;;  %v551_v63 = vld [vmem:[%s11148_s16 + $0x968] sm:$0xff] }
 0x2ad   : > { %7495 = vmatpush1.bf16.msra.mxu0 %v10568_v2  ;;  %6352 = vmatprep.subr.bf16.mxu1 %v10573_v3  ;;  %v10616_v2 = vld [vmem:[%s11090_s12 + $0xef0] ss:$8 sps:$4 sm:$0xff]   ;;  %v10621_v3 = vld [vmem:[%s11090_s12 + $0x704] ss:$8 sps:$4 sm:$0xff]   ;;  %v8662_v14 = vcombine.low %v551_v63, %v567_v0 }
 0x2ae   : > { %7496 = vmatprep.subr.bf16.mxu0 %v10576_v4  ;;  %6266 = vmatmul.mubr.bf16.gmra.mrb[16].mxu1 %v8486_v5  ;;  %v10624_v4 = vld [vmem:[%s11090_s12 + $0xf04] ss:$8 sps:$4 sm:$0xff]   ;;  %v8614_v5 = vcombine.low %v511_v45, %v527_v46  ;;  %v8408_v46 = vcombine.low %v296_v29, %v312_v30 }
 0x2af   : > { %7410 = vmatmul.mubr.bf16.gmra.mrb[16].mxu0 %v8502_v6  ;;  %6275 = vmatprep.mubr.bf16.mxu1 %v8519_v7  ;;  %v8630_v6 = vcombine.low %v519_v47, %v535_v48  ;;  %v8647_v7 = vcombine.high %v543_v61, %v559_v62  ;;  %v10631_v47 = vld [vmem:[%s11090_s12 + $0x720] ss:$8 sps:$4 sm:$0xff]  }
 0x2b0   : > { %7419 = vmatprep.mubr.bf16.mxu0 %v8535_v8  ;;  %6353 = vmatpush1.bf16.msra.mxu1 %v10571_v9  ;;  %v8663_v8 = vcombine.high %v551_v63, %v567_v0  ;;  %v575_v9 = vld [vmem:[%s11148_s16 + $0xa28] sm:$0xff] }
 0x2b1   : > { %7497 = vmatpush1.bf16.msra.mxu0 %v10574_v10  ;;  %6354 = vmatprep.subr.bf16.mxu1 %v10579_v11  ;;  %v591_v10 = vld [vmem:[%s11148_s16 + $0xaa8] sm:$0xff] }
 0x2b2   : > { %7498 = vmatprep.subr.bf16.mxu0 %v10582_v12  ;;  %v583_v11 = vld [vmem:[%s11148_s16 + $0xa68] sm:$0xff]  ;;  %v8679_v15 = vcombine.high %v575_v9, %v591_v10 }
 0x2b3   : > { %v599_v12 = vld [vmem:[%s11148_s16 + $0xae8] sm:$0xff] }
 0x2b4   : > { %6355 = vmatpush1.bf16.msra.mxu1 %v10577_v17  ;;  %v8695_v16 = vcombine.high %v583_v11, %v599_v12  ;;  %v256_v17 = vld [vmem:[%s11148_s16 + $0x30] sm:$0xff]  ;;  %v10634_v48 = vld [vmem:[%s11090_s12 + $0xf20] ss:$8 sps:$4 sm:$0xff]  }
 0x2b5   : > { %7499 = vmatpush1.bf16.msra.mxu0 %v10580_v18  ;;  %6356 = vmatprep.subr.bf16.mxu1 %v10585_v19  ;;  %v272_v18 = vld [vmem:[%s11148_s16 + $0xb0] sm:$0xff]  ;;  %v10643_v63 = vld [vmem:[%s11090_s12 + $0x740] ss:$8 sps:$4 sm:$0xff]  }
 0x2b6   : > { %7500 = vmatprep.subr.bf16.mxu0 %v10588_v20  ;;  %6276 = vmatmul.mubr.bf16.gmra.mrb[20].mxu1 %v8518_v21  ;;  %v264_v19 = vld [vmem:[%s11148_s16 + $0x70] sm:$0xff]  ;;  %v8678_v21 = vcombine.low %v575_v9, %v591_v10 }
 0x2b7   : > { %7420 = vmatmul.mubr.bf16.gmra.mrb[20].mxu0 %v8534_v22  ;;  %6285 = vmatprep.mubr.bf16.mxu1 %v8551_v23  ;;  %v280_v20 = vld [vmem:[%s11148_s16 + $0xf0] sm:$0xff]  ;;  %v8694_v22 = vcombine.low %v583_v11, %v599_v12  ;;  %v8361_v23 = vcombine.high %v256_v17, %v272_v18  ;;  %v10657_v11 = vld [vmem:[%s11090_s12 + $0x764] ss:$8 sps:$4 sm:$0xff]  }
 0x2b8   : > { %7429 = vmatprep.mubr.bf16.mxu0 %v8567_v24  ;;  %6357 = vmatpush1.bf16.msra.mxu1 %v10583_v25  ;;  %v8377_v24 = vcombine.high %v264_v19, %v280_v20  ;;  %v288_v25 = vld [vmem:[%s11148_s16 + $0x130] sm:$0xff]  ;;  %v10660_v12 = vld [vmem:[%s11090_s12 + $0xf64] ss:$8 sps:$4 sm:$0xff]  }
 0x2b9   : > { %7501 = vmatpush1.bf16.msra.mxu0 %v10586_v26  ;;  %6358 = vmatprep.subr.bf16.mxu1 %v10591_v27  ;;  %v8360_v26 = vcombine.low %v256_v17, %v272_v18  ;;  %v8376_v27 = vcombine.low %v264_v19, %v280_v20  ;;  %v392_v9 = vld [vmem:[%s11148_s16 + $0x470] sm:$0xff]  ;;  %v10655_v17 = vld [vmem:[%s11090_s12 + $0x760] ss:$8 sps:$4 sm:$0xff]  }
 0x2ba   : > { %7502 = vmatprep.subr.bf16.mxu0 %v10594_v28  ;;  %v304_v28 = vld [vmem:[%s11148_s16 + $0x1b0] sm:$0xff]  ;;  %v10658_v18 = vld [vmem:[%s11090_s12 + $0xf60] ss:$8 sps:$4 sm:$0xff]  }
 0x2bb   : > { %v8392_v45 = vcombine.low %v288_v25, %v304_v28  ;;  %v408_v10 = vld [vmem:[%s11148_s16 + $0x4f0] sm:$0xff] }
 0x2bc   : > { %6359 = vmatpush1.bf16.msra.mxu1 %v10589_v33  ;;  %v10627_v33 = vld [vmem:[%s11090_s12 + $0x714] ss:$8 sps:$4 sm:$0xff]  }
 0x2bd   : > { %7503 = vmatpush1.bf16.msra.mxu0 %v10592_v34  ;;  %6360 = vmatprep.subr.bf16.mxu1 %v10597_v35  ;;  %v10630_v34 = vld [vmem:[%s11090_s12 + $0xf14] ss:$8 sps:$4 sm:$0xff]   ;;  %v8393_v35 = vcombine.high %v288_v25, %v304_v28  ;;  %v10672_v28 = vld [vmem:[%s11090_s12 + $0xf84] ss:$8 sps:$4 sm:$0xff]  }
 0x2be   : > { %7504 = vmatprep.subr.bf16.mxu0 %v10600_v36  ;;  %6286 = vmatmul.mubr.bf16.gmra.mrb[24].mxu1 %v8550_v37  ;;  %v8409_v36 = vcombine.high %v296_v29, %v312_v30  ;;  %v10625_v37 = vld [vmem:[%s11090_s12 + $0x710] ss:$8 sps:$4 sm:$0xff]   ;;  %v10663_v19 = vld [vmem:[%s11090_s12 + $0x774] ss:$8 sps:$4 sm:$0xff]   ;;  %v8504_v30 = vcombine.low %v392_v9, %v408_v10 }
 0x2bf   : > { %7430 = vmatmul.mubr.bf16.gmra.mrb[24].mxu0 %v8566_v38  ;;  %6295 = vmatprep.mubr.bf16.mxu1 %v8583_v39  ;;  %v10628_v38 = vld [vmem:[%s11090_s12 + $0xf10] ss:$8 sps:$4 sm:$0xff]   ;;  %v10633_v39 = vld [vmem:[%s11090_s12 + $0x724] ss:$8 sps:$4 sm:$0xff]   ;;  %v10666_v20 = vld [vmem:[%s11090_s12 + $0xf74] ss:$8 sps:$4 sm:$0xff]  }
 0x2c0   : > { %7439 = vmatprep.mubr.bf16.mxu0 %v8599_v40  ;;  %6361 = vmatpush1.bf16.msra.mxu1 %v10595_v41  ;;  %v10636_v40 = vld [vmem:[%s11090_s12 + $0xf24] ss:$8 sps:$4 sm:$0xff]   ;;  %v320_v41 = vld [vmem:[%s11148_s16 + $0x230] sm:$0xff] }
 0x2c1   : > { %7505 = vmatpush1.bf16.msra.mxu0 %v10598_v42  ;;  %6362 = vmatprep.subr.bf16.mxu1 %v10603_v43  ;;  %v336_v42 = vld [vmem:[%s11148_s16 + $0x2b0] sm:$0xff] }
 0x2c2   : > { %7506 = vmatprep.subr.bf16.mxu0 %v10606_v44  ;;  %v328_v43 = vld [vmem:[%s11148_s16 + $0x270] sm:$0xff]  ;;  %v8424_v61 = vcombine.low %v320_v41, %v336_v42 }
 0x2c3   : > { %v344_v44 = vld [vmem:[%s11148_s16 + $0x2f0] sm:$0xff] }
 0x2c4   : > { %6363 = vmatpush1.bf16.msra.mxu1 %v10601_v49  ;;  %v8425_v49 = vcombine.high %v320_v41, %v336_v42  ;;  %v8440_v62 = vcombine.low %v328_v43, %v344_v44  ;;  %v440_v25 = vld [vmem:[%s11148_s16 + $0x5f0] sm:$0xff] }
 0x2c5   : > { %7507 = vmatpush1.bf16.msra.mxu0 %v10604_v50  ;;  %6364 = vmatprep.subr.bf16.mxu1 %v10609_v51  ;;  %v8441_v50 = vcombine.high %v328_v43, %v344_v44  ;;  %v10639_v51 = vld [vmem:[%s11090_s12 + $0x734] ss:$8 sps:$4 sm:$0xff]   ;;  %v10673_v41 = vld [vmem:[%s11090_s12 + $0x790] ss:$8 sps:$4 sm:$0xff]   ;;  %v10681_v43 = vld [vmem:[%s11090_s12 + $0x7a4] ss:$8 sps:$4 sm:$0xff]  }
 0x2c6   : > { %7508 = vmatprep.subr.bf16.mxu0 %v10612_v52  ;;  %6296 = vmatmul.mubr.bf16.gmra.mrb[28].mxu1 %v8582_v53  ;;  %v10642_v52 = vld [vmem:[%s11090_s12 + $0xf34] ss:$8 sps:$4 sm:$0xff]   ;;  %v10637_v53 = vld [vmem:[%s11090_s12 + $0x730] ss:$8 sps:$4 sm:$0xff]   ;;  %v10684_v44 = vld [vmem:[%s11090_s12 + $0xfa4] ss:$8 sps:$4 sm:$0xff]  }
 0x2c7   : > { %7440 = vmatmul.mubr.bf16.gmra.mrb[28].mxu0 %v8598_v54  ;;  %6305 = vmatprep.mubr.bf16.mxu1 %v8615_v55  ;;  %v10640_v54 = vld [vmem:[%s11090_s12 + $0xf30] ss:$8 sps:$4 sm:$0xff]   ;;  %v10645_v55 = vld [vmem:[%s11090_s12 + $0x744] ss:$8 sps:$4 sm:$0xff]  }
 0x2c8   : > { %7449 = vmatprep.mubr.bf16.mxu0 %v8631_v56  ;;  %6365 = vmatpush1.bf16.msra.mxu1 %v10607_v57  ;;  %v10648_v56 = vld [vmem:[%s11090_s12 + $0xf44] ss:$8 sps:$4 sm:$0xff]   ;;  %v352_v57 = vld [vmem:[%s11148_s16 + $0x330] sm:$0xff] }
 0x2c9   : > { %7509 = vmatpush1.bf16.msra.mxu0 %v10610_v58  ;;  %6366 = vmatprep.subr.bf16.mxu1 %v10615_v59  ;;  %v368_v58 = vld [vmem:[%s11148_s16 + $0x3b0] sm:$0xff] }
 0x2ca   : > { %7510 = vmatprep.subr.bf16.mxu0 %v10618_v60  ;;  %v360_v59 = vld [vmem:[%s11148_s16 + $0x370] sm:$0xff]  ;;  %v8457_v0 = vcombine.high %v352_v57, %v368_v58 }
 0x2cb   : > { %v376_v60 = vld [vmem:[%s11148_s16 + $0x3f0] sm:$0xff] }
 0x2cc   : > { %6367 = vmatpush1.bf16.msra.mxu1 %v10613_v1  ;;  %v10646_v1 = vld [vmem:[%s11090_s12 + $0xf40] ss:$8 sps:$4 sm:$0xff]   ;;  %v10676_v42 = vld [vmem:[%s11090_s12 + $0xf90] ss:$8 sps:$4 sm:$0xff]  }
 0x2cd   : > { %7511 = vmatpush1.bf16.msra.mxu0 %v10616_v2  ;;  %6479 = vmatprep.subr.bf16.mxu1 %v10621_v3  ;;  %v8473_v2 = vcombine.high %v360_v59, %v376_v60  ;;  %v10651_v3 = vld [vmem:[%s11090_s12 + $0x754] ss:$8 sps:$4 sm:$0xff]  }
 0x2ce   : > { %7623 = vmatprep.subr.bf16.mxu0 %v10624_v4  ;;  %6306 = vmatmul.mubr.bf16.gmra.mrb[32].mxu1 %v8614_v5  ;;  %v10654_v4 = vld [vmem:[%s11090_s12 + $0xf54] ss:$8 sps:$4 sm:$0xff]   ;;  %v10649_v5 = vld [vmem:[%s11090_s12 + $0x750] ss:$8 sps:$4 sm:$0xff]  }
 0x2cf   : > { %7450 = vmatmul.mubr.bf16.gmra.mrb[32].mxu0 %v8630_v6  ;;  %6315 = vmatprep.mubr.bf16.mxu1 %v8647_v7  ;;  %v10652_v6 = vld [vmem:[%s11090_s12 + $0xf50] ss:$8 sps:$4 sm:$0xff]  }
 0x2d0   : > { %7459 = vmatprep.mubr.bf16.mxu0 %v8663_v8  ;;  %v384_v7 = vld [vmem:[%s11148_s16 + $0x430] sm:$0xff] }
 0x2d1   : > { %v400_v8 = vld [vmem:[%s11148_s16 + $0x4b0] sm:$0xff] }
 0x2d2   : > { %v8488_v29 = vcombine.low %v384_v7, %v400_v8 }
 0x2d6   : > { %6316 = vmatmul.mubr.bf16.gmra.mrb[36].mxu1 %v8646_v13  ;;  %v8456_v13 = vcombine.low %v352_v57, %v368_v58  ;;  %v10685_v57 = vld [vmem:[%s11090_s12 + $0x7b0] ss:$8 sps:$4 sm:$0xff]  }
 0x2d7   : > { %7460 = vmatmul.mubr.bf16.gmra.mrb[36].mxu0 %v8662_v14  ;;  %6325 = vmatprep.mubr.bf16.mxu1 %v8679_v15  ;;  %v8472_v14 = vcombine.low %v360_v59, %v376_v60  ;;  %v8489_v15 = vcombine.high %v384_v7, %v400_v8  ;;  %v10688_v58 = vld [vmem:[%s11090_s12 + $0xfb0] ss:$8 sps:$4 sm:$0xff]   ;;  %v10693_v59 = vld [vmem:[%s11090_s12 + $0x7c4] ss:$8 sps:$4 sm:$0xff]  }
 0x2d8   : > { %7469 = vmatprep.mubr.bf16.mxu0 %v8695_v16  ;;  %v8505_v16 = vcombine.high %v392_v9, %v408_v10  ;;  %v10696_v60 = vld [vmem:[%s11090_s12 + $0xfc4] ss:$8 sps:$4 sm:$0xff]   ;;  %v520_v7 = vld [vmem:[%s11148_s16 + $0x870] sm:$0xff] }
 0x2d9   : > { %v536_v8 = vld [vmem:[%s11148_s16 + $0x8f0] sm:$0xff] }
 0x2da   : > { %v10697_v9 = vld [vmem:[%s11090_s12 + $0x7d0] ss:$8 sps:$4 sm:$0xff]  }
 0x2db   : > { %v10700_v10 = vld [vmem:[%s11090_s12 + $0xfd0] ss:$8 sps:$4 sm:$0xff]  }
 0x2de   : > { %6326 = vmatmul.mubr.bf16.gmra.mrb[40].mxu1 %v8678_v21  ;;  %v416_v21 = vld [vmem:[%s11148_s16 + $0x530] sm:$0xff] }
 0x2df   : > { %7470 = vmatmul.mubr.bf16.gmra.mrb[40].mxu0 %v8694_v22  ;;  %6368 = vmatprep.mubr.bf16.mxu1 %v8361_v23  ;;  %v432_v22 = vld [vmem:[%s11148_s16 + $0x5b0] sm:$0xff] }
 0x2e0   : > { %7512 = vmatprep.mubr.bf16.mxu0 %v8377_v24  ;;  %v10661_v23 = vld [vmem:[%s11090_s12 + $0x770] ss:$8 sps:$4 sm:$0xff]  }
 0x2e1   : > { %v424_v24 = vld [vmem:[%s11148_s16 + $0x570] sm:$0xff] }
 0x2e6   : > { %6369 = vmatmul.mubr.bf16.vlgmr.msra.gmra.mrb[0].mxu1 %v8360_v26  ;;  %v10664_v26 = vld [vmem:[%s11090_s12 + $0xf70] ss:$8 sps:$4 sm:$0xff]  }
 0x2e7   : > { %7513 = vmatmul.mubr.bf16.vlgmr.msra.gmra.mrb[0].mxu0 %v8376_v27  ;;  %6480 = vmatpush1.bf16.msra.mxu1 %v10619_v31  ;;  %v10669_v27 = vld [vmem:[%s11090_s12 + $0x784] ss:$8 sps:$4 sm:$0xff]   ;;  %v8521_v31 = vcombine.high %v416_v21, %v432_v22 }
 0x2e8   : > { %7624 = vmatpush1.bf16.msra.mxu0 %v10622_v32  ;;  %6481 = vmatprep.subr.bf16.mxu1 %v10627_v33  ;;  %v8537_v32 = vcombine.high %v424_v24, %v440_v25  ;;  %v10667_v33 = vld [vmem:[%s11090_s12 + $0x780] ss:$8 sps:$4 sm:$0xff]  }
 0x2e9   : > { %7625 = vmatprep.subr.bf16.mxu0 %v10630_v34  ;;  %6378 = vmatprep.mubr.bf16.mxu1 %v8393_v35  ;;  %v10670_v34 = vld [vmem:[%s11090_s12 + $0xf80] ss:$8 sps:$4 sm:$0xff]   ;;  %v10675_v35 = vld [vmem:[%s11090_s12 + $0x794] ss:$8 sps:$4 sm:$0xff]  }
 0x2ea   : > { %7522 = vmatprep.mubr.bf16.mxu0 %v8409_v36  ;;  %v10678_v36 = vld [vmem:[%s11090_s12 + $0xf94] ss:$8 sps:$4 sm:$0xff]  }
 0x2eb   : > { %6482 = vmatpush1.bf16.msra.mxu1 %v10625_v37  ;;  %v448_v37 = vld [vmem:[%s11148_s16 + $0x630] sm:$0xff] }
 0x2ec   : > { %7626 = vmatpush1.bf16.msra.mxu0 %v10628_v38  ;;  %6483 = vmatprep.subr.bf16.mxu1 %v10633_v39  ;;  %v464_v38 = vld [vmem:[%s11148_s16 + $0x6b0] sm:$0xff] }
 0x2ed   : > { %7627 = vmatprep.subr.bf16.mxu0 %v10636_v40  ;;  %v456_v39 = vld [vmem:[%s11148_s16 + $0x670] sm:$0xff] }
 0x2ee   : > { %6379 = vmatmul.mubr.bf16.gmra.mrb[4].mxu1 %v8392_v45  ;;  %v472_v40 = vld [vmem:[%s11148_s16 + $0x6f0] sm:$0xff]  ;;  %v8520_v45 = vcombine.low %v416_v21, %v432_v22 }
 0x2ef   : > { %7523 = vmatmul.mubr.bf16.gmra.mrb[4].mxu0 %v8408_v46  ;;  %6484 = vmatpush1.bf16.msra.mxu1 %v10631_v47  ;;  %v8536_v46 = vcombine.low %v424_v24, %v440_v25  ;;  %v8553_v47 = vcombine.high %v448_v37, %v464_v38  ;;  %v544_v21 = vld [vmem:[%s11148_s16 + $0x930] sm:$0xff] }
 0x2f0   : > { %7628 = vmatpush1.bf16.msra.mxu0 %v10634_v48  ;;  %6388 = vmatprep.mubr.bf16.mxu1 %v8425_v49  ;;  %v8569_v48 = vcombine.high %v456_v39, %v472_v40  ;;  %v10679_v49 = vld [vmem:[%s11090_s12 + $0x7a0] ss:$8 sps:$4 sm:$0xff]   ;;  %v560_v22 = vld [vmem:[%s11148_s16 + $0x9b0] sm:$0xff] }
 0x2f1   : > { %7532 = vmatprep.mubr.bf16.mxu0 %v8441_v50  ;;  %6485 = vmatprep.subr.bf16.mxu1 %v10639_v51  ;;  %v10682_v50 = vld [vmem:[%s11090_s12 + $0xfa0] ss:$8 sps:$4 sm:$0xff]   ;;  %v10687_v51 = vld [vmem:[%s11090_s12 + $0x7b4] ss:$8 sps:$4 sm:$0xff]   ;;  %v10709_v25 = vld [vmem:[%s11090_s12 + $0x7f0] ss:$8 sps:$4 sm:$0xff]  }
 0x2f2   : > { %7629 = vmatprep.subr.bf16.mxu0 %v10642_v52  ;;  %v10690_v52 = vld [vmem:[%s11090_s12 + $0xfb4] ss:$8 sps:$4 sm:$0xff]  }
 0x2f3   : > { %6486 = vmatpush1.bf16.msra.mxu1 %v10637_v53  ;;  %v480_v53 = vld [vmem:[%s11148_s16 + $0x730] sm:$0xff] }
 0x2f4   : > { %7630 = vmatpush1.bf16.msra.mxu0 %v10640_v54  ;;  %6487 = vmatprep.subr.bf16.mxu1 %v10645_v55  ;;  %v496_v54 = vld [vmem:[%s11148_s16 + $0x7b0] sm:$0xff] }
 0x2f5   : > { %7631 = vmatprep.subr.bf16.mxu0 %v10648_v56  ;;  %v488_v55 = vld [vmem:[%s11148_s16 + $0x770] sm:$0xff] }
 0x2f6   : > { %6389 = vmatmul.mubr.bf16.gmra.mrb[8].mxu1 %v8424_v61  ;;  %v504_v56 = vld [vmem:[%s11148_s16 + $0x7f0] sm:$0xff]  ;;  %v8552_v61 = vcombine.low %v448_v37, %v464_v38 }
 0x2f7   : > { %7533 = vmatmul.mubr.bf16.gmra.mrb[8].mxu0 %v8440_v62  ;;  %6398 = vmatprep.mubr.bf16.mxu1 %v8457_v0  ;;  %v8568_v62 = vcombine.low %v456_v39, %v472_v40  ;;  %v8601_v0 = vcombine.high %v488_v55, %v504_v56  ;;  %v568_v24 = vld [vmem:[%s11148_s16 + $0x9f0] sm:$0xff]  ;;  %v257_v39 = vld [vmem:[%s11148_s16 + $0x38] sm:$0xff] }
 0x2f8   : > { %6488 = vmatpush1.bf16.msra.mxu1 %v10643_v63  ;;  %7542 = vmatprep.mubr.bf16.mxu0 %v8473_v2  ;;  %v8585_v63 = vcombine.high %v480_v53, %v496_v54  ;;  %v10694_v2 = vld [vmem:[%s11090_s12 + $0xfc0] ss:$8 sps:$4 sm:$0xff]   ;;  %v273_v40 = vld [vmem:[%s11148_s16 + $0xb8] sm:$0xff] }
 0x2f9   : > { %7632 = vmatpush1.bf16.msra.mxu0 %v10646_v1  ;;  %6489 = vmatprep.subr.bf16.mxu1 %v10651_v3  ;;  %v10691_v1 = vld [vmem:[%s11090_s12 + $0x7c0] ss:$8 sps:$4 sm:$0xff]   ;;  %v10699_v3 = vld [vmem:[%s11090_s12 + $0x7d4] ss:$8 sps:$4 sm:$0xff]  }
 0x2fa   : > { %7633 = vmatprep.subr.bf16.mxu0 %v10654_v4  ;;  %v10702_v4 = vld [vmem:[%s11090_s12 + $0xfd4] ss:$8 sps:$4 sm:$0xff]  }
 0x2fc   : > { %6490 = vmatpush1.bf16.msra.mxu1 %v10649_v5  ;;  %v512_v5 = vld [vmem:[%s11148_s16 + $0x830] sm:$0xff] }
 0x2fd   : > { %7634 = vmatpush1.bf16.msra.mxu0 %v10652_v6  ;;  %6491 = vmatprep.subr.bf16.mxu1 %v10657_v11  ;;  %v528_v6 = vld [vmem:[%s11148_s16 + $0x8b0] sm:$0xff]  ;;  %v10705_v11 = vld [vmem:[%s11090_s12 + $0x7e4] ss:$8 sps:$4 sm:$0xff]  }
 0x2fe   : > { %7635 = vmatprep.subr.bf16.mxu0 %v10660_v12  ;;  %6399 = vmatmul.mubr.bf16.gmra.mrb[12].mxu1 %v8456_v13  ;;  %v10708_v12 = vld [vmem:[%s11090_s12 + $0xfe4] ss:$8 sps:$4 sm:$0xff]   ;;  %v8584_v13 = vcombine.low %v480_v53, %v496_v54 }
 0x2ff   : > { %7543 = vmatmul.mubr.bf16.gmra.mrb[12].mxu0 %v8472_v14  ;;  %6408 = vmatprep.mubr.bf16.mxu1 %v8489_v15  ;;  %v8600_v14 = vcombine.low %v488_v55, %v504_v56  ;;  %v8617_v15 = vcombine.high %v512_v5, %v528_v6  ;;  %v321_v55 = vld [vmem:[%s11148_s16 + $0x238] sm:$0xff] }
 0x300   : > { %7552 = vmatprep.mubr.bf16.mxu0 %v8505_v16  ;;  %6492 = vmatpush1.bf16.msra.mxu1 %v10655_v17  ;;  %v8633_v16 = vcombine.high %v520_v7, %v536_v8  ;;  %v10703_v17 = vld [vmem:[%s11090_s12 + $0x7e0] ss:$8 sps:$4 sm:$0xff]   ;;  %v337_v56 = vld [vmem:[%s11148_s16 + $0x2b8] sm:$0xff] }
 0x301   : > { %7636 = vmatpush1.bf16.msra.mxu0 %v10658_v18  ;;  %6493 = vmatprep.subr.bf16.mxu1 %v10663_v19  ;;  %v10706_v18 = vld [vmem:[%s11090_s12 + $0xfe0] ss:$8 sps:$4 sm:$0xff]   ;;  %v10711_v19 = vld [vmem:[%s11090_s12 + $0x7f4] ss:$8 sps:$4 sm:$0xff]  }
 0x302   : > { %7637 = vmatprep.subr.bf16.mxu0 %v10666_v20  ;;  %v10714_v20 = vld [vmem:[%s11090_s12 + $0xff4] ss:$8 sps:$4 sm:$0xff]  }
 0x304   : > { %6494 = vmatpush1.bf16.msra.mxu1 %v10661_v23  ;;  %v552_v23 = vld [vmem:[%s11148_s16 + $0x970] sm:$0xff] }
 0x305   : > { %7638 = vmatpush1.bf16.msra.mxu0 %v10664_v26  ;;  %6495 = vmatprep.subr.bf16.mxu1 %v10669_v27  ;;  %v10712_v26 = vld [vmem:[%s11090_s12 + $0xff0] ss:$8 sps:$4 sm:$0xff]   ;;  %v8616_v27 = vcombine.low %v512_v5, %v528_v6 }
 0x306   : > { %7639 = vmatprep.subr.bf16.mxu0 %v10672_v28  ;;  %6409 = vmatmul.mubr.bf16.gmra.mrb[16].mxu1 %v8488_v29  ;;  %v8632_v28 = vcombine.low %v520_v7, %v536_v8  ;;  %v8649_v29 = vcombine.high %v544_v21, %v560_v22  ;;  %v385_v7 = vld [vmem:[%s11148_s16 + $0x438] sm:$0xff] }
 0x307   : > { %7553 = vmatmul.mubr.bf16.gmra.mrb[16].mxu0 %v8504_v30  ;;  %6418 = vmatprep.mubr.bf16.mxu1 %v8521_v31  ;;  %v8665_v30 = vcombine.high %v552_v23, %v568_v24  ;;  %v576_v31 = vld [vmem:[%s11148_s16 + $0xa30] sm:$0xff]  ;;  %v401_v8 = vld [vmem:[%s11148_s16 + $0x4b8] sm:$0xff] }
 0x308   : > { %7562 = vmatprep.mubr.bf16.mxu0 %v8537_v32  ;;  %6496 = vmatpush1.bf16.msra.mxu1 %v10667_v33  ;;  %v592_v32 = vld [vmem:[%s11148_s16 + $0xab0] sm:$0xff] }
 0x309   : > { %7640 = vmatpush1.bf16.msra.mxu0 %v10670_v34  ;;  %6497 = vmatprep.subr.bf16.mxu1 %v10675_v35  ;;  %v584_v33 = vld [vmem:[%s11148_s16 + $0xa70] sm:$0xff]  ;;  %v8648_v35 = vcombine.low %v544_v21, %v560_v22  ;;  %v8681_v37 = vcombine.high %v576_v31, %v592_v32 }
 0x30a   : > { %7641 = vmatprep.subr.bf16.mxu0 %v10678_v36  ;;  %v600_v34 = vld [vmem:[%s11148_s16 + $0xaf0] sm:$0xff]  ;;  %v8664_v36 = vcombine.low %v552_v23, %v568_v24  ;;  %v449_v23 = vld [vmem:[%s11148_s16 + $0x638] sm:$0xff] }
 0x30b   : > { %v8697_v38 = vcombine.high %v584_v33, %v600_v34  ;;  %v465_v24 = vld [vmem:[%s11148_s16 + $0x6b8] sm:$0xff] }
 0x30c   : > { %6498 = vmatpush1.bf16.msra.mxu1 %v10673_v41  ;;  %v265_v41 = vld [vmem:[%s11148_s16 + $0x78] sm:$0xff] }
 0x30d   : > { %7642 = vmatpush1.bf16.msra.mxu0 %v10676_v42  ;;  %6499 = vmatprep.subr.bf16.mxu1 %v10681_v43  ;;  %v281_v42 = vld [vmem:[%s11148_s16 + $0xf8] sm:$0xff]  ;;  %v8680_v43 = vcombine.low %v576_v31, %v592_v32 }
 0x30e   : > { %7643 = vmatprep.subr.bf16.mxu0 %v10684_v44  ;;  %6419 = vmatmul.mubr.bf16.gmra.mrb[20].mxu1 %v8520_v45  ;;  %v8696_v44 = vcombine.low %v584_v33, %v600_v34  ;;  %v8363_v45 = vcombine.high %v257_v39, %v273_v40  ;;  %v481_v31 = vld [vmem:[%s11148_s16 + $0x738] sm:$0xff] }
 0x30f   : > { %7563 = vmatmul.mubr.bf16.gmra.mrb[20].mxu0 %v8536_v46  ;;  %6428 = vmatprep.mubr.bf16.mxu1 %v8553_v47  ;;  %v8379_v46 = vcombine.high %v265_v41, %v281_v42  ;;  %v289_v47 = vld [vmem:[%s11148_s16 + $0x138] sm:$0xff] }
 0x310   : > { %7572 = vmatprep.mubr.bf16.mxu0 %v8569_v48  ;;  %6500 = vmatpush1.bf16.msra.mxu1 %v10679_v49  ;;  %v305_v48 = vld [vmem:[%s11148_s16 + $0x1b8] sm:$0xff] }
 0x311   : > { %7644 = vmatpush1.bf16.msra.mxu0 %v10682_v50  ;;  %6501 = vmatprep.subr.bf16.mxu1 %v10687_v51  ;;  %v297_v49 = vld [vmem:[%s11148_s16 + $0x178] sm:$0xff]  ;;  %v8362_v51 = vcombine.low %v257_v39, %v273_v40  ;;  %v8395_v53 = vcombine.high %v289_v47, %v305_v48 }
 0x312   : > { %7645 = vmatprep.subr.bf16.mxu0 %v10690_v52  ;;  %v313_v50 = vld [vmem:[%s11148_s16 + $0x1f8] sm:$0xff]  ;;  %v8378_v52 = vcombine.low %v265_v41, %v281_v42 }
 0x313   : > { %v8411_v54 = vcombine.high %v297_v49, %v313_v50  ;;  %v497_v32 = vld [vmem:[%s11148_s16 + $0x7b8] sm:$0xff] }
 0x314   : > { %6502 = vmatpush1.bf16.msra.mxu1 %v10685_v57  ;;  %v329_v57 = vld [vmem:[%s11148_s16 + $0x278] sm:$0xff] }
 0x315   : > { %7646 = vmatpush1.bf16.msra.mxu0 %v10688_v58  ;;  %6503 = vmatprep.subr.bf16.mxu1 %v10693_v59  ;;  %v345_v58 = vld [vmem:[%s11148_s16 + $0x2f8] sm:$0xff]  ;;  %v8394_v59 = vcombine.low %v289_v47, %v305_v48 }
 0x316   : > { %7647 = vmatprep.subr.bf16.mxu0 %v10696_v60  ;;  %6429 = vmatmul.mubr.bf16.gmra.mrb[24].mxu1 %v8552_v61  ;;  %v8410_v60 = vcombine.low %v297_v49, %v313_v50  ;;  %v8427_v61 = vcombine.high %v321_v55, %v337_v56  ;;  %v489_v33 = vld [vmem:[%s11148_s16 + $0x778] sm:$0xff] }
 0x317   : > { %7573 = vmatmul.mubr.bf16.gmra.mrb[24].mxu0 %v8568_v62  ;;  %6438 = vmatprep.mubr.bf16.mxu1 %v8585_v63  ;;  %v8443_v62 = vcombine.high %v329_v57, %v345_v58  ;;  %v353_v63 = vld [vmem:[%s11148_s16 + $0x338] sm:$0xff] }
 0x318   : > { %7582 = vmatprep.mubr.bf16.mxu0 %v8601_v0  ;;  %6504 = vmatpush1.bf16.msra.mxu1 %v10691_v1  ;;  %v369_v0 = vld [vmem:[%s11148_s16 + $0x3b8] sm:$0xff] }
 0x319   : > { %7648 = vmatpush1.bf16.msra.mxu0 %v10694_v2  ;;  %6505 = vmatprep.subr.bf16.mxu1 %v10699_v3  ;;  %v361_v1 = vld [vmem:[%s11148_s16 + $0x378] sm:$0xff]  ;;  %v8426_v3 = vcombine.low %v321_v55, %v337_v56  ;;  %v8459_v5 = vcombine.high %v353_v63, %v369_v0 }
 0x31a   : > { %7649 = vmatprep.subr.bf16.mxu0 %v10702_v4  ;;  %v377_v2 = vld [vmem:[%s11148_s16 + $0x3f8] sm:$0xff]  ;;  %v8442_v4 = vcombine.low %v329_v57, %v345_v58 }
 0x31b   : > { %v8475_v6 = vcombine.high %v361_v1, %v377_v2  ;;  %v505_v34 = vld [vmem:[%s11148_s16 + $0x7f8] sm:$0xff] }
 0x31c   : > { %6506 = vmatpush1.bf16.msra.mxu1 %v10697_v9  ;;  %v393_v9 = vld [vmem:[%s11148_s16 + $0x478] sm:$0xff] }
 0x31d   : > { %7650 = vmatpush1.bf16.msra.mxu0 %v10700_v10  ;;  %6507 = vmatprep.subr.bf16.mxu1 %v10705_v11  ;;  %v409_v10 = vld [vmem:[%s11148_s16 + $0x4f8] sm:$0xff]  ;;  %v8458_v11 = vcombine.low %v353_v63, %v369_v0 }
 0x31e   : > { %7651 = vmatprep.subr.bf16.mxu0 %v10708_v12  ;;  %6439 = vmatmul.mubr.bf16.gmra.mrb[28].mxu1 %v8584_v13  ;;  %v8474_v12 = vcombine.low %v361_v1, %v377_v2  ;;  %v8491_v13 = vcombine.high %v385_v7, %v401_v8  ;;  %v513_v39 = vld [vmem:[%s11148_s16 + $0x838] sm:$0xff]  ;;  %v602_v2 = vld [vmem:[#allocation2] sm:$0xff] }
 0x31f   : > { %7583 = vmatmul.mubr.bf16.gmra.mrb[28].mxu0 %v8600_v14  ;;  %6448 = vmatprep.mubr.bf16.mxu1 %v8617_v15  ;;  %v8507_v14 = vcombine.high %v393_v9, %v409_v10  ;;  %v417_v15 = vld [vmem:[%s11148_s16 + $0x538] sm:$0xff] }
 0x320   : > { %7592 = vmatprep.mubr.bf16.mxu0 %v8633_v16  ;;  %6508 = vmatpush1.bf16.msra.mxu1 %v10703_v17  ;;  %v433_v16 = vld [vmem:[%s11148_s16 + $0x5b8] sm:$0xff] }
 0x321   : > { %7652 = vmatpush1.bf16.msra.mxu0 %v10706_v18  ;;  %6509 = vmatprep.subr.bf16.mxu1 %v10711_v19  ;;  %v425_v17 = vld [vmem:[%s11148_s16 + $0x578] sm:$0xff]  ;;  %v8490_v19 = vcombine.low %v385_v7, %v401_v8  ;;  %v8523_v21 = vcombine.high %v417_v15, %v433_v16 }
 0x322   : > { %7653 = vmatprep.subr.bf16.mxu0 %v10714_v20  ;;  %v441_v18 = vld [vmem:[%s11148_s16 + $0x5f8] sm:$0xff]  ;;  %v8506_v20 = vcombine.low %v393_v9, %v409_v10  ;;  %v604_v10 = vld [vmem:[#allocation2 + $0x10] sm:$0xff] }
 0x323   : > { %v8539_v22 = vcombine.high %v425_v17, %v441_v18  ;;  %v529_v40 = vld [vmem:[%s11148_s16 + $0x8b8] sm:$0xff] }
 0x324   : > { %6510 = vmatpush1.bf16.msra.mxu1 %v10709_v25  ;;  %v457_v25 = vld [vmem:[%s11148_s16 + $0x678] sm:$0xff] }
 0x325   : > { %7654 = vmatpush1.bf16.msra.mxu0 %v10712_v26  ;;  %v473_v26 = vld [vmem:[%s11148_s16 + $0x6f8] sm:$0xff] }
 0x326   : > { %6449 = vmatmul.mubr.bf16.gmra.mrb[32].mxu1 %v8616_v27  ;;  %v8522_v27 = vcombine.low %v417_v15, %v433_v16  ;;  %v521_v41 = vld [vmem:[%s11148_s16 + $0x878] sm:$0xff] }
 0x327   : > { %7593 = vmatmul.mubr.bf16.gmra.mrb[32].mxu0 %v8632_v28  ;;  %6458 = vmatprep.mubr.bf16.mxu1 %v8649_v29  ;;  %v8538_v28 = vcombine.low %v425_v17, %v441_v18  ;;  %v8555_v29 = vcombine.high %v449_v23, %v465_v24  ;;  %v537_v42 = vld [vmem:[%s11148_s16 + $0x8f8] sm:$0xff] }
 0x328   : > { %7602 = vmatprep.mubr.bf16.mxu0 %v8665_v30  ;;  %v8571_v30 = vcombine.high %v457_v25, %v473_v26  ;;  %v545_v47 = vld [vmem:[%s11148_s16 + $0x938] sm:$0xff] }
 0x329   : > { %v561_v48 = vld [vmem:[%s11148_s16 + $0x9b8] sm:$0xff] }
 0x32a   : > { %v553_v49 = vld [vmem:[%s11148_s16 + $0x978] sm:$0xff] }
 0x32b   : > { %v569_v50 = vld [vmem:[%s11148_s16 + $0x9f8] sm:$0xff] }
 0x32c   : > { %v577_v55 = vld [vmem:[%s11148_s16 + $0xa38] sm:$0xff] }
 0x32d   : > { %v593_v56 = vld [vmem:[%s11148_s16 + $0xab8] sm:$0xff] }
 0x32e   : > { %6459 = vmatmul.mubr.bf16.gmra.mrb[36].mxu1 %v8648_v35  ;;  %v8554_v35 = vcombine.low %v449_v23, %v465_v24  ;;  %v585_v57 = vld [vmem:[%s11148_s16 + $0xa78] sm:$0xff]  ;;  %v8682_v63 = vcombine.low %v577_v55, %v593_v56 }
 0x32f   : > { %7603 = vmatmul.mubr.bf16.gmra.mrb[36].mxu0 %v8664_v36  ;;  %6468 = vmatprep.mubr.bf16.mxu1 %v8681_v37  ;;  %v8570_v36 = vcombine.low %v457_v25, %v473_v26  ;;  %v8587_v37 = vcombine.high %v481_v31, %v497_v32  ;;  %v601_v58 = vld [vmem:[%s11148_s16 + $0xaf8] sm:$0xff]  ;;  %v607_v26 = vld [vmem:[#allocation2 + $0x28] sm:$0xff] }
 0x330   : > { %7612 = vmatprep.mubr.bf16.mxu0 %v8697_v38  ;;  %v8603_v38 = vcombine.high %v489_v33, %v505_v34  ;;  %v8698_v0 = vcombine.low %v585_v57, %v601_v58  ;;  %v605_v15 = vld [vmem:[#allocation2 + $0x18] sm:$0xff] }
 0x336   : > { %6469 = vmatmul.mubr.bf16.gmra.mrb[40].mxu1 %v8680_v43  ;;  %v8586_v43 = vcombine.low %v481_v31, %v497_v32 }
 0x337   : > { %7613 = vmatmul.mubr.bf16.gmra.mrb[40].mxu0 %v8696_v44  ;;  %6511 = vmatprep.mubr.bf16.mxu1 %v8363_v45  ;;  %v8602_v44 = vcombine.low %v489_v33, %v505_v34  ;;  %v8619_v45 = vcombine.high %v513_v39, %v529_v40 }
 0x338   : > { %7655 = vmatprep.mubr.bf16.mxu0 %v8379_v46  ;;  %v8635_v46 = vcombine.high %v521_v41, %v537_v42 }
 0x33e   : > { %6512 = vmatmul.mubr.bf16.vlgmr.msra.gmra.mrb[0].mxu1 %v8362_v51  ;;  %v8618_v51 = vcombine.low %v513_v39, %v529_v40 }
 0x33f   : > { %7656 = vmatmul.mubr.bf16.vlgmr.msra.gmra.mrb[0].mxu0 %v8378_v52  ;;  %6521 = vmatprep.mubr.bf16.mxu1 %v8395_v53  ;;  %v8634_v52 = vcombine.low %v521_v41, %v537_v42  ;;  %v8651_v53 = vcombine.high %v545_v47, %v561_v48  ;;  %v610_v42 = vld [vmem:[#allocation2 + $0x40] sm:$0xff] }
 0x340   : > { %7665 = vmatprep.mubr.bf16.mxu0 %v8411_v54  ;;  %v8667_v54 = vcombine.high %v553_v49, %v569_v50 }
 0x346   : > { %6522 = vmatmul.mubr.bf16.gmra.mrb[4].mxu1 %v8394_v59  ;;  %v8650_v59 = vcombine.low %v545_v47, %v561_v48 }
 0x347   : > { %7666 = vmatmul.mubr.bf16.gmra.mrb[4].mxu0 %v8410_v60  ;;  %6531 = vmatprep.mubr.bf16.mxu1 %v8427_v61  ;;  %v8666_v60 = vcombine.low %v553_v49, %v569_v50  ;;  %v8683_v61 = vcombine.high %v577_v55, %v593_v56  ;;  %v612_v50 = vld [vmem:[#allocation2 + $0x50] sm:$0xff]  ;;  %v613_v55 = vld [vmem:[#allocation2 + $0x58] sm:$0xff] }
 0x348   : > { %7675 = vmatprep.mubr.bf16.mxu0 %v8443_v62  ;;  %v8699_v62 = vcombine.high %v585_v57, %v601_v58 }
 0x34e   : > { %6532 = vmatmul.mubr.bf16.gmra.mrb[8].mxu1 %v8426_v3 }
 0x34f   : > { %7676 = vmatmul.mubr.bf16.gmra.mrb[8].mxu0 %v8442_v4  ;;  %6541 = vmatprep.mubr.bf16.mxu1 %v8459_v5 }
 0x350   : > { %7685 = vmatprep.mubr.bf16.mxu0 %v8475_v6  ;;  %v603_v6 = vld [vmem:[#allocation2 + $0x8] sm:$0xff] }
 0x356   : > { %6542 = vmatmul.mubr.bf16.gmra.mrb[12].mxu1 %v8458_v11 }
 0x357   : > { %7686 = vmatmul.mubr.bf16.gmra.mrb[12].mxu0 %v8474_v12  ;;  %6551 = vmatprep.mubr.bf16.mxu1 %v8491_v13 }
 0x358   : > { %7695 = vmatprep.mubr.bf16.mxu0 %v8507_v14 }
 0x35e   : > { %6552 = vmatmul.mubr.bf16.gmra.mrb[16].mxu1 %v8490_v19 }
 0x35f   : > { %7696 = vmatmul.mubr.bf16.gmra.mrb[16].mxu0 %v8506_v20  ;;  %6561 = vmatprep.mubr.bf16.mxu1 %v8523_v21 }
 0x360   : > { %7705 = vmatprep.mubr.bf16.mxu0 %v8539_v22  ;;  %v606_v22 = vld [vmem:[#allocation2 + $0x20] sm:$0xff] }
 0x366   : > { %6562 = vmatmul.mubr.bf16.gmra.mrb[20].mxu1 %v8522_v27 }
 0x367   : > { %7706 = vmatmul.mubr.bf16.gmra.mrb[20].mxu0 %v8538_v28  ;;  %6571 = vmatprep.mubr.bf16.mxu1 %v8555_v29 }
 0x368   : > { %7715 = vmatprep.mubr.bf16.mxu0 %v8571_v30  ;;  %v608_v30 = vld [vmem:[#allocation2 + $0x30] sm:$0xff] }
 0x36e   : > { %6572 = vmatmul.mubr.bf16.gmra.mrb[24].mxu1 %v8554_v35  ;;  %v609_v35 = vld [vmem:[#allocation2 + $0x38] sm:$0xff] }
 0x36f   : > { %7716 = vmatmul.mubr.bf16.gmra.mrb[24].mxu0 %v8570_v36  ;;  %6581 = vmatprep.mubr.bf16.mxu1 %v8587_v37 }
 0x370   : > { %7725 = vmatprep.mubr.bf16.mxu0 %v8603_v38 }
 0x376   : > { %6582 = vmatmul.mubr.bf16.gmra.mrb[28].mxu1 %v8586_v43 }
 0x377   : > { %7726 = vmatmul.mubr.bf16.gmra.mrb[28].mxu0 %v8602_v44  ;;  %6591 = vmatprep.mubr.bf16.mxu1 %v8619_v45 }
 0x378   : > { %7735 = vmatprep.mubr.bf16.mxu0 %v8635_v46  ;;  %v611_v46 = vld [vmem:[#allocation2 + $0x48] sm:$0xff] }
 0x37e   : > { %6592 = vmatmul.mubr.bf16.gmra.mrb[32].mxu1 %v8618_v51 }
 0x37f   : > { %7736 = vmatmul.mubr.bf16.gmra.mrb[32].mxu0 %v8634_v52  ;;  %6601 = vmatprep.mubr.bf16.mxu1 %v8651_v53 }
 0x380   : > { %7745 = vmatprep.mubr.bf16.mxu0 %v8667_v54 }
 0x386   : > { %6602 = vmatmul.mubr.bf16.gmra.mrb[36].mxu1 %v8650_v59 }
 0x387   : > { %7746 = vmatmul.mubr.bf16.gmra.mrb[36].mxu0 %v8666_v60  ;;  %6611 = vmatprep.mubr.bf16.mxu1 %v8683_v61 }
 0x388   : > { %7755 = vmatprep.mubr.bf16.mxu0 %v8699_v62  ;;  %v614_v62 = vld [vmem:[#allocation2 + $0x60] sm:$0xff] }
 0x38e   : > { %6612 = vmatmul.mubr.bf16.gmra.mrb[40].mxu1 %v8682_v63 }
 0x38f   : > { %7756 = vmatmul.mubr.bf16.gmra.mrb[40].mxu0 %v8698_v0 }
 0x411   : > { %v6513_v1 = vpop.f32.mrb[0].mxu1 }
 0x412   : > { %v7657_v3 = vpop.f32.mrb[0].mxu0  ;;  %v6515_v5 = vpop.f32.mrb[1].mxu1 }
 0x413   : > { %v9219_v4 = vadd.f32 %v7657_v3, %v6513_v1  ;;  %v7659_v7 = vpop.f32.mrb[1].mxu0  ;;  %v6517_v9 = vpop.f32.mrb[2].mxu1 }
 0x414   : > { %v9220_v8 = vadd.f32 %v7659_v7, %v6515_v5  ;;  %v7661_v11 = vpop.f32.mrb[2].mxu0  ;;  %v6519_v14 = vpop.f32.mrb[3].mxu1 }
 0x415   : > { %v7766_v12 = vadd.f32 %v9219_v4, %v602_v2  ;;  %v9221_v13 = vadd.f32 %v7661_v11, %v6517_v9  ;;  %v7663_v16 = vpop.f32.mrb[3].mxu0  ;;  %v615_v2 = vld [vmem:[#allocation2 + $0x68] sm:$0xff]  ;;  %v617_v11 = vld [vmem:[#allocation2 + $0x78] sm:$0xff] }
 0x416   : > { %v7767_v17 = vadd.f32 %v9220_v8, %v603_v6  ;;  %v9222_v18 = vadd.f32 %v7663_v16, %v6519_v14  ;;  %v616_v6 = vld [vmem:[#allocation2 + $0x70] sm:$0xff] }
 0x417   : > { %7810 = vst [vmem:[#allocation2] sm:$0xff] %v7766_v12  ;;  %v7768_v19 = vadd.f32 %v9221_v13, %v604_v10 }
 0x418   : > { %7811 = vst [vmem:[#allocation2 + $0x8] sm:$0xff] %v7767_v17  ;;  %v7769_v20 = vadd.f32 %v9222_v18, %v605_v15  ;;  %v618_v18 = vld [vmem:[#allocation2 + $0x80] sm:$0xff] }
 0x419   : > { %7812 = vst [vmem:[#allocation2 + $0x10] sm:$0xff] %v7768_v19  ;;  %v6523_v21 = vpop.f32.mrb[4].mxu1 }
 0x41a   : > { %7813 = vst [vmem:[#allocation2 + $0x18] sm:$0xff] %v7769_v20  ;;  %v7667_v23 = vpop.f32.mrb[4].mxu0  ;;  %v6525_v25 = vpop.f32.mrb[5].mxu1 }
 0x41b   : > { %v9223_v24 = vadd.f32 %v7667_v23, %v6523_v21  ;;  %v7669_v27 = vpop.f32.mrb[5].mxu0  ;;  %v6527_v29 = vpop.f32.mrb[6].mxu1 }
 0x41c   : > { %v9224_v28 = vadd.f32 %v7669_v27, %v6525_v25  ;;  %v7671_v31 = vpop.f32.mrb[6].mxu0  ;;  %v6529_v34 = vpop.f32.mrb[7].mxu1 }
 0x41d   : > { %v7770_v32 = vadd.f32 %v9223_v24, %v606_v22  ;;  %v9225_v33 = vadd.f32 %v7671_v31, %v6527_v29  ;;  %v7673_v36 = vpop.f32.mrb[7].mxu0  ;;  %v619_v22 = vld [vmem:[#allocation2 + $0x88] sm:$0xff]  ;;  %v621_v31 = vld [vmem:[#allocation2 + $0x98] sm:$0xff] }
 0x41e   : > { %v7771_v37 = vadd.f32 %v9224_v28, %v607_v26  ;;  %v9226_v38 = vadd.f32 %v7673_v36, %v6529_v34  ;;  %v620_v26 = vld [vmem:[#allocation2 + $0x90] sm:$0xff] }
 0x41f   : > { %7814 = vst [vmem:[#allocation2 + $0x20] sm:$0xff] %v7770_v32  ;;  %v7772_v39 = vadd.f32 %v9225_v33, %v608_v30 }
 0x420   : > { %7815 = vst [vmem:[#allocation2 + $0x28] sm:$0xff] %v7771_v37  ;;  %v7773_v40 = vadd.f32 %v9226_v38, %v609_v35  ;;  %v622_v38 = vld [vmem:[#allocation2 + $0xa0] sm:$0xff] }
 0x421   : > { %7816 = vst [vmem:[#allocation2 + $0x30] sm:$0xff] %v7772_v39  ;;  %v6533_v41 = vpop.f32.mrb[8].mxu1 }
 0x422   : > { %7817 = vst [vmem:[#allocation2 + $0x38] sm:$0xff] %v7773_v40  ;;  %v7677_v43 = vpop.f32.mrb[8].mxu0  ;;  %v6535_v45 = vpop.f32.mrb[9].mxu1 }
 0x423   : > { %v9227_v44 = vadd.f32 %v7677_v43, %v6533_v41  ;;  %v7679_v47 = vpop.f32.mrb[9].mxu0  ;;  %v6537_v49 = vpop.f32.mrb[10].mxu1 }
 0x424   : > { %v9228_v48 = vadd.f32 %v7679_v47, %v6535_v45  ;;  %v7681_v51 = vpop.f32.mrb[10].mxu0  ;;  %v6539_v54 = vpop.f32.mrb[11].mxu1 }
 0x425   : > { %v7774_v52 = vadd.f32 %v9227_v44, %v610_v42  ;;  %v9229_v53 = vadd.f32 %v7681_v51, %v6537_v49  ;;  %v7683_v56 = vpop.f32.mrb[11].mxu0  ;;  %v623_v42 = vld [vmem:[#allocation2 + $0xa8] sm:$0xff]  ;;  %v625_v51 = vld [vmem:[#allocation2 + $0xb8] sm:$0xff] }
 0x426   : > { %v7775_v57 = vadd.f32 %v9228_v48, %v611_v46  ;;  %v9230_v58 = vadd.f32 %v7683_v56, %v6539_v54  ;;  %v624_v46 = vld [vmem:[#allocation2 + $0xb0] sm:$0xff] }
 0x427   : > { %7818 = vst [vmem:[#allocation2 + $0x40] sm:$0xff] %v7774_v52  ;;  %v7776_v59 = vadd.f32 %v9229_v53, %v612_v50 }
 0x428   : > { %7819 = vst [vmem:[#allocation2 + $0x48] sm:$0xff] %v7775_v57  ;;  %v7777_v60 = vadd.f32 %v9230_v58, %v613_v55  ;;  %v626_v58 = vld [vmem:[#allocation2 + $0xc0] sm:$0xff] }
 0x429   : > { %7820 = vst [vmem:[#allocation2 + $0x50] sm:$0xff] %v7776_v59  ;;  %v6543_v61 = vpop.f32.mrb[12].mxu1 }
 0x42a   : > { %7821 = vst [vmem:[#allocation2 + $0x58] sm:$0xff] %v7777_v60  ;;  %v7687_v63 = vpop.f32.mrb[12].mxu0  ;;  %v6545_v1 = vpop.f32.mrb[13].mxu1 }
 0x42b   : > { %v9231_v0 = vadd.f32 %v7687_v63, %v6543_v61  ;;  %v7689_v3 = vpop.f32.mrb[13].mxu0  ;;  %v6547_v5 = vpop.f32.mrb[14].mxu1 }
 0x42c   : > { %v9232_v4 = vadd.f32 %v7689_v3, %v6545_v1  ;;  %v7691_v7 = vpop.f32.mrb[14].mxu0  ;;  %v6549_v10 = vpop.f32.mrb[15].mxu1 }
 0x42d   : > { %v7778_v8 = vadd.f32 %v9231_v0, %v614_v62  ;;  %v9233_v9 = vadd.f32 %v7691_v7, %v6547_v5  ;;  %v7693_v12 = vpop.f32.mrb[15].mxu0  ;;  %v627_v62 = vld [vmem:[#allocation2 + $0xc8] sm:$0xff]  ;;  %v629_v7 = vld [vmem:[#allocation2 + $0xd8] sm:$0xff] }
 0x42e   : > { %v7779_v13 = vadd.f32 %v9232_v4, %v615_v2  ;;  %v9234_v14 = vadd.f32 %v7693_v12, %v6549_v10  ;;  %v628_v2 = vld [vmem:[#allocation2 + $0xd0] sm:$0xff] }
 0x42f   : > { %7822 = vst [vmem:[#allocation2 + $0x60] sm:$0xff] %v7778_v8  ;;  %v7780_v15 = vadd.f32 %v9233_v9, %v616_v6 }
 0x430   : > { %7823 = vst [vmem:[#allocation2 + $0x68] sm:$0xff] %v7779_v13  ;;  %v7781_v16 = vadd.f32 %v9234_v14, %v617_v11  ;;  %v630_v14 = vld [vmem:[#allocation2 + $0xe0] sm:$0xff] }
 0x431   : > { %7824 = vst [vmem:[#allocation2 + $0x70] sm:$0xff] %v7780_v15  ;;  %v6553_v17 = vpop.f32.mrb[16].mxu1 }
 0x432   : > { %7825 = vst [vmem:[#allocation2 + $0x78] sm:$0xff] %v7781_v16  ;;  %v7697_v19 = vpop.f32.mrb[16].mxu0  ;;  %v6555_v21 = vpop.f32.mrb[17].mxu1 }
 0x433   : > { %v9235_v20 = vadd.f32 %v7697_v19, %v6553_v17  ;;  %v7699_v23 = vpop.f32.mrb[17].mxu0  ;;  %v6557_v25 = vpop.f32.mrb[18].mxu1 }
 0x434   : > { %v9236_v24 = vadd.f32 %v7699_v23, %v6555_v21  ;;  %v7701_v27 = vpop.f32.mrb[18].mxu0  ;;  %v6559_v30 = vpop.f32.mrb[19].mxu1 }
 0x435   : > { %v7782_v28 = vadd.f32 %v9235_v20, %v618_v18  ;;  %v9237_v29 = vadd.f32 %v7701_v27, %v6557_v25  ;;  %v7703_v32 = vpop.f32.mrb[19].mxu0  ;;  %v631_v18 = vld [vmem:[#allocation2 + $0xe8] sm:$0xff]  ;;  %v633_v27 = vld [vmem:[#allocation2 + $0xf8] sm:$0xff] }
 0x436   : > { %v7783_v33 = vadd.f32 %v9236_v24, %v619_v22  ;;  %v9238_v34 = vadd.f32 %v7703_v32, %v6559_v30  ;;  %v632_v22 = vld [vmem:[#allocation2 + $0xf0] sm:$0xff] }
 0x437   : > { %7826 = vst [vmem:[#allocation2 + $0x80] sm:$0xff] %v7782_v28  ;;  %v7784_v35 = vadd.f32 %v9237_v29, %v620_v26 }
 0x438   : > { %7827 = vst [vmem:[#allocation2 + $0x88] sm:$0xff] %v7783_v33  ;;  %v7785_v36 = vadd.f32 %v9238_v34, %v621_v31  ;;  %v634_v34 = vld [vmem:[#allocation2 + $0x100] sm:$0xff] }
 0x439   : > { %7828 = vst [vmem:[#allocation2 + $0x90] sm:$0xff] %v7784_v35  ;;  %v6563_v37 = vpop.f32.mrb[20].mxu1 }
 0x43a   : > { %7829 = vst [vmem:[#allocation2 + $0x98] sm:$0xff] %v7785_v36  ;;  %v7707_v39 = vpop.f32.mrb[20].mxu0  ;;  %v6565_v41 = vpop.f32.mrb[21].mxu1 }
 0x43b   : > { %v9239_v40 = vadd.f32 %v7707_v39, %v6563_v37  ;;  %v7709_v43 = vpop.f32.mrb[21].mxu0  ;;  %v6567_v45 = vpop.f32.mrb[22].mxu1 }
 0x43c   : > { %v9240_v44 = vadd.f32 %v7709_v43, %v6565_v41  ;;  %v7711_v47 = vpop.f32.mrb[22].mxu0  ;;  %v6569_v50 = vpop.f32.mrb[23].mxu1 }
 0x43d   : > { %v7786_v48 = vadd.f32 %v9239_v40, %v622_v38  ;;  %v9241_v49 = vadd.f32 %v7711_v47, %v6567_v45  ;;  %v7713_v52 = vpop.f32.mrb[23].mxu0  ;;  %v635_v38 = vld [vmem:[#allocation2 + $0x108] sm:$0xff]  ;;  %v637_v47 = vld [vmem:[#allocation2 + $0x118] sm:$0xff] }
 0x43e   : > { %v7787_v53 = vadd.f32 %v9240_v44, %v623_v42  ;;  %v9242_v54 = vadd.f32 %v7713_v52, %v6569_v50  ;;  %v636_v42 = vld [vmem:[#allocation2 + $0x110] sm:$0xff] }
 0x43f   : > { %7830 = vst [vmem:[#allocation2 + $0xa0] sm:$0xff] %v7786_v48  ;;  %v7788_v55 = vadd.f32 %v9241_v49, %v624_v46 }
 0x440   : > { %7831 = vst [vmem:[#allocation2 + $0xa8] sm:$0xff] %v7787_v53  ;;  %v7789_v56 = vadd.f32 %v9242_v54, %v625_v51  ;;  %v638_v54 = vld [vmem:[#allocation2 + $0x120] sm:$0xff] }
 0x441   : > { %7832 = vst [vmem:[#allocation2 + $0xb0] sm:$0xff] %v7788_v55  ;;  %v6573_v57 = vpop.f32.mrb[24].mxu1 }
 0x442   : > { %7833 = vst [vmem:[#allocation2 + $0xb8] sm:$0xff] %v7789_v56  ;;  %v7717_v59 = vpop.f32.mrb[24].mxu0  ;;  %v6575_v61 = vpop.f32.mrb[25].mxu1 }
 0x443   : > { %v9243_v60 = vadd.f32 %v7717_v59, %v6573_v57  ;;  %v7719_v63 = vpop.f32.mrb[25].mxu0  ;;  %v6577_v1 = vpop.f32.mrb[26].mxu1 }
 0x444   : > { %v9244_v0 = vadd.f32 %v7719_v63, %v6575_v61  ;;  %v7721_v3 = vpop.f32.mrb[26].mxu0  ;;  %v6579_v6 = vpop.f32.mrb[27].mxu1 }
 0x445   : > { %v7790_v4 = vadd.f32 %v9243_v60, %v626_v58  ;;  %v9245_v5 = vadd.f32 %v7721_v3, %v6577_v1  ;;  %v7723_v8 = vpop.f32.mrb[27].mxu0  ;;  %v639_v58 = vld [vmem:[#allocation2 + $0x128] sm:$0xff]  ;;  %v641_v3 = vld [vmem:[#allocation2 + $0x138] sm:$0xff] }
 0x446   : > { %v7791_v9 = vadd.f32 %v9244_v0, %v627_v62  ;;  %v9246_v10 = vadd.f32 %v7723_v8, %v6579_v6  ;;  %v640_v62 = vld [vmem:[#allocation2 + $0x130] sm:$0xff] }
 0x447   : > { %7834 = vst [vmem:[#allocation2 + $0xc0] sm:$0xff] %v7790_v4  ;;  %v7792_v11 = vadd.f32 %v9245_v5, %v628_v2 }
 0x448   : > { %7835 = vst [vmem:[#allocation2 + $0xc8] sm:$0xff] %v7791_v9  ;;  %v7793_v12 = vadd.f32 %v9246_v10, %v629_v7  ;;  %v642_v10 = vld [vmem:[#allocation2 + $0x140] sm:$0xff] }
 0x449   : > { %7836 = vst [vmem:[#allocation2 + $0xd0] sm:$0xff] %v7792_v11  ;;  %v6583_v13 = vpop.f32.mrb[28].mxu1 }
 0x44a   : > { %7837 = vst [vmem:[#allocation2 + $0xd8] sm:$0xff] %v7793_v12  ;;  %v7727_v15 = vpop.f32.mrb[28].mxu0  ;;  %v6585_v17 = vpop.f32.mrb[29].mxu1 }
 0x44b   : > { %v9247_v16 = vadd.f32 %v7727_v15, %v6583_v13  ;;  %v7729_v19 = vpop.f32.mrb[29].mxu0  ;;  %v6587_v21 = vpop.f32.mrb[30].mxu1 }
 0x44c   : > { %v9248_v20 = vadd.f32 %v7729_v19, %v6585_v17  ;;  %v7731_v23 = vpop.f32.mrb[30].mxu0  ;;  %v6589_v26 = vpop.f32.mrb[31].mxu1 }
 0x44d   : > { %v7794_v24 = vadd.f32 %v9247_v16, %v630_v14  ;;  %v9249_v25 = vadd.f32 %v7731_v23, %v6587_v21  ;;  %v7733_v28 = vpop.f32.mrb[31].mxu0  ;;  %v643_v14 = vld [vmem:[#allocation2 + $0x148] sm:$0xff]  ;;  %v645_v23 = vld [vmem:[#allocation2 + $0x158] sm:$0xff] }
 0x44e   : > { %v7795_v29 = vadd.f32 %v9248_v20, %v631_v18  ;;  %v9250_v30 = vadd.f32 %v7733_v28, %v6589_v26  ;;  %v644_v18 = vld [vmem:[#allocation2 + $0x150] sm:$0xff] }
 0x44f   : > { %7838 = vst [vmem:[#allocation2 + $0xe0] sm:$0xff] %v7794_v24  ;;  %v7796_v31 = vadd.f32 %v9249_v25, %v632_v22 }
 0x450   : > { %7839 = vst [vmem:[#allocation2 + $0xe8] sm:$0xff] %v7795_v29  ;;  %v7797_v32 = vadd.f32 %v9250_v30, %v633_v27  ;;  %v7859_v29 = vld [vmem:[#allocation2] sm:$0xff] (!%p9212_p9)  ;;  %v7860_v30 = vld [vmem:[#allocation2 + $0x8] sm:$0xff] (!%p9212_p9) }
 0x451   : > { %7840 = vst [vmem:[#allocation2 + $0xf0] sm:$0xff] %v7796_v31  ;;  %v6593_v33 = vpop.f32.mrb[32].mxu1  ;;  %v7861_v31 = vld [vmem:[#allocation2 + $0x10] sm:$0xff] (!%p9212_p9) }
 0x452   : > { %7841 = vst [vmem:[#allocation2 + $0xf8] sm:$0xff] %v7797_v32  ;;  %v7737_v35 = vpop.f32.mrb[32].mxu0  ;;  %v6595_v37 = vpop.f32.mrb[33].mxu1  ;;  %v7903_v32 = vmul.f32 (!%p9212_p9), %v7859_v29, %v7859_v29 }
 0x453   : > { %v9251_v36 = vadd.f32 %v7737_v35, %v6593_v33  ;;  %v7739_v39 = vpop.f32.mrb[33].mxu0  ;;  %v6597_v41 = vpop.f32.mrb[34].mxu1  ;;  %v7925_v33 = vmul.f32 (!%p9212_p9), %v7860_v30, %v7860_v30  ;;  %v7904_v35 = vmul.f32 (!%p9212_p9), %v7861_v31, %v7861_v31 }
 0x454   : > { %v9252_v40 = vadd.f32 %v7739_v39, %v6595_v37  ;;  %v7741_v43 = vpop.f32.mrb[34].mxu0  ;;  %v6599_v46 = vpop.f32.mrb[35].mxu1  ;;  %v7864_v37 = vld [vmem:[#allocation2 + $0x28] sm:$0xff] (!%p9212_p9) }
 0x455   : > { %v7798_v44 = vadd.f32 %v9251_v36, %v634_v34  ;;  %v9253_v45 = vadd.f32 %v7741_v43, %v6597_v41  ;;  %v7743_v48 = vpop.f32.mrb[35].mxu0  ;;  %v7862_v34 = vld [vmem:[#allocation2 + $0x18] sm:$0xff] (!%p9212_p9)  ;;  %v7863_v36 = vld [vmem:[#allocation2 + $0x20] sm:$0xff] (!%p9212_p9)  ;;  %v7865_v41 = vld [vmem:[#allocation2 + $0x30] sm:$0xff] (!%p9212_p9) }
 0x456   : > { %v7799_v49 = vadd.f32 %v9252_v40, %v635_v38  ;;  %v9254_v50 = vadd.f32 %v7743_v48, %v6599_v46  ;;  %v7926_v38 = vmul.f32 (!%p9212_p9), %v7862_v34, %v7862_v34  ;;  %v7905_v39 = vmul.f32 (!%p9212_p9), %v7863_v36, %v7863_v36  ;;  %v7867_v43 = vld [vmem:[#allocation2 + $0x40] sm:$0xff] (!%p9212_p9) }
 0x457   : > { %7842 = vst [vmem:[#allocation2 + $0x100] sm:$0xff] %v7798_v44  ;;  %v7800_v51 = vadd.f32 %v9253_v45, %v636_v42  ;;  %v7927_v40 = vmul.f32 (!%p9212_p9), %v7864_v37, %v7864_v37  ;;  %v7866_v42 = vld [vmem:[#allocation2 + $0x38] sm:$0xff] (!%p9212_p9)  ;;  %v11974_v44 = vadd.f32 (!%p9212_p9), %v7925_v33, %v7903_v32  ;;  %v7906_v45 = vmul.f32 (!%p9212_p9), %v7865_v41, %v7865_v41 }
 0x458   : > { %7843 = vst [vmem:[#allocation2 + $0x108] sm:$0xff] %v7799_v49  ;;  %v7801_v52 = vadd.f32 %v9254_v50, %v637_v47  ;;  %v7928_v46 = vmul.f32 (!%p9212_p9), %v7866_v42, %v7866_v42  ;;  %v7868_v47 = vld [vmem:[#allocation2 + $0x48] sm:$0xff] (!%p9212_p9)  ;;  %v11976_v48 = vadd.f32 (!%p9212_p9), %v7926_v38, %v7904_v35  ;;  %v7907_v50 = vmul.f32 (!%p9212_p9), %v7867_v43, %v7867_v43  ;;  %v7881_v35 = vld [vmem:[#allocation2 + $0xb0] sm:$0xff] (!%p9212_p9)  ;;  %v7882_v43 = vld [vmem:[#allocation2 + $0xb8] sm:$0xff] (!%p9212_p9) }
 0x459   : > { %7844 = vst [vmem:[#allocation2 + $0x110] sm:$0xff] %v7800_v51  ;;  %v6603_v53 = vpop.f32.mrb[36].mxu1  ;;  %v11978_v49 = vadd.f32 (!%p9212_p9), %v7927_v40, %v7905_v39  ;;  %v7929_v51 = vmul.f32 (!%p9212_p9), %v7868_v47, %v7868_v47  ;;  %10715 = vrsqrt.f32 (!%p9212_p9), %v11974_v44  ;;  %vm7971_vm0 = vcmp.eq.f32.partialorder (!%p9212_p9), %v11974_v44, inf  ;;  %v7884_v47 = vld [vmem:[#allocation2 + $0xc8] sm:$0xff] (!%p9212_p9) }
 0x45a   : > { %7845 = vst [vmem:[#allocation2 + $0x118] sm:$0xff] %v7801_v52  ;;  %v7747_v55 = vpop.f32.mrb[36].mxu0  ;;  %v6605_v57 = vpop.f32.mrb[37].mxu1  ;;  %v7869_v52 = vld [vmem:[#allocation2 + $0x50] sm:$0xff] (!%p9212_p9)  ;;  %10717 = vrsqrt.f32 (!%p9212_p9), %v11976_v48  ;;  %vm7973_vm1 = vcmp.eq.f32.partialorder (!%p9212_p9), %v11974_v44, 0.0  ;;  %vm7978_vm2 = vcmp.eq.f32.partialorder (!%p9212_p9), %v11976_v48, inf }
 0x45b   : > { %v9255_v56 = vadd.f32 %v7747_v55, %v6603_v53  ;;  %v7749_v59 = vpop.f32.mrb[37].mxu0  ;;  %v6607_v61 = vpop.f32.mrb[38].mxu1  ;;  %v7870_v53 = vld [vmem:[#allocation2 + $0x58] sm:$0xff] (!%p9212_p9)  ;;  %v7872_v55 = vld [vmem:[#allocation2 + $0x68] sm:$0xff] (!%p9212_p9)  ;;  %10719 = vrsqrt.f32 (!%p9212_p9), %v11978_v49  ;;  %vm7980_vm3 = vcmp.eq.f32.partialorder (!%p9212_p9), %v11976_v48, 0.0  ;;  %vm7985_vm4 = vcmp.eq.f32.partialorder (!%p9212_p9), %v11978_v49, inf }
 0x45c   : > { %v9256_v60 = vadd.f32 %v7749_v59, %v6605_v57  ;;  %v7751_v63 = vpop.f32.mrb[38].mxu0  ;;  %v6609_v2 = vpop.f32.mrb[39].mxu1  ;;  %v7874_v57 = vld [vmem:[#allocation2 + $0x78] sm:$0xff] (!%p9212_p9)  ;;  %v11985_v59 = vadd.f32 (!%p9212_p9), %v7928_v46, %v7906_v45  ;;  %vm7987_vm5 = vcmp.eq.f32.partialorder (!%p9212_p9), %v11978_v49, 0.0  ;;  %v7914_v46 = vmul.f32 (!%p9212_p9), %v7881_v35, %v7881_v35 }
 0x45d   : > { %v7802_v0 = vadd.f32 %v9255_v56, %v638_v54  ;;  %v9257_v1 = vadd.f32 %v7751_v63, %v6607_v61  ;;  %v7753_v4 = vpop.f32.mrb[39].mxu0  ;;  %v7871_v54 = vld [vmem:[#allocation2 + $0x60] sm:$0xff] (!%p9212_p9)  ;;  %v7873_v56 = vld [vmem:[#allocation2 + $0x70] sm:$0xff] (!%p9212_p9)  ;;  %v7930_v61 = vmul.f32 (!%p9212_p9), %v7870_v53, %v7870_v53  ;;  %v7974_v63 = vand.u32 (!%p9212_p9), 2147483648, %v11974_v44 }
 0x45e   : > { %v7803_v5 = vadd.f32 %v9256_v60, %v639_v58  ;;  %v9258_v6 = vadd.f32 %v7753_v4, %v6609_v2  ;;  %v7908_v58 = vmul.f32 (!%p9212_p9), %v7869_v52, %v7869_v52  ;;  %v11987_v60 = vadd.f32 (!%p9212_p9), %v7929_v51, %v7907_v50  ;;  %v7886_v51 = vld [vmem:[#allocation2 + $0xd8] sm:$0xff] (!%p9212_p9)  ;;  %v7887_v52 = vld [vmem:[#allocation2 + $0xe0] sm:$0xff] (!%p9212_p9) }
 0x45f   : > { %7846 = vst [vmem:[#allocation2 + $0x120] sm:$0xff] %v7802_v0  ;;  %v7804_v7 = vadd.f32 %v9257_v1, %v640_v62  ;;  %v7909_v62 = vmul.f32 (!%p9212_p9), %v7871_v54, %v7871_v54  ;;  %v7931_v0 = vmul.f32 (!%p9212_p9), %v7872_v55, %v7872_v55  ;;  %v7910_v1 = vmul.f32 (!%p9212_p9), %v7873_v56, %v7873_v56 }
 0x460   : > { %7847 = vst [vmem:[#allocation2 + $0x128] sm:$0xff] %v7803_v5  ;;  %v7805_v8 = vadd.f32 %v9258_v6, %v641_v3  ;;  %v7932_v2 = vmul.f32 (!%p9212_p9), %v7874_v57, %v7874_v57  ;;  %v7875_v3 = vld [vmem:[#allocation2 + $0x80] sm:$0xff] (!%p9212_p9)  ;;  %v7981_v4 = vand.u32 (!%p9212_p9), 2147483648, %v11976_v48  ;;  %10721 = vrsqrt.f32 (!%p9212_p9), %v11985_v59  ;;  %v7876_v5 = vld [vmem:[#allocation2 + $0x88] sm:$0xff] (!%p9212_p9)  ;;  %v7877_v6 = vld [vmem:[#allocation2 + $0x90] sm:$0xff] (!%p9212_p9) }
 0x461   : > { %7848 = vst [vmem:[#allocation2 + $0x130] sm:$0xff] %v7804_v7  ;;  %v6613_v9 = vpop.f32.mrb[40].mxu1  ;;  %v7878_v7 = vld [vmem:[#allocation2 + $0x98] sm:$0xff] (!%p9212_p9)  ;;  %10723 = vrsqrt.f32 (!%p9212_p9), %v11987_v60  ;;  %vm7992_vm6 = vcmp.eq.f32.partialorder (!%p9212_p9), %v11985_v59, inf  ;;  %vm7994_vm7 = vcmp.eq.f32.partialorder (!%p9212_p9), %v11985_v59, 0.0  ;;  %vm7999_vm8 = vcmp.eq.f32.partialorder (!%p9212_p9), %v11987_v60, inf }
 0x462   : > { %7849 = vst [vmem:[#allocation2 + $0x138] sm:$0xff] %v7805_v8  ;;  %v7757_v11 = vpop.f32.mrb[40].mxu0  ;;  %v6615_v13 = vpop.f32.mrb[41].mxu1  ;;  %v7988_v8 = vand.u32 (!%p9212_p9), 2147483648, %v11978_v49  ;;  %vm8001_vm9 = vcmp.eq.f32.partialorder (!%p9212_p9), %v11987_v60, 0.0  ;;  %v7936_v56 = vmul.f32 (!%p9212_p9), %v7882_v43, %v7882_v43 }
 0x463   : > { %v9259_v12 = vadd.f32 %v7757_v11, %v6613_v9  ;;  %v7759_v15 = vpop.f32.mrb[41].mxu0  ;;  %v6617_v17 = vpop.f32.mrb[42].mxu1  ;;  %v7879_v9 = vld [vmem:[#allocation2 + $0xa0] sm:$0xff] (!%p9212_p9)  ;;  %v11998_v11 = vadd.f32 (!%p9212_p9), %v7930_v61, %v7908_v58  ;;  %v7888_v58 = vld [vmem:[#allocation2 + $0xe8] sm:$0xff] (!%p9212_p9) }
 0x464   : > { %v9260_v16 = vadd.f32 %v7759_v15, %v6615_v13  ;;  %v7761_v19 = vpop.f32.mrb[42].mxu0  ;;  %v6619_v22 = vpop.f32.mrb[43].mxu1  ;;  %7858 = sbr.rel (%p9212_p9) target bundleno = 1178 (0x49a), region = 40  ;;  %v12002_v13 = vadd.f32 (!%p9212_p9), %v7932_v2, %v7910_v1  ;;  %v7933_v15 = vmul.f32 (!%p9212_p9), %v7876_v5, %v7876_v5  ;;  %v7917_v5 = vmul.f32 (!%p9212_p9), %v7887_v52, %v7887_v52 }
 0x465   : > { %v7806_v20 = vadd.f32 %v9259_v12, %v642_v10  ;;  %v9261_v21 = vadd.f32 %v7761_v19, %v6617_v17  ;;  %v7763_v24 = vpop.f32.mrb[43].mxu0  ;;  %v7880_v10 = vld [vmem:[#allocation2 + $0xa8] sm:$0xff] (!%p9212_p9)  ;;  %v12000_v12 = vadd.f32 (!%p9212_p9), %v7931_v0, %v7909_v62  ;;  %v7934_v17 = vmul.f32 (!%p9212_p9), %v7878_v7, %v7878_v7 }
 0x466   : > { %v7807_v25 = vadd.f32 %v9260_v16, %v643_v14  ;;  %v9262_v26 = vadd.f32 %v7763_v24, %v6619_v22  ;;  %v7911_v14 = vmul.f32 (!%p9212_p9), %v7875_v3, %v7875_v3  ;;  %v7912_v16 = vmul.f32 (!%p9212_p9), %v7877_v6, %v7877_v6  ;;  %v7895_v43 = vld [vmem:[#allocation2 + $0x120] sm:$0xff] (!%p9212_p9) }
 0x467   : > { %7850 = vst [vmem:[#allocation2 + $0x140] sm:$0xff] %v7806_v20  ;;  %v7808_v27 = vadd.f32 %v9261_v21, %v644_v18  ;;  %10725 = vrsqrt.f32 (!%p9212_p9), %v11998_v11  ;;  %v7913_v18 = vmul.f32 (!%p9212_p9), %v7879_v9, %v7879_v9  ;;  %v7935_v19 = vmul.f32 (!%p9212_p9), %v7880_v10, %v7880_v10  ;;  %v10716_v20 = vpop.eup (!%p9212_p9), %10715 }
 0x468   : > { %7851 = vst [vmem:[#allocation2 + $0x148] sm:$0xff] %v7807_v25  ;;  %v7809_v28 = vadd.f32 %v9262_v26, %v645_v23  ;;  %v7995_v21 = vand.u32 (!%p9212_p9), 2147483648, %v11985_v59  ;;  %10727 = vrsqrt.f32 (!%p9212_p9), %v12000_v12  ;;  %v10718_v22 = vpop.eup (!%p9212_p9), %10717  ;;  %v7970_v23 = vmul.f32 (!%p9212_p9), %v10716_v20, %v11974_v44 }
 0x469   : > { %7852 = vst [vmem:[#allocation2 + $0x150] sm:$0xff] %v7808_v27  ;;  %v8002_v24 = vand.u32 (!%p9212_p9), 2147483648, %v11987_v60  ;;  %vm8006_vm10 = vcmp.eq.f32.partialorder (!%p9212_p9), %v11998_v11, inf  ;;  %10729 = vrsqrt.f32 (!%p9212_p9), %v12002_v13  ;;  %v10720_v25 = vpop.eup (!%p9212_p9), %10719  ;;  %v7977_v26 = vmul.f32 (!%p9212_p9), %v10718_v22, %v11976_v48 }
 0x46a   : > { %7853 = vst [vmem:[#allocation2 + $0x158] sm:$0xff] %v7809_v28  ;;  %vm8008_vm11 = vcmp.eq.f32.partialorder (!%p9212_p9), %v11998_v11, 0.0  ;;  %v12017_v27 = vadd.f32 (!%p9212_p9), %v7933_v15, %v7911_v14  ;;  %v12019_v28 = vadd.f32 (!%p9212_p9), %v7934_v17, %v7912_v16  ;;  %v7972_v29 = vsel (!%p9212_p9), %vm7971_vm0, %v11974_v44, %v7970_v23  ;;  %v10722_v36 = vpop.eup (!%p9212_p9), %10721  ;;  %v7883_v44 = vld [vmem:[#allocation2 + $0xc0] sm:$0xff] (!%p9212_p9) }
 0x46b   : > { %v7984_v30 = vmul.f32 %v10720_v25, %v11978_v49  ;;  %v8009_v31 = vand.u32 2147483648, %v11998_v11  ;;  %v12026_v32 = vadd.f32 %v7935_v19, %v7913_v18  ;;  %v7975_v33 = vsel %vm7973_vm1, %v7974_v63, %v7972_v29  ;;  %v10724_v40 = vpop.eup %10723  ;;  %v7890_v18 = vld [vmem:[#allocation2 + $0xf8] sm:$0xff] }
 0x46c   : > { %v7979_v34 = vsel %vm7978_vm2, %v11976_v48, %v7977_v26  ;;  %vm8013_vm12 = vcmp.eq.f32.partialorder %v12000_v12, inf  ;;  %10731 = vrsqrt.f32 %v12017_v27  ;;  %8123 = vst [vmem:[%s11098_s0] sm:$0xff] %v7975_v33  ;;  %vm8015_vm13 = vcmp.eq.f32.partialorder %v12000_v12, 0.0  ;;  %v7885_v48 = vld [vmem:[#allocation2 + $0xd0] sm:$0xff] }
 0x46d   : > { %v7982_v37 = vsel %vm7980_vm3, %v7981_v4, %v7979_v34  ;;  %v7986_v38 = vsel %vm7985_vm4, %v11978_v49, %v7984_v30  ;;  %v8016_v39 = vand.u32 2147483648, %v12000_v12  ;;  %v7991_v42 = vmul.f32 %v10722_v36, %v11985_v59  ;;  %v7891_v34 = vld [vmem:[#allocation2 + $0x100] sm:$0xff]  ;;  %v7892_v36 = vld [vmem:[#allocation2 + $0x108] sm:$0xff] }
 0x46e   : > { %8124 = vst [vmem:[%s11098_s0 + $0x8] sm:$0xff] %v7982_v37  ;;  %v7989_v41 = vsel %vm7987_vm5, %v7988_v8, %v7986_v38  ;;  %vm8020_vm14 = vcmp.eq.f32.partialorder %v12002_v13, inf  ;;  %10733 = vrsqrt.f32 %v12019_v28  ;;  %v7998_v45 = vmul.f32 %v10724_v40, %v11987_v60  ;;  %v7893_v37 = vld [vmem:[#allocation2 + $0x110] sm:$0xff]  ;;  %v7894_v38 = vld [vmem:[#allocation2 + $0x118] sm:$0xff] }
 0x46f   : > { %8125 = vst [vmem:[%s11098_s0 + $0x10] sm:$0xff] %v7989_v41  ;;  %vm8022_vm15 = vcmp.eq.f32.partialorder %v12002_v13, 0.0  ;;  %10735 = vrsqrt.f32 %v12026_v32  ;;  %v7993_v49 = vsel %vm7992_vm6, %v11985_v59, %v7991_v42  ;;  %v8023_v50 = vand.u32 2147483648, %v12002_v13  ;;  %v7900_v52 = vld [vmem:[#allocation2 + $0x148] sm:$0xff] }
 0x470   : > { %vm8027_vm0 = vcmp.eq.f32.partialorder %v12017_v27, inf  ;;  %vm8029_vm1 = vcmp.eq.f32.partialorder %v12017_v27, 0.0  ;;  %v7996_v54 = vsel %vm7994_vm7, %v7995_v21, %v7993_v49  ;;  %v8000_v55 = vsel %vm7999_vm8, %v11987_v60, %v7998_v45  ;;  %v7898_v49 = vld [vmem:[#allocation2 + $0x138] sm:$0xff] }
 0x471   : > { %v10726_v53 = vpop.eup %10725  ;;  %v7915_v57 = vmul.f32 %v7883_v44, %v7883_v44  ;;  %8126 = vst [vmem:[%s11098_s0 + $0x18] sm:$0xff] %v7996_v54  ;;  %v8003_v62 = vsel %vm8001_vm9, %v8002_v24, %v8000_v55  ;;  %v7937_v0 = vmul.f32 %v7884_v47, %v7884_v47  ;;  %v7916_v1 = vmul.f32 %v7885_v48, %v7885_v48  ;;  %v7896_v44 = vld [vmem:[#allocation2 + $0x128] sm:$0xff]  ;;  %v7897_v48 = vld [vmem:[#allocation2 + $0x130] sm:$0xff] }
 0x472   : > { %v10728_v61 = vpop.eup %10727  ;;  %v8005_v63 = vmul.f32 %v10726_v53, %v11998_v11  ;;  %8127 = vst [vmem:[%s11098_s0 + $0x20] sm:$0xff] %v8003_v62  ;;  %v12070_v3 = vadd.f32 %v7936_v56, %v7914_v46  ;;  %v7938_v4 = vmul.f32 %v7886_v51, %v7886_v51  ;;  %v7939_v8 = vmul.f32 %v7888_v58, %v7888_v58 }
 0x473   : > { %v10730_v2 = vpop.eup %10729  ;;  %v8012_v59 = vmul.f32 %v10728_v61, %v12000_v12  ;;  %v12076_v7 = vadd.f32 %v7937_v0, %v7915_v57  ;;  %v8030_v14 = vand.u32 2147483648, %v12017_v27  ;;  %vm8034_vm2 = vcmp.eq.f32.partialorder %v12019_v28, inf }
 0x474   : > { %v8007_v6 = vsel %vm8006_vm10, %v11998_v11, %v8005_v63  ;;  %v8019_v60 = vmul.f32 %v10730_v2, %v12002_v13  ;;  %10737 = vrsqrt.f32 %v12070_v3  ;;  %vm8036_vm3 = vcmp.eq.f32.partialorder %v12019_v28, 0.0  ;;  %v7889_v11 = vld [vmem:[#allocation2 + $0xf0] sm:$0xff] }
 0x475   : > { %v8010_v9 = vsel %vm8008_vm11, %v8009_v31, %v8007_v6  ;;  %v8014_v10 = vsel %vm8013_vm12, %v12000_v12, %v8012_v59  ;;  %v8037_v21 = vand.u32 2147483648, %v12019_v28  ;;  %10739 = vrsqrt.f32 %v12076_v7 }
 0x476   : > { %v10732_v15 = vpop.eup %10731  ;;  %8128 = vst [vmem:[%s11098_s0 + $0x28] sm:$0xff] %v8010_v9  ;;  %v8017_v16 = vsel %vm8015_vm13, %v8016_v39, %v8014_v10  ;;  %v8021_v17 = vsel %vm8020_vm14, %v12002_v13, %v8019_v60  ;;  %vm8041_vm4 = vcmp.eq.f32.partialorder %v12026_v32, inf  ;;  %v8044_v22 = vand.u32 2147483648, %v12026_v32  ;;  %v7901_v60 = vld [vmem:[#allocation2 + $0x150] sm:$0xff] }
 0x477   : > { %8129 = vst [vmem:[%s11098_s0 + $0x30] sm:$0xff] %v8017_v16  ;;  %v8024_v19 = vsel %vm8022_vm15, %v8023_v50, %v8021_v17  ;;  %v8026_v20 = vmul.f32 %v10732_v15, %v12017_v27  ;;  %v12102_v23 = vadd.f32 %v7938_v4, %v7916_v1  ;;  %v12104_v24 = vadd.f32 %v7939_v8, %v7917_v5  ;;  %v7902_v8 = vld [vmem:[#allocation2 + $0x158] sm:$0xff] }
 0x478   : > { %v10734_v12 = vpop.eup %10733  ;;  %8130 = vst [vmem:[%s11098_s0 + $0x38] sm:$0xff] %v8024_v19  ;;  %v7918_v29 = vmul.f32 %v7889_v11, %v7889_v11  ;;  %v7940_v30 = vmul.f32 %v7890_v18, %v7890_v18  ;;  %vm8043_vm5 = vcmp.eq.f32.partialorder %v12026_v32, 0.0  ;;  %vm8048_vm6 = vcmp.eq.f32.partialorder %v12070_v3, inf }
 0x479   : > { %v10736_v25 = vpop.eup %10735  ;;  %v8028_v13 = vsel %vm8027_vm0, %v12017_v27, %v8026_v20  ;;  %v8033_v26 = vmul.f32 %v10734_v12, %v12019_v28  ;;  %10741 = vrsqrt.f32 %v12102_v23  ;;  %vm8050_vm7 = vcmp.eq.f32.partialorder %v12070_v3, 0.0 }
 0x47a   : > { %v8031_v31 = vsel %vm8029_vm1, %v8030_v14, %v8028_v13  ;;  %v8040_v33 = vmul.f32 %v10736_v25, %v12026_v32  ;;  %10743 = vrsqrt.f32 %v12104_v24  ;;  %v12128_v41 = vadd.f32 %v7940_v30, %v7918_v29 }
 0x47b   : > { %8131 = vst [vmem:[%s11098_s0 + $0x40] sm:$0xff] %v8031_v31  ;;  %v8035_v35 = vsel %vm8034_vm2, %v12019_v28, %v8033_v26  ;;  %v7919_v42 = vmul.f32 %v7891_v34, %v7891_v34  ;;  %v8051_v45 = vand.u32 2147483648, %v12070_v3  ;;  %v7941_v28 = vmul.f32 %v7892_v36, %v7892_v36 }
 0x47c   : > { %v8038_v27 = vsel %vm8036_vm3, %v8037_v21, %v8035_v35  ;;  %v8042_v39 = vsel %vm8041_vm4, %v12026_v32, %v8040_v33  ;;  %v7920_v46 = vmul.f32 %v7893_v37, %v7893_v37  ;;  %v7942_v47 = vmul.f32 %v7894_v38, %v7894_v38  ;;  %v7899_v32 = vld [vmem:[#allocation2 + $0x140] sm:$0xff] }
 0x47d   : > { %8132 = vst [vmem:[%s11098_s0 + $0x48] sm:$0xff] %v8038_v27  ;;  %v8045_v40 = vsel %vm8043_vm5, %v8044_v22, %v8042_v39  ;;  %vm8055_vm8 = vcmp.eq.f32.partialorder %v12076_v7, inf  ;;  %vm8057_vm9 = vcmp.eq.f32.partialorder %v12076_v7, 0.0  ;;  %v8058_v51 = vand.u32 2147483648, %v12076_v7 }
 0x47e   : > { %8133 = vst [vmem:[%s11098_s0 + $0x50] sm:$0xff] %v8045_v40  ;;  %v10738_v50 = vpop.eup %10737  ;;  %10745 = vrsqrt.f32 %v12128_v41  ;;  %v12137_v54 = vadd.f32 %v7941_v28, %v7919_v42  ;;  %v12139_v55 = vadd.f32 %v7942_v47, %v7920_v46  ;;  %v7921_v56 = vmul.f32 %v7895_v43, %v7895_v43 }
 0x47f   : > { %v8047_v53 = vmul.f32 %v10738_v50, %v12070_v3  ;;  %v10740_v57 = vpop.eup %10739  ;;  %v7943_v58 = vmul.f32 %v7896_v44, %v7896_v44  ;;  %v7922_v61 = vmul.f32 %v7897_v48, %v7897_v48  ;;  %v7944_v62 = vmul.f32 %v7898_v49, %v7898_v49 }
 0x480   : > { %v7923_v63 = vmul.f32 %v7899_v32, %v7899_v32  ;;  %v8054_v1 = vmul.f32 %v10740_v57, %v12076_v7  ;;  %10747 = vrsqrt.f32 %v12137_v54  ;;  %v7945_v2 = vmul.f32 %v7900_v52, %v7900_v52 }
 0x481   : > { %v8049_v0 = vsel %vm8048_vm6, %v12070_v3, %v8047_v53  ;;  %vm8062_vm10 = vcmp.eq.f32.partialorder %v12102_v23, inf  ;;  %vm8064_vm11 = vcmp.eq.f32.partialorder %v12102_v23, 0.0  ;;  %10749 = vrsqrt.f32 %v12139_v55 }
 0x482   : > { %v8052_v59 = vsel %vm8050_vm7, %v8051_v45, %v8049_v0  ;;  %v8056_v5 = vsel %vm8055_vm8, %v12076_v7, %v8054_v1  ;;  %v8065_v6 = vand.u32 2147483648, %v12102_v23  ;;  %vm8069_vm12 = vcmp.eq.f32.partialorder %v12104_v24, inf }
 0x483   : > { %v10742_v4 = vpop.eup %10741  ;;  %8134 = vst [vmem:[%s11098_s0 + $0x58] sm:$0xff] %v8052_v59  ;;  %v8072_v3 = vand.u32 2147483648, %v12104_v24  ;;  %v8059_v10 = vsel %vm8057_vm9, %v8058_v51, %v8056_v5  ;;  %v7965_v15 = vadd.f32 %v7943_v58, %v7921_v56  ;;  %v12161_v16 = vadd.f32 %v7944_v62, %v7922_v61 }
 0x484   : > { %v10744_v9 = vpop.eup %10743  ;;  %v8061_v14 = vmul.f32 %v10742_v4, %v12102_v23  ;;  %8135 = vst [vmem:[%s11098_s0 + $0x60] sm:$0xff] %v8059_v10  ;;  %vm8071_vm13 = vcmp.eq.f32.partialorder %v12104_v24, 0.0  ;;  %v12166_v11 = vadd.f32 %v7945_v2, %v7923_v63  ;;  %v7924_v7 = vmul.f32 %v7901_v60, %v7901_v60 }
 0x485   : > { %v8068_v17 = vmul.f32 %v10744_v9, %v12104_v24  ;;  %10751 = vrsqrt.f32 %v7965_v15  ;;  %v7946_v19 = vmul.f32 %v7902_v8, %v7902_v8  ;;  %vm8076_vm14 = vcmp.eq.f32.partialorder %v12128_v41, inf }
 0x486   : > { %v8063_v18 = vsel %vm8062_vm10, %v12102_v23, %v8061_v14  ;;  %10753 = vrsqrt.f32 %v12161_v16  ;;  %v8079_v25 = vand.u32 2147483648, %v12128_v41  ;;  %vm8078_vm15 = vcmp.eq.f32.partialorder %v12128_v41, 0.0 }
 0x487   : > { %v8066_v20 = vsel %vm8064_vm11, %v8065_v6, %v8063_v18  ;;  %v8070_v21 = vsel %vm8069_vm12, %v12104_v24, %v8068_v17  ;;  %10755 = vrsqrt.f32 %v12166_v11  ;;  %vm8083_vm0 = vcmp.eq.f32.partialorder %v12137_v54, inf }
 0x488   : > { %v10746_v12 = vpop.eup %10745  ;;  %8136 = vst [vmem:[%s11098_s0 + $0x68] sm:$0xff] %v8066_v20  ;;  %v8073_v22 = vsel %vm8071_vm13, %v8072_v3, %v8070_v21  ;;  %v7968_v23 = vadd.f32 %v7946_v19, %v7924_v7  ;;  %vm8085_vm1 = vcmp.eq.f32.partialorder %v12137_v54, 0.0  ;;  %v8086_v29 = vand.u32 2147483648, %v12137_v54 }
 0x489   : > { %8137 = vst [vmem:[%s11098_s0 + $0x70] sm:$0xff] %v8073_v22  ;;  %v8075_v13 = vmul.f32 %v10746_v12, %v12128_v41  ;;  %vm8090_vm2 = vcmp.eq.f32.partialorder %v12139_v55, inf  ;;  %v8093_v34 = vand.u32 2147483648, %v12139_v55  ;;  %vm8092_vm3 = vcmp.eq.f32.partialorder %v12139_v55, 0.0 }
 0x48a   : > { %v10748_v24 = vpop.eup %10747  ;;  %10757 = vrsqrt.f32 %v7968_v23  ;;  %vm8097_vm4 = vcmp.eq.f32.partialorder %v7965_v15, inf  ;;  %v8100_v40 = vand.u32 2147483648, %v7965_v15  ;;  %vm8099_vm5 = vcmp.eq.f32.partialorder %v7965_v15, 0.0 }
 0x48b   : > { %v8077_v26 = vsel %vm8076_vm14, %v12128_v41, %v8075_v13  ;;  %v10750_v30 = vpop.eup %10749  ;;  %v8082_v33 = vmul.f32 %v10748_v24, %v12137_v54  ;;  %vm8104_vm6 = vcmp.eq.f32.partialorder %v12161_v16, inf  ;;  %v8107_v43 = vand.u32 2147483648, %v12161_v16 }
 0x48c   : > { %v8080_v31 = vsel %vm8078_vm15, %v8079_v25, %v8077_v26  ;;  %v8089_v35 = vmul.f32 %v10750_v30, %v12139_v55  ;;  %vm8106_vm7 = vcmp.eq.f32.partialorder %v12161_v16, 0.0  ;;  %vm8111_vm8 = vcmp.eq.f32.partialorder %v12166_v11, inf }
 0x48d   : > { %8138 = vst [vmem:[%s11098_s0 + $0x78] sm:$0xff] %v8080_v31  ;;  %v8084_v36 = vsel %vm8083_vm0, %v12137_v54, %v8082_v33  ;;  %v8114_v46 = vand.u32 2147483648, %v12166_v11  ;;  %vm8113_vm9 = vcmp.eq.f32.partialorder %v12166_v11, 0.0  ;;  %vm8118_vm10 = vcmp.eq.f32.partialorder %v7968_v23, inf }
 0x48e   : > { %v8087_v37 = vsel %vm8085_vm1, %v8086_v29, %v8084_v36  ;;  %v8091_v38 = vsel %vm8090_vm2, %v12139_v55, %v8089_v35  ;;  %v8121_v52 = vand.u32 2147483648, %v7968_v23  ;;  %vm8120_vm11 = vcmp.eq.f32.partialorder %v7968_v23, 0.0 }
 0x48f   : > { %v10752_v27 = vpop.eup %10751  ;;  %8139 = vst [vmem:[%s11098_s0 + $0x80] sm:$0xff] %v8087_v37  ;;  %v8094_v39 = vsel %vm8092_vm3, %v8093_v34, %v8091_v38 }
 0x490   : > { %v10754_v41 = vpop.eup %10753  ;;  %8140 = vst [vmem:[%s11098_s0 + $0x88] sm:$0xff] %v8094_v39  ;;  %v8096_v42 = vmul.f32 %v10752_v27, %v7965_v15 }
 0x491   : > { %v8103_v44 = vmul.f32 %v10754_v41, %v12161_v16  ;;  %v10756_v45 = vpop.eup %10755 }
 0x492   : > { %v8098_v28 = vsel %vm8097_vm4, %v7965_v15, %v8096_v42  ;;  %v8110_v49 = vmul.f32 %v10756_v45, %v12166_v11 }
 0x493   : > { %v8101_v47 = vsel %vm8099_vm5, %v8100_v40, %v8098_v28  ;;  %v8105_v48 = vsel %vm8104_vm6, %v12161_v16, %v8103_v44 }
 0x494   : > { %8141 = vst [vmem:[%s11098_s0 + $0x90] sm:$0xff] %v8101_v47  ;;  %v8108_v32 = vsel %vm8106_vm7, %v8107_v43, %v8105_v48  ;;  %v10758_v50 = vpop.eup %10757  ;;  %v8112_v51 = vsel %vm8111_vm8, %v12166_v11, %v8110_v49 }
 0x495   : > { %8142 = vst [vmem:[%s11098_s0 + $0x98] sm:$0xff] %v8108_v32  ;;  %v8115_v53 = vsel %vm8113_vm9, %v8114_v46, %v8112_v51  ;;  %v8117_v54 = vmul.f32 %v10758_v50, %v7968_v23 }
 0x496   : > { %8143 = vst [vmem:[%s11098_s0 + $0xa0] sm:$0xff] %v8115_v53 }
 0x497   : > { %v8119_v55 = vsel %vm8118_vm10, %v7968_v23, %v8117_v54 }
 0x498   : > { %v8122_v56 = vsel %vm8120_vm11, %v8121_v52, %v8119_v55 }
 0x499   : > { %8144 = vst [vmem:[%s11098_s0 + $0xa8] sm:$0xff] %v8122_v56 }
 0x49a PF: > { %p12274_p12 = scmp.ne.s32.totalorder %s12270_s15, 0 }
 0x49b   : > { %s8152_s20 = sld [smem:[#allocation5 + %s10996_s27]] (%p12274_p12)  ;;  %v8224_v57 = vld [vmem:[%s11098_s0] sm:$0xff] (%p12274_p12)  ;;  %v8226_v58 = vld [vmem:[%s11098_s0 + $0x8] sm:$0xff] (%p12274_p12)  ;;  %v8228_v61 = vld [vmem:[%s11098_s0 + $0x10] sm:$0xff] (%p12274_p12) }
 0x49c   : > { %8151 = sbr.rel (!%p12274_p12) target bundleno = 1198 (0x4ae), region = 44  ;;  %v8230_v62 = vld [vmem:[%s11098_s0 + $0x18] sm:$0xff] (%p12274_p12)  ;;  %v8232_v63 = vld [vmem:[%s11098_s0 + $0x20] sm:$0xff] (%p12274_p12)  ;;  %v8234_v0 = vld [vmem:[%s11098_s0 + $0x28] sm:$0xff] (%p12274_p12) }
 0x49d   : > { %v8236_v1 = vld [vmem:[%s11098_s0 + $0x30] sm:$0xff] (%p12274_p12)  ;;  %v8238_v2 = vld [vmem:[%s11098_s0 + $0x38] sm:$0xff] (%p12274_p12)  ;;  %v8240_v59 = vld [vmem:[%s11098_s0 + $0x40] sm:$0xff] (%p12274_p12) }
 0x49e   : > { %v8242_v4 = vld [vmem:[%s11098_s0 + $0x48] sm:$0xff] (%p12274_p12)  ;;  %v8244_v5 = vld [vmem:[%s11098_s0 + $0x50] sm:$0xff] (%p12274_p12)  ;;  %v8246_v6 = vld [vmem:[%s11098_s0 + $0x58] sm:$0xff] (%p12274_p12) }
 0x49f   : > { %v8248_v3 = vld [vmem:[%s11098_s0 + $0x60] sm:$0xff] (%p12274_p12)  ;;  %v8250_v60 = vld [vmem:[%s11098_s0 + $0x68] sm:$0xff] (%p12274_p12)  ;;  %v8252_v8 = vld [vmem:[%s11098_s0 + $0x70] sm:$0xff] (%p12274_p12) }
 0x4a0   : > { %v8254_v9 = vld [vmem:[%s11098_s0 + $0x78] sm:$0xff] (%p12274_p12)  ;;  %v8256_v10 = vld [vmem:[%s11098_s0 + $0x80] sm:$0xff] (%p12274_p12)  ;;  %v8258_v14 = vld [vmem:[%s11098_s0 + $0x88] sm:$0xff] (%p12274_p12) }
 0x4a1   : > { %s9213_s27 = sshll.u32 (%p12274_p12), %s8152_s20, 3  ;;  %v8260_v15 = vld [vmem:[%s11098_s0 + $0x90] sm:$0xff] (%p12274_p12)  ;;  %v8262_v16 = vld [vmem:[%s11098_s0 + $0x98] sm:$0xff] (%p12274_p12)  ;;  %v8264_v17 = vld [vmem:[%s11098_s0 + $0xa0] sm:$0xff] (%p12274_p12) }
 0x4a2   : > { %s8154_s30 = scalar_lea.vmem (%p12274_p12), %s12262_s7, %s9213_s27  ;;  %v8266_v11 = vld [vmem:[%s11098_s0 + $0xa8] sm:$0xff] (%p12274_p12) }
 0x4a3   : > { %8225 = vst [vmem:[%s8154_s30] sm:$0xff] %v8224_v57  ;;  %8227 = vst [vmem:[%s8154_s30 + $0x40] sm:$0xff] %v8226_v58 }
 0x4a4   : > { %8229 = vst [vmem:[%s8154_s30 + $0x80] sm:$0xff] %v8228_v61  ;;  %8231 = vst [vmem:[%s8154_s30 + $0xc0] sm:$0xff] %v8230_v62 }
 0x4a5   : > { %8233 = vst [vmem:[%s8154_s30 + $0x100] sm:$0xff] %v8232_v63  ;;  %8235 = vst [vmem:[%s8154_s30 + $0x140] sm:$0xff] %v8234_v0 }
 0x4a6   : > { %8237 = vst [vmem:[%s8154_s30 + $0x180] sm:$0xff] %v8236_v1  ;;  %8239 = vst [vmem:[%s8154_s30 + $0x1c0] sm:$0xff] %v8238_v2 }
 0x4a7   : > { %8241 = vst [vmem:[%s8154_s30 + $0x200] sm:$0xff] %v8240_v59  ;;  %8243 = vst [vmem:[%s8154_s30 + $0x240] sm:$0xff] %v8242_v4 }
 0x4a8   : > { %8245 = vst [vmem:[%s8154_s30 + $0x280] sm:$0xff] %v8244_v5  ;;  %8247 = vst [vmem:[%s8154_s30 + $0x2c0] sm:$0xff] %v8246_v6 }
 0x4a9   : > { %8249 = vst [vmem:[%s8154_s30 + $0x300] sm:$0xff] %v8248_v3  ;;  %8251 = vst [vmem:[%s8154_s30 + $0x340] sm:$0xff] %v8250_v60 }
 0x4aa   : > { %8253 = vst [vmem:[%s8154_s30 + $0x380] sm:$0xff] %v8252_v8  ;;  %8255 = vst [vmem:[%s8154_s30 + $0x3c0] sm:$0xff] %v8254_v9 }
 0x4ab   : > { %8257 = vst [vmem:[%s8154_s30 + $0x400] sm:$0xff] %v8256_v10  ;;  %8259 = vst [vmem:[%s8154_s30 + $0x440] sm:$0xff] %v8258_v14 }
 0x4ac   : > { %8261 = vst [vmem:[%s8154_s30 + $0x480] sm:$0xff] %v8260_v15  ;;  %8263 = vst [vmem:[%s8154_s30 + $0x4c0] sm:$0xff] %v8262_v16 }
 0x4ad   : > { %8265 = vst [vmem:[%s8154_s30 + $0x500] sm:$0xff] %v8264_v17  ;;  %8267 = vst [vmem:[%s8154_s30 + $0x540] sm:$0xff] %v8266_v11 }
 0x4ae PF: > { %p39_p0 = scmp.ge.s32.totalorder %s10999_s28, 32   ;;  %s12275_s22 = smov %s10885_s23 }
 0x4af   : > { %s12276_s23 = smov %s11033_s2  ;;  %s12277_s4 = smov %s10893_s24 }
 0x4b0   : > { %s12278_s24 = smov %s10897_s25  ;;  %s12279_s25 = smov %s11024_s13 }
 0x4b1   : > { %s12280_s26 = smov %s10999_s28  ;;  %41 = sbr.rel (!%p39_p0) target bundleno = 60 (0x3c), region = 115 }
 0x4b8   :  { %8283 = vsyncpa [#allocation10], 1 }
 0x4b9   :  { %8285 = vsyncpa [#allocation10 + $0x1], 1 }

</bundles_post_ra>
